<compile_context>
chip_gen: v6e
topology: v6e:2x2x1
jax: 0.10.0
libtpu: 0.0.40
codegen_flags: <defaults>
</compile_context>

<pallas_src>
import math

import jax
import jax.numpy as jnp
import numpy as np
from jax import lax
from jax.experimental import pallas as pl
from jax.experimental.pallas import tpu as pltpu

H = 32
W = 32
P = H * W            # 1024 flattened output pixels -> one lane-dense output tile
LOG2_W = 5           # W == 32
MAX_BLOCK_NC = 32    # images (N*C) per grid step; keeps per-step VMEM ~<10 MiB everywhere


def _warp_kernel(params_ref, x_ref, o_ref):
    """params_ref (SMEM f32[4]) = [cos(theta), sin(theta), off_y, off_x].

    x_ref: (block_nc*H, W) bf16 source rows (one per sublane-row).
    o_ref: (block_nc, P)   f32 warped images, flattened (row-major) over output pixels.
    """
    cos_t = params_ref[0]
    sin_t = params_ref[1]
    off_y = params_ref[2]   # integer-valued crop shift (rows), as float
    off_x = params_ref[3]   # integer-valued crop shift (cols), as float

    block_nc = o_ref.shape[0]

    # ---- per-output-pixel geometry, lane-dense shape (1, P) --------------------------
    p_idx = lax.broadcasted_iota(jnp.int32, (1, P), 1)
    i_out = (p_idx >> LOG2_W).astype(jnp.float32)        # output row
    j_out = (p_idx & (W - 1)).astype(jnp.float32)        # output col

    cy = (H - 1) / 2.0
    cxc = (W - 1) / 2.0
    # Inverse rotation about the center: source coords in the *cropped* image frame.
    u = cos_t * (j_out - cxc) + sin_t * (i_out - cy) + cxc    # src col (float)
    v = -sin_t * (j_out - cxc) + cos_t * (i_out - cy) + cy    # src row (float)

    y0 = jnp.floor(v)
    x0 = jnp.floor(u)
    wy = v - y0
    wx = u - x0

    # Hoisted per-pixel corner coefficients; validity w.r.t. the cropped-frame bounds
    # (rotation zero-padding).  Kept in f32 (exact small-integer matching below).
    ay0 = jnp.where((y0 >= 0.0) & (y0 <= H - 1.0), 1.0 - wy, 0.0)
    ay1 = jnp.where((y0 + 1.0 >= 0.0) & (y0 + 1.0 <= H - 1.0), wy, 0.0)
    ax0 = jnp.where((x0 >= 0.0) & (x0 <= W - 1.0), 1.0 - wx, 0.0)
    ax1 = jnp.where((x0 + 1.0 >= 0.0) & (x0 + 1.0 <= W - 1.0), wx, 0.0)

    # Crop translation: matching against source indices in [0, H)/[0, W) enforces the
    # original-image bounds (crop zero-padding).  Values are exact small integers in f32.
    ty0 = y0 + off_y
    tx0 = x0 + off_x

    # ---- factorized bilinear weights: source index on sublanes, output pixel on lanes --
    hq = lax.broadcasted_iota(jnp.int32, (H, 1), 0).astype(jnp.float32)   # (H, 1)
    wq = lax.broadcasted_iota(jnp.int32, (W, 1), 0).astype(jnp.float32)   # (W, 1)
    ryt = (jnp.where(hq == ty0, ay0, 0.0)
           + jnp.where(hq == ty0 + 1.0, ay1, 0.0))                        # (H, P) f32
    cxt = (jnp.where(wq == tx0, ax0, 0.0)
           + jnp.where(wq == tx0 + 1.0, ax1, 0.0)).astype(x_ref.dtype)    # (W, P) bf16

    # ---- separable contraction --------------------------------------------------------
    # Stage 1 (MXU): contract over source columns.  s[(n,h), p] = sum_w x[n,h,w]*cxt[w,p]
    s = lax.dot_general(
        x_ref[...], cxt,
        dimension_numbers=(((1,), (0,)), ((), ())),
        preferred_element_type=jnp.float32,
    )                                                                     # (block_nc*H, P)

    # Stage 2: weight by the row factor and group-sum the H source rows of each image.
    # Layout-preserving reshape (H mult. of 8, P mult. of 128) + sublane reduce (XLU);
    # no indicator matmul, no jnp.tile.
    o_ref[...] = jnp.sum(s.reshape(block_nc, H, P) * ryt[None, :, :], axis=1)


def _pick_block_nc(nc, max_block=MAX_BLOCK_NC):
    """Largest divisor of nc that is <= max_block (keeps per-step VMEM bounded)."""
    for b in range(min(nc, max_block), 0, -1):
        if nc % b == 0:
            return b
    return nc


def _pallas_warp(x_rows, params):
    """x_rows: (N*C*H, W) bf16; params: f32[4] in SMEM.  Returns (N*C, H*W) f32."""
    nch, w = x_rows.shape
    nc = nch // H
    block_nc = _pick_block_nc(nc)
    return pl.pallas_call(
        _warp_kernel,
        out_shape=jax.ShapeDtypeStruct((nc, P), jnp.float32),
        grid=(nc // block_nc,),
        in_specs=[
            pl.BlockSpec(memory_space=pltpu.MemorySpace.SMEM),       # params, whole array
            pl.BlockSpec((block_nc * H, w), lambda b: (b, 0)),       # block of image rows
        ],
        out_specs=pl.BlockSpec((block_nc, P), lambda b: (b, 0)),     # lane-dense output
        compiler_params=pltpu.CompilerParams(
            dimension_semantics=("parallel",),   # N*C blocks split across TCs on v7x
        ),
    )(params, x_rows)


def _sample_params(key, p_crop=0.8, p_rot=0.5, padding=5, max_deg=10.0):
    """On-device replacement for random.random()/torchvision param sampling.

    Returns f32[4] = [cos(theta), sin(theta), off_y, off_x]; fully traceable (no host sync).
    """
    k1, k2, k3, k4, k5 = jax.random.split(key, 5)
    apply_crop = jax.random.uniform(k1) < p_crop
    apply_rot = jax.random.uniform(k2) < p_rot
    off_y = jnp.where(
        apply_crop, jax.random.randint(k3, (), 0, 2 * padding + 1) - padding, 0
    ).astype(jnp.float32)
    off_x = jnp.where(
        apply_crop, jax.random.randint(k4, (), 0, 2 * padding + 1) - padding, 0
    ).astype(jnp.float32)
    theta = jnp.where(
        apply_rot, jax.random.uniform(k5, (), minval=-max_deg, maxval=max_deg), 0.0
    ) * (math.pi / 180.0)
    return jnp.stack([jnp.cos(theta), jnp.sin(theta), off_y, off_x])


@jax.jit
def post_tensor_transform(x, key):
    """x: (N, C, 32, 32) float32 NCHW.  Returns transformed (N, C, 32, 32)."""
    n, c, h, w = x.shape
    assert (h, w) == (H, W)
    # TODO(synk): Python-level random.random() gating has no in-kernel equivalent; it is
    # resolved on-device via jax.random and folded into the 4 SMEM scalars below.
    params = _sample_params(key)
    x_rows = x.astype(jnp.bfloat16).reshape(n * c * H, W)   # bf16 feed to the MXU
    out = _pallas_warp(x_rows, params)
    return out.reshape(n, c, H, W).astype(x.dtype)


def _reference(x, params):
    """Pure-JAX reference of the same transform (pad+crop integer translation, then
    bilinear rotation, both zero-padded), with the same bf16 quantization of image
    values and column weights as the kernel."""
    cos_t = float(params[0])
    sin_t = float(params[1])
    off_y = int(round(float(params[2])))
    off_x = int(round(float(params[3])))

    n, c, h, w = x.shape
    cy = (h - 1) / 2.0
    cx = (w - 1) / 2.0
    ii, jj = jnp.meshgrid(
        jnp.arange(h, dtype=jnp.float32), jnp.arange(w, dtype=jnp.float32), indexing="ij"
    )
    u = cos_t * (jj - cx) + sin_t * (ii - cy) + cx
    v = -sin_t * (jj - cx) + cos_t * (ii - cy) + cy
    y0 = jnp.floor(v).astype(jnp.int32)
    x0 = jnp.floor(u).astype(jnp.int32)
    wy = v - y0
    wx = u - x0

    q = lambda a: a.astype(jnp.bfloat16).astype(jnp.float32)

    ay0 = jnp.where((y0 >= 0) & (y0 <= h - 1), 1.0 - wy, 0.0)
    ay1 = jnp.where((y0 + 1 >= 0) & (y0 + 1 <= h - 1), wy, 0.0)
    ax0 = q(jnp.where((x0 >= 0) & (x0 <= w - 1), 1.0 - wx, 0.0))
    ax1 = q(jnp.where((x0 + 1 >= 0) & (x0 + 1 <= w - 1), wx, 0.0))

    def sample(img):
        imgq = q(img)

        def fetch(yc, xc):
            yo = yc + off_y
            xo = xc + off_x
            valid = (yo >= 0) & (yo < h) & (xo >= 0) & (xo < w)
            vals = imgq[jnp.clip(yo, 0, h - 1), jnp.clip(xo, 0, w - 1)]
            return jnp.where(valid, vals, 0.0)

        return (ay0 * (ax0 * fetch(y0, x0) + ax1 * fetch(y0, x0 + 1))
                + ay1 * (ax0 * fetch(y0 + 1, x0) + ax1 * fetch(y0 + 1, x0 + 1)))

    return jax.vmap(jax.vmap(sample))(x.astype(jnp.float32))


if __name__ == "__main__":
    key = jax.random.PRNGKey(0)
    kx, kt = jax.random.split(key)
    x = jax.random.normal(kx, (2, 4, H, W), dtype=jnp.float32)

    out = jax.block_until_ready(post_tensor_transform(x, kt))

    # Correctness check against a pure-JAX reference (test-only host fetch of the params).
    params_np = np.asarray(_sample_params(kt))
    ref = jax.block_until_ready(_reference(x, params_np))
    np.testing.assert_allclose(np.asarray(out), np.asarray(ref), atol=2e-4, rtol=2e-4)

    assert out.shape == x.shape and out.dtype == jnp.float32
    print("KERNEL_OK")
</pallas_src>

<mosaic_0001>
module attributes {stable_mosaic.version = 11 : i64} {
  func.func @_warp_kernel(%arg0: i32, %arg1: memref<4xf32, #tpu.memory_space<smem>>, %arg2: memref<256x32xbf16, #tpu.memory_space<vmem>>, %arg3: memref<8x1024xf32, #tpu.memory_space<vmem>>) attributes {dimension_semantics = [#tpu.dimension_semantics<parallel>], iteration_bounds = array<i64: 1>, scalar_prefetch = 0 : i64, scratch_operands = 0 : i64, tpu.core_type = #tpu.core_type<tc>, window_params = [{transform_indices = @transform_0, window_bounds = array<i64: 4>}, {transform_indices = @transform_1, window_bounds = array<i64: 256, 32>}, {transform_indices = @transform_2, window_bounds = array<i64: 8, 1024>}]} {
    %c0 = arith.constant 0 : index
    %0 = memref.load %arg1[%c0] : memref<4xf32, #tpu.memory_space<smem>>
    %c1 = arith.constant 1 : index
    %1 = memref.load %arg1[%c1] : memref<4xf32, #tpu.memory_space<smem>>
    %c2 = arith.constant 2 : index
    %2 = memref.load %arg1[%c2] : memref<4xf32, #tpu.memory_space<smem>>
    %c3 = arith.constant 3 : index
    %3 = memref.load %arg1[%c3] : memref<4xf32, #tpu.memory_space<smem>>
    %4 = tpu.iota {dimensions = array<i32: 1>} : vector<1x1024xi32>
    %c5_i32 = arith.constant 5 : i32
    %5 = vector.broadcast %c5_i32 : i32 to vector<1x1024xi32>
    %6 = arith.shrsi %4, %5 : vector<1x1024xi32>
    %7 = arith.sitofp %6 : vector<1x1024xi32> to vector<1x1024xf32>
    %c31_i32 = arith.constant 31 : i32
    %8 = vector.broadcast %c31_i32 : i32 to vector<1x1024xi32>
    %9 = arith.andi %4, %8 : vector<1x1024xi32>
    %10 = arith.sitofp %9 : vector<1x1024xi32> to vector<1x1024xf32>
    %cst = arith.constant 1.550000e+01 : f32
    %11 = vector.broadcast %cst : f32 to vector<1x1024xf32>
    %12 = arith.subf %10, %11 : vector<1x1024xf32>
    %13 = vector.broadcast %0 : f32 to vector<1x1024xf32>
    %14 = arith.mulf %13, %12 : vector<1x1024xf32>
    %cst_0 = arith.constant 1.550000e+01 : f32
    %15 = vector.broadcast %cst_0 : f32 to vector<1x1024xf32>
    %16 = arith.subf %7, %15 : vector<1x1024xf32>
    %17 = vector.broadcast %1 : f32 to vector<1x1024xf32>
    %18 = arith.mulf %17, %16 : vector<1x1024xf32>
    %19 = arith.addf %14, %18 : vector<1x1024xf32>
    %cst_1 = arith.constant 1.550000e+01 : f32
    %20 = vector.broadcast %cst_1 : f32 to vector<1x1024xf32>
    %21 = arith.addf %19, %20 : vector<1x1024xf32>
    %cst_2 = arith.constant 0.000000e+00 : f32
    %22 = arith.subf %cst_2, %1 : f32
    %cst_3 = arith.constant 1.550000e+01 : f32
    %23 = vector.broadcast %cst_3 : f32 to vector<1x1024xf32>
    %24 = arith.subf %10, %23 : vector<1x1024xf32>
    %25 = vector.broadcast %22 : f32 to vector<1x1024xf32>
    %26 = arith.mulf %25, %24 : vector<1x1024xf32>
    %cst_4 = arith.constant 1.550000e+01 : f32
    %27 = vector.broadcast %cst_4 : f32 to vector<1x1024xf32>
    %28 = arith.subf %7, %27 : vector<1x1024xf32>
    %29 = vector.broadcast %0 : f32 to vector<1x1024xf32>
    %30 = arith.mulf %29, %28 : vector<1x1024xf32>
    %31 = arith.addf %26, %30 : vector<1x1024xf32>
    %cst_5 = arith.constant 1.550000e+01 : f32
    %32 = vector.broadcast %cst_5 : f32 to vector<1x1024xf32>
    %33 = arith.addf %31, %32 : vector<1x1024xf32>
    %34 = math.floor %33 : vector<1x1024xf32>
    %35 = math.floor %21 : vector<1x1024xf32>
    %36 = arith.subf %33, %34 : vector<1x1024xf32>
    %37 = arith.subf %21, %35 : vector<1x1024xf32>
    %cst_6 = arith.constant 0.000000e+00 : f32
    %38 = vector.broadcast %cst_6 : f32 to vector<1x1024xf32>
    %39 = arith.cmpf oge, %34, %38 : vector<1x1024xf32>
    %cst_7 = arith.constant 3.100000e+01 : f32
    %40 = vector.broadcast %cst_7 : f32 to vector<1x1024xf32>
    %41 = arith.cmpf ole, %34, %40 : vector<1x1024xf32>
    %42 = arith.andi %39, %41 : vector<1x1024xi1>
    %cst_8 = arith.constant 1.000000e+00 : f32
    %43 = vector.broadcast %cst_8 : f32 to vector<1x1024xf32>
    %44 = arith.subf %43, %36 : vector<1x1024xf32>
    %cst_9 = arith.constant 0.000000e+00 : f32
    %45 = vector.broadcast %cst_9 : f32 to vector<1x1024xf32>
    %46 = arith.select %42, %44, %45 : vector<1x1024xi1>, vector<1x1024xf32>
    %cst_10 = arith.constant 1.000000e+00 : f32
    %47 = vector.broadcast %cst_10 : f32 to vector<1x1024xf32>
    %48 = arith.addf %34, %47 : vector<1x1024xf32>
    %cst_11 = arith.constant 0.000000e+00 : f32
    %49 = vector.broadcast %cst_11 : f32 to vector<1x1024xf32>
    %50 = arith.cmpf oge, %48, %49 : vector<1x1024xf32>
    %cst_12 = arith.constant 1.000000e+00 : f32
    %51 = vector.broadcast %cst_12 : f32 to vector<1x1024xf32>
    %52 = arith.addf %34, %51 : vector<1x1024xf32>
    %cst_13 = arith.constant 3.100000e+01 : f32
    %53 = vector.broadcast %cst_13 : f32 to vector<1x1024xf32>
    %54 = arith.cmpf ole, %52, %53 : vector<1x1024xf32>
    %55 = arith.andi %50, %54 : vector<1x1024xi1>
    %cst_14 = arith.constant 0.000000e+00 : f32
    %56 = vector.broadcast %cst_14 : f32 to vector<1x1024xf32>
    %57 = arith.select %55, %36, %56 : vector<1x1024xi1>, vector<1x1024xf32>
    %cst_15 = arith.constant 0.000000e+00 : f32
    %58 = vector.broadcast %cst_15 : f32 to vector<1x1024xf32>
    %59 = arith.cmpf oge, %35, %58 : vector<1x1024xf32>
    %cst_16 = arith.constant 3.100000e+01 : f32
    %60 = vector.broadcast %cst_16 : f32 to vector<1x1024xf32>
    %61 = arith.cmpf ole, %35, %60 : vector<1x1024xf32>
    %62 = arith.andi %59, %61 : vector<1x1024xi1>
    %cst_17 = arith.constant 1.000000e+00 : f32
    %63 = vector.broadcast %cst_17 : f32 to vector<1x1024xf32>
    %64 = arith.subf %63, %37 : vector<1x1024xf32>
    %cst_18 = arith.constant 0.000000e+00 : f32
    %65 = vector.broadcast %cst_18 : f32 to vector<1x1024xf32>
    %66 = arith.select %62, %64, %65 : vector<1x1024xi1>, vector<1x1024xf32>
    %cst_19 = arith.constant 1.000000e+00 : f32
    %67 = vector.broadcast %cst_19 : f32 to vector<1x1024xf32>
    %68 = arith.addf %35, %67 : vector<1x1024xf32>
    %cst_20 = arith.constant 0.000000e+00 : f32
    %69 = vector.broadcast %cst_20 : f32 to vector<1x1024xf32>
    %70 = arith.cmpf oge, %68, %69 : vector<1x1024xf32>
    %cst_21 = arith.constant 1.000000e+00 : f32
    %71 = vector.broadcast %cst_21 : f32 to vector<1x1024xf32>
    %72 = arith.addf %35, %71 : vector<1x1024xf32>
    %cst_22 = arith.constant 3.100000e+01 : f32
    %73 = vector.broadcast %cst_22 : f32 to vector<1x1024xf32>
    %74 = arith.cmpf ole, %72, %73 : vector<1x1024xf32>
    %75 = arith.andi %70, %74 : vector<1x1024xi1>
    %cst_23 = arith.constant 0.000000e+00 : f32
    %76 = vector.broadcast %cst_23 : f32 to vector<1x1024xf32>
    %77 = arith.select %75, %37, %76 : vector<1x1024xi1>, vector<1x1024xf32>
    %78 = vector.broadcast %2 : f32 to vector<1x1024xf32>
    %79 = arith.addf %34, %78 : vector<1x1024xf32>
    %80 = vector.broadcast %3 : f32 to vector<1x1024xf32>
    %81 = arith.addf %35, %80 : vector<1x1024xf32>
    %82 = tpu.iota {dimensions = array<i32: 0>} : vector<32x1xi32>
    %83 = arith.sitofp %82 : vector<32x1xi32> to vector<32x1xf32>
    %84 = tpu.iota {dimensions = array<i32: 0>} : vector<32x1xi32>
    %85 = arith.sitofp %84 : vector<32x1xi32> to vector<32x1xf32>
    %86 = vector.broadcast %83 : vector<32x1xf32> to vector<32x1024xf32>
    %87 = vector.broadcast %79 : vector<1x1024xf32> to vector<32x1024xf32>
    %88 = arith.cmpf oeq, %86, %87 : vector<32x1024xf32>
    %cst_24 = arith.constant 0.000000e+00 : f32
    %89 = vector.shape_cast %46 : vector<1x1024xf32> to vector<1x1024xf32>
    %90 = vector.broadcast %89 : vector<1x1024xf32> to vector<32x1024xf32>
    %91 = vector.broadcast %cst_24 : f32 to vector<32x1024xf32>
    %92 = arith.select %88, %90, %91 : vector<32x1024xi1>, vector<32x1024xf32>
    %cst_25 = arith.constant 1.000000e+00 : f32
    %93 = vector.broadcast %cst_25 : f32 to vector<1x1024xf32>
    %94 = arith.addf %79, %93 : vector<1x1024xf32>
    %95 = vector.broadcast %83 : vector<32x1xf32> to vector<32x1024xf32>
    %96 = vector.broadcast %94 : vector<1x1024xf32> to vector<32x1024xf32>
    %97 = arith.cmpf oeq, %95, %96 : vector<32x1024xf32>
    %cst_26 = arith.constant 0.000000e+00 : f32
    %98 = vector.shape_cast %57 : vector<1x1024xf32> to vector<1x1024xf32>
    %99 = vector.broadcast %98 : vector<1x1024xf32> to vector<32x1024xf32>
    %100 = vector.broadcast %cst_26 : f32 to vector<32x1024xf32>
    %101 = arith.select %97, %99, %100 : vector<32x1024xi1>, vector<32x1024xf32>
    %102 = arith.addf %92, %101 : vector<32x1024xf32>
    %103 = vector.broadcast %85 : vector<32x1xf32> to vector<32x1024xf32>
    %104 = vector.broadcast %81 : vector<1x1024xf32> to vector<32x1024xf32>
    %105 = arith.cmpf oeq, %103, %104 : vector<32x1024xf32>
    %cst_27 = arith.constant 0.000000e+00 : f32
    %106 = vector.shape_cast %66 : vector<1x1024xf32> to vector<1x1024xf32>
    %107 = vector.broadcast %106 : vector<1x1024xf32> to vector<32x1024xf32>
    %108 = vector.broadcast %cst_27 : f32 to vector<32x1024xf32>
    %109 = arith.select %105, %107, %108 : vector<32x1024xi1>, vector<32x1024xf32>
    %cst_28 = arith.constant 1.000000e+00 : f32
    %110 = vector.broadcast %cst_28 : f32 to vector<1x1024xf32>
    %111 = arith.addf %81, %110 : vector<1x1024xf32>
    %112 = vector.broadcast %85 : vector<32x1xf32> to vector<32x1024xf32>
    %113 = vector.broadcast %111 : vector<1x1024xf32> to vector<32x1024xf32>
    %114 = arith.cmpf oeq, %112, %113 : vector<32x1024xf32>
    %cst_29 = arith.constant 0.000000e+00 : f32
    %115 = vector.shape_cast %77 : vector<1x1024xf32> to vector<1x1024xf32>
    %116 = vector.broadcast %115 : vector<1x1024xf32> to vector<32x1024xf32>
    %117 = vector.broadcast %cst_29 : f32 to vector<32x1024xf32>
    %118 = arith.select %114, %116, %117 : vector<32x1024xi1>, vector<32x1024xf32>
    %119 = arith.addf %109, %118 : vector<32x1024xf32>
    %120 = arith.truncf %119 : vector<32x1024xf32> to vector<32x1024xbf16>
    %c0_30 = arith.constant 0 : index
    %c0_31 = arith.constant 0 : index
    %121 = vector.load %arg2[%c0_30, %c0_31] : memref<256x32xbf16, #tpu.memory_space<vmem>>, vector<256x32xbf16>
    %cst_32 = arith.constant dense<0.000000e+00> : vector<256x1024xf32>
    %122 = tpu.matmul %121, %120, %cst_32 {dimension_numbers = #tpu.dot_dimension_numbers<[1], [0], [0], [1], [0, 0, 1, 1], [], []>} : vector<256x32xbf16>, vector<32x1024xbf16>, vector<256x1024xf32> -> vector<256x1024xf32>
    %123 = vector.shape_cast %122 : vector<256x1024xf32> to vector<8x32x1024xf32>
    %124 = vector.shape_cast %102 : vector<32x1024xf32> to vector<1x32x1024xf32>
    %125 = vector.broadcast %124 : vector<1x32x1024xf32> to vector<8x32x1024xf32>
    %126 = arith.mulf %123, %125 : vector<8x32x1024xf32>
    %cst_33 = arith.constant dense<0.000000e+00> : vector<8x1024xf32>
    %127 = vector.multi_reduction <add>, %126, %cst_33 [1] : vector<8x32x1024xf32> to vector<8x1024xf32>
    %c0_34 = arith.constant 0 : index
    %c0_35 = arith.constant 0 : index
    %128 = vector.load %arg3[%c0_34, %c0_35] : memref<8x1024xf32, #tpu.memory_space<vmem>>, vector<8x1024xf32>
    tpu.vector_store %arg3[%c0_34, %c0_35], %127 {strides = array<i32>} : memref<8x1024xf32, #tpu.memory_space<vmem>>, vector<8x1024xf32>,
    return
  }
  func.func @transform_0(%arg0: i32) -> i32 {
    %c0_i32 = arith.constant 0 : i32
    %c0_i32_0 = arith.constant 0 : i32
    return %c0_i32 : i32
  }
  func.func @transform_1(%arg0: i32) -> (i32, i32) {
    %c0_i32 = arith.constant 0 : i32
    %c0_i32_0 = arith.constant 0 : i32
    return %arg0, %c0_i32 : i32, i32
  }
  func.func @transform_2(%arg0: i32) -> (i32, i32) {
    %c0_i32 = arith.constant 0 : i32
    %c0_i32_0 = arith.constant 0 : i32
    return %arg0, %c0_i32 : i32, i32
  }
}

</mosaic_0001>

<bundles_post_ra>
// kernel: post_tensor_transform.1
= control target key start
LH: loop header
LB: loop body
LE: loop exit
PB: predicated region body
PF: predicated region fallthrough
CT: control target
= control target key end

     0   :  { %7 = vsyncpa [#allocation3], 0  ;;  %s4485_s0 = inlined_call_operand.vmem [shape: f32[4], index: 0, kind: input, shape index: {}]   ;;  %s4486_s1 = inlined_call_operand.vmem [shape: bf16[256,32], index: 1, kind: input, shape index: {}]   ;;  %s4487_s2 = inlined_call_operand.vmem [shape: f32[8,1024], index: 2, kind: output, shape index: {}]  }
   0x1   :  { %s14_s11 = sshll.u32 %s4485_s0, 4  ;;  %s15_s11 = int_to_ptr.vmem [resolvable:$true] %s14_s11 }
   0x2   :  { %s2756_s12 = scalar_lea.vmem %s15_s11, 16  ;;  %p2761_p1 = scmp.lt.s32.totalorder %s15_s11, %s15_s11 }
   0x3   :  { %p2757_p0 = scmp.ne.s32.totalorder %s15_s11, %s2756_s12  ;;  %p2762_p2 = scmp.lt.s32.totalorder %s2756_s12, %s2756_s12 }
   0x5   :  { %p2763_p3 = por %p2762_p2, %p2761_p1 }
   0x7   :  { %p2764_p4 = pnand %p2763_p3, %p2757_p0 }
   0x9   :  { %2767 = shalt.err (!%p2764_p4)
}
   0xa   :  { %s2770_s13 = smov [#allocation2]  }
   0xb   :  { %17 = dma.vmem_to_smem %s15_s11, 16, %s2770_s13, [#allocation3]  }
   0xc   :  { %2768 = dma.done.wait [#allocation3], 16  }
   0xd   :  { %2769 = vsyncadd [#allocation3], 4294967280 }
   0xe   :  { %23 = sfence }
   0xf   :  { %s25_s14 = sld [smem:[#allocation2]]  ;;  %v29_v0 = vlaneseq  ;;  %v4488_v1 = vmov 0  }
  0x10   :  { %s2638_s15 = sld [smem:[#allocation2 + $0x1]]  ;;  %918 = vmatprep.mubr.bf16.mxu0 %v4488_v1  ;;  %1111 = vmatprep.mubr.bf16.mxu1 %v4488_v1 }
  0x11   :  { %v2792_v2 = vand.u32 127, %v29_v0  ;;  %v2794_v3 = vshrl.u32 %v29_v0, 7  ;;  %s2806_s16 = sld [smem:[#allocation2 + $0x3]] }
  0x12   :  { %s2639_s20 = sld [smem:[#allocation2 + $0x2]] }
  0x13   :  { %v31_v4 = vadd.s32 128, %v2792_v2  ;;  %v367_v5 = vadd.s32 16, %v2794_v3  ;;  %v368_v6 = vadd.s32 24, %v2794_v3  ;;  %v33_v7 = vadd.s32 384, %v2792_v2 }
  0x14   :  { %v38_v8 = vshra.s32 %v2792_v2, 5  ;;  %v54_v9 = vand.u32 31, %v2792_v2  ;;  %v32_v28 = vadd.s32 256, %v2792_v2  ;;  %v366_v46 = vadd.s32 8, %v2794_v3 }
  0x15   :  { %v39_v10 = vshra.s32 %v31_v4, 5  ;;  %v55_v11 = vand.u32 31, %v31_v4  ;;  %v41_v12 = vshra.s32 %v33_v7, 5  ;;  %v2802_v15 = vstv %s25_s14 }
  0x16   :  { %s120_s0 = ssub.f32 0.0, %s2638_s15  ;;  %v57_v16 = vand.u32 31, %v33_v7  ;;  %v2804_v17 = vstv %s2638_s15  ;;  %v46_v19 = vcvt.s32.f32 %v38_v8  ;;  %v62_v20 = vcvt.s32.f32 %v54_v9 }
  0x17   :  { %v47_v13 = vcvt.s32.f32 %v39_v10  ;;  %v63_v14 = vcvt.s32.f32 %v55_v11  ;;  %v49_v18 = vcvt.s32.f32 %v41_v12  ;;  %v40_v44 = vshra.s32 %v32_v28, 5 }
  0x18   :  { %v2808_v23 = vstv %s120_s0  ;;  %v65_v24 = vcvt.s32.f32 %v57_v16  ;;  %v2641_v26 = vadd.f32 -15.5, %v62_v20  ;;  %v2649_v27 = vadd.f32 -15.5, %v46_v19 }
  0x19   :  { %v2642_v21 = vadd.f32 -15.5, %v63_v14  ;;  %v2650_v22 = vadd.f32 -15.5, %v47_v13  ;;  %v2652_v25 = vadd.f32 -15.5, %v49_v18  ;;  %v2831_v52 = vstv %s2806_s16 }
  0x1a   :  { %v2644_v33 = vadd.f32 -15.5, %v65_v24  ;;  %v79_v36 = vmul.f32 %v2641_v26, %v2802_v15  ;;  %v96_v39 = vmul.f32 %v2649_v27, %v2804_v17  ;;  %v122_v40 = vmul.f32 %v2641_v26, %v2808_v23 }
  0x1b   :  { %v80_v29 = vmul.f32 %v2642_v21, %v2802_v15  ;;  %v97_v30 = vmul.f32 %v2650_v22, %v2804_v17  ;;  %v123_v31 = vmul.f32 %v2642_v21, %v2808_v23  ;;  %v131_v32 = vmul.f32 %v2650_v22, %v2802_v15 }
  0x1c   :  { %v99_v34 = vmul.f32 %v2652_v25, %v2804_v17  ;;  %v133_v35 = vmul.f32 %v2652_v25, %v2802_v15  ;;  %v82_v41 = vmul.f32 %v2644_v33, %v2802_v15  ;;  %v125_v42 = vmul.f32 %v2644_v33, %v2808_v23 }
  0x1d   :  { %v105_v37 = vadd.f32 %v97_v30, %v80_v29  ;;  %v2818_v38 = vadd.f32 %v131_v32, %v123_v31  ;;  %v130_v43 = vmul.f32 %v2649_v27, %v2802_v15  ;;  %v104_v47 = vadd.f32 %v96_v39, %v79_v36 }
  0x1e   :  { %v107_v48 = vadd.f32 %v99_v34, %v82_v41  ;;  %v2826_v49 = vadd.f32 %v133_v35, %v125_v42  ;;  %v48_v53 = vcvt.s32.f32 %v40_v44  ;;  %v56_v54 = vand.u32 31, %v32_v28 }
  0x1f   :  { %v113_v45 = vadd.f32 15.5, %v105_v37  ;;  %v2828_v50 = vadd.f32 %v130_v43, %v122_v40  ;;  %v2833_v55 = vcvt.s32.f32 %v367_v5  ;;  %v2835_v56 = vcvt.s32.f32 %v368_v6 }
  0x20   :  { %v115_v57 = vadd.f32 15.5, %v107_v48  ;;  %v112_v59 = vadd.f32 15.5, %v104_v47  ;;  %v2841_v62 = vcvt.s32.f32 %v2794_v3  ;;  %v2843_v4 = vcvt.s32.f32 %v366_v46 }
  0x21   :  { %v163_v51 = vfloor.f32 %v113_v45  ;;  %4523 = vst [vmem:[#allocation5_spill] sm:$0xff] %v2833_v55  ;;  %4524 = vst [vmem:[#allocation6_spill] sm:$0xff] %v2835_v56  ;;  %v64_v5 = vcvt.s32.f32 %v56_v54  ;;  %v2845_v6 = vadd.f32 -15.5, %v48_v53 }
  0x22   :  { %v165_v63 = vfloor.f32 %v115_v57  ;;  %v162_v9 = vfloor.f32 %v112_v59 }
  0x23   :  { %v179_v58 = vsub.f32 %v113_v45, %v163_v51  ;;  %vm267_vm0 = vcmp.ge.f32.partialorder %v163_v51, 0.0  ;;  %vm275_vm1 = vcmp.le.f32.partialorder %v163_v51, 31.0  ;;  %v307_v60 = vadd.f32 1.0, %v163_v51 }
  0x24   :  { %vm283_vm2 = vmand %vm267_vm0, %vm275_vm1  ;;  %v2838_v61 = vadd.f32 %v2831_v52, %v163_v51  ;;  %v181_v8 = vsub.f32 %v115_v57, %v165_v63  ;;  %vm269_vm8 = vcmp.ge.f32.partialorder %v165_v63, 0.0  ;;  %vm277_vm11 = vcmp.le.f32.partialorder %v165_v63, 31.0 }
  0x25   :  { %v291_v0 = vsub.f32 1.0, %v179_v58  ;;  %vm315_vm3 = vcmp.ge.f32.partialorder %v307_v60, 0.0  ;;  %vm323_vm4 = vcmp.le.f32.partialorder %v307_v60, 31.0  ;;  %vm285_vm12 = vmand %vm269_vm8, %vm277_vm11  ;;  %v309_v18 = vadd.f32 1.0, %v165_v63 }
  0x26   :  { %vm558_vm5 = vcmp.eq.f32.partialorder %v2833_v55, %v2838_v61  ;;  %vm566_vm6 = vcmp.eq.f32.partialorder %v2835_v56, %v2838_v61  ;;  %vm331_vm7 = vmand %vm315_vm3, %vm323_vm4  ;;  %v2854_v3 = vadd.f32 1.0, %v2838_v61  ;;  %v293_v13 = vsub.f32 1.0, %v181_v8 }
  0x27   :  { %v2851_v7 = vsel %vm283_vm2, %v291_v0, 0.0  ;;  %v2856_v10 = vsel %vm331_vm7, %v179_v58, 0.0  ;;  %v2867_v19 = vadd.f32 %v2831_v52, %v165_v63  ;;  %v2643_v24 = vadd.f32 -15.5, %v64_v5 }
  0x28   :  { %v590_v11 = vsel %vm558_vm5, %v2851_v7, 0.0  ;;  %v598_v12 = vsel %vm566_vm6, %v2851_v7, 0.0  ;;  %vm630_vm9 = vcmp.eq.f32.partialorder %v2833_v55, %v2854_v3  ;;  %vm638_vm10 = vcmp.eq.f32.partialorder %v2835_v56, %v2854_v3 }
  0x29   :  { %v662_v14 = vsel %vm630_vm9, %v2856_v10, 0.0  ;;  %v670_v16 = vsel %vm638_vm10, %v2856_v10, 0.0  ;;  %v2869_v22 = vsel %vm285_vm12, %v293_v13, 0.0  ;;  %vm317_vm13 = vcmp.ge.f32.partialorder %v309_v18, 0.0 }
  0x2a   :  { %v694_v20 = vadd.f32 %v662_v14, %v590_v11  ;;  %v702_v21 = vadd.f32 %v670_v16, %v598_v12  ;;  %vm325_vm14 = vcmp.le.f32.partialorder %v309_v18, 31.0  ;;  %vm560_vm15 = vcmp.eq.f32.partialorder %v2833_v55, %v2867_v19 }
  0x2b   :  { %vm568_vm0 = vcmp.eq.f32.partialorder %v2835_v56, %v2867_v19  ;;  %vm333_vm1 = vmand %vm317_vm13, %vm325_vm14  ;;  %v592_v26 = vsel %vm560_vm15, %v2869_v22, 0.0  ;;  %v2878_v28 = vadd.f32 1.0, %v2867_v19  ;;  %v178_v30 = vsub.f32 %v112_v59, %v162_v9 }
  0x2c   :  { %v718_v25 = vpack.c.bf16 %v702_v21, %v694_v20  ;;  %v600_v27 = vsel %vm568_vm0, %v2869_v22, 0.0  ;;  %v2880_v29 = vsel %vm333_vm1, %v181_v8, 0.0  ;;  %vm266_vm2 = vcmp.ge.f32.partialorder %v162_v9, 0.0 }
  0x2d   :  { %vm274_vm3 = vcmp.le.f32.partialorder %v162_v9, 31.0  ;;  %vm632_vm4 = vcmp.eq.f32.partialorder %v2833_v55, %v2878_v28  ;;  %vm640_vm5 = vcmp.eq.f32.partialorder %v2835_v56, %v2878_v28  ;;  %v306_v31 = vadd.f32 1.0, %v162_v9 }
  0x2e   :  { %898 = vmatprep.subr.bf16.mxu0 %v718_v25  ;;  %vm282_vm6 = vmand %vm266_vm2, %vm274_vm3  ;;  %v2887_v32 = vadd.f32 %v2831_v52, %v162_v9  ;;  %v664_v33 = vsel %vm632_vm4, %v2880_v29, 0.0  ;;  %v672_v34 = vsel %vm640_vm5, %v2880_v29, 0.0  ;;  %v290_v35 = vsub.f32 1.0, %v178_v30 }
  0x2f   :  { %v81_v36 = vmul.f32 %v2643_v24, %v2802_v15  ;;  %v696_v37 = vadd.f32 %v664_v33, %v592_v26  ;;  %v704_v39 = vadd.f32 %v672_v34, %v600_v27  ;;  %vm314_vm7 = vcmp.ge.f32.partialorder %v306_v31, 0.0 }
  0x30   :  { %vm322_vm8 = vcmp.le.f32.partialorder %v306_v31, 31.0  ;;  %v2892_v40 = vsel %vm282_vm6, %v290_v35, 0.0  ;;  %vm557_vm10 = vcmp.eq.f32.partialorder %v2833_v55, %v2887_v32  ;;  %vm565_vm11 = vcmp.eq.f32.partialorder %v2835_v56, %v2887_v32 }
  0x31   :  { %vm330_vm9 = vmand %vm314_vm7, %vm322_vm8  ;;  %v2899_v41 = vadd.f32 1.0, %v2887_v32  ;;  %v720_v42 = vpack.c.bf16 %v704_v39, %v696_v37  ;;  %v589_v44 = vsel %vm557_vm10, %v2892_v40, 0.0  ;;  %v597_v45 = vsel %vm565_vm11, %v2892_v40, 0.0 }
  0x32   :  { %v2901_v43 = vsel %vm330_vm9, %v178_v30, 0.0  ;;  %v98_v46 = vmul.f32 %v2845_v6, %v2804_v17  ;;  %v124_v47 = vmul.f32 %v2643_v24, %v2808_v23  ;;  %v132_v53 = vmul.f32 %v2845_v6, %v2802_v15 }
  0x33   :  { %vm629_vm12 = vcmp.eq.f32.partialorder %v2833_v55, %v2899_v41  ;;  %vm637_vm13 = vcmp.eq.f32.partialorder %v2835_v56, %v2899_v41  ;;  %1091 = vmatprep.subr.bf16.mxu1 %v720_v42  ;;  %vm542_vm14 = vcmp.eq.f32.partialorder %v2841_v62, %v2838_v61  ;;  %vm550_vm15 = vcmp.eq.f32.partialorder %v2843_v4, %v2838_v61 }
  0x34   :  { %v661_v48 = vsel %vm629_vm12, %v2901_v43, 0.0  ;;  %v669_v51 = vsel %vm637_vm13, %v2901_v43, 0.0  ;;  %v106_v58 = vadd.f32 %v98_v46, %v81_v36  ;;  %v2920_v59 = vadd.f32 %v132_v53, %v124_v47 }
  0x35   :  { %v693_v54 = vadd.f32 %v661_v48, %v589_v44  ;;  %v701_v57 = vadd.f32 %v669_v51, %v597_v45  ;;  %v574_v60 = vsel %vm542_vm14, %v2851_v7, 0.0  ;;  %v582_v63 = vsel %vm550_vm15, %v2851_v7, 0.0 }
  0x36   :  { %vm614_vm0 = vcmp.eq.f32.partialorder %v2841_v62, %v2854_v3  ;;  %v114_v5 = vadd.f32 15.5, %v106_v58  ;;  %vm622_vm1 = vcmp.eq.f32.partialorder %v2843_v4, %v2854_v3  ;;  %vm544_vm2 = vcmp.eq.f32.partialorder %v2841_v62, %v2867_v19 }
  0x37   :  { %v717_v0 = vpack.c.bf16 %v701_v57, %v693_v54  ;;  %v646_v6 = vsel %vm614_vm0, %v2856_v10, 0.0  ;;  %v654_v8 = vsel %vm622_vm1, %v2856_v10, 0.0  ;;  %vm552_vm3 = vcmp.eq.f32.partialorder %v2843_v4, %v2867_v19 }
  0x38   :  { %v678_v9 = vadd.f32 %v646_v6, %v574_v60  ;;  %v164_v61 = vfloor.f32 %v114_v5  ;;  %v686_v11 = vadd.f32 %v654_v8, %v582_v63  ;;  %v576_v7 = vsel %vm544_vm2, %v2869_v22, 0.0 }
  0x39   :  { %899 = vmatpush1.bf16.msra.mxu0 %v717_v0  ;;  %vm616_vm4 = vcmp.eq.f32.partialorder %v2841_v62, %v2878_v28  ;;  %vm624_vm5 = vcmp.eq.f32.partialorder %v2843_v4, %v2878_v28  ;;  %v35_v3 = vadd.s32 640, %v2792_v2  ;;  %v584_v16 = vsel %vm552_vm3, %v2869_v22, 0.0 }
  0x3a   :  { %v180_v10 = vsub.f32 %v114_v5, %v164_v61  ;;  %vm268_vm6 = vcmp.ge.f32.partialorder %v164_v61, 0.0  ;;  %vm276_vm7 = vcmp.le.f32.partialorder %v164_v61, 31.0  ;;  %v308_v12 = vadd.f32 1.0, %v164_v61 }
  0x3b   :  { %vm284_vm8 = vmand %vm268_vm6, %vm276_vm7  ;;  %v358_v13 = vadd.f32 %v2831_v52, %v164_v61  ;;  %v710_v14 = vpack.c.bf16 %v686_v11, %v678_v9  ;;  %v648_v18 = vsel %vm616_vm4, %v2880_v29, 0.0  ;;  %v656_v20 = vsel %vm624_vm5, %v2880_v29, 0.0 }
  0x3c   :  { %v292_v19 = vsub.f32 1.0, %v180_v10  ;;  %vm316_vm9 = vcmp.ge.f32.partialorder %v308_v12, 0.0  ;;  %vm324_vm10 = vcmp.le.f32.partialorder %v308_v12, 31.0  ;;  %v680_v24 = vadd.f32 %v648_v18, %v576_v7 }
  0x3d   :  { %vm332_vm11 = vmand %vm316_vm9, %vm324_vm10  ;;  %vm559_vm12 = vcmp.eq.f32.partialorder %v2833_v55, %v358_v13  ;;  %vm567_vm13 = vcmp.eq.f32.partialorder %v2835_v56, %v358_v13  ;;  %v607_v21 = vadd.f32 1.0, %v358_v13  ;;  %900 = vmatprep.subr.bf16.mxu0 %v710_v14  ;;  %v688_v27 = vadd.f32 %v656_v20, %v584_v16 }
  0x3e   :  { %v300_v25 = vsel %vm284_vm8, %v292_v19, 0.0  ;;  %v340_v26 = vsel %vm332_vm11, %v180_v10, 0.0  ;;  %vm541_vm14 = vcmp.eq.f32.partialorder %v2841_v62, %v2887_v32  ;;  %vm549_vm1 = vcmp.eq.f32.partialorder %v2843_v4, %v2887_v32 }
  0x3f   :  { %v591_v22 = vsel %vm559_vm12, %v300_v25, 0.0  ;;  %v599_v28 = vsel %vm567_vm13, %v300_v25, 0.0  ;;  %vm631_vm15 = vcmp.eq.f32.partialorder %v2833_v55, %v607_v21  ;;  %vm639_vm0 = vcmp.eq.f32.partialorder %v2835_v56, %v607_v21 }
  0x40   :  { %v663_v29 = vsel %vm631_vm15, %v340_v26, 0.0  ;;  %v671_v30 = vsel %vm639_vm0, %v340_v26, 0.0  ;;  %v712_v31 = vpack.c.bf16 %v688_v27, %v680_v24  ;;  %v573_v35 = vsel %vm541_vm14, %v2892_v40, 0.0 }
  0x41   :  { %v695_v33 = vadd.f32 %v663_v29, %v591_v22  ;;  %v703_v34 = vadd.f32 %v671_v30, %v599_v28  ;;  %v581_v36 = vsel %vm549_vm1, %v2892_v40, 0.0  ;;  %vm613_vm2 = vcmp.eq.f32.partialorder %v2841_v62, %v2899_v41 }
  0x42   :  { %vm621_vm3 = vcmp.eq.f32.partialorder %v2843_v4, %v2899_v41  ;;  %vm543_vm4 = vcmp.eq.f32.partialorder %v2841_v62, %v358_v13  ;;  %vm551_vm5 = vcmp.eq.f32.partialorder %v2843_v4, %v358_v13  ;;  %v645_v39 = vsel %vm613_vm2, %v2901_v43, 0.0 }
  0x43   :  { %v719_v37 = vpack.c.bf16 %v703_v34, %v695_v33  ;;  %v653_v32 = vsel %vm621_vm3, %v2901_v43, 0.0  ;;  %v575_v42 = vsel %vm543_vm4, %v300_v25, 0.0  ;;  %v677_v44 = vadd.f32 %v645_v39, %v573_v35  ;;  %v2968_v43 = vld [vmem:[%s4486_s1] sm:$0xff]   ;;  %v2991_v33 = vld [vmem:[%s4486_s1 + $0x8] sm:$0xff]  }
  0x44   :  { %v685_v45 = vadd.f32 %v653_v32, %v581_v36  ;;  %v583_v46 = vsel %vm551_vm5, %v300_v25, 0.0  ;;  %vm615_vm6 = vcmp.eq.f32.partialorder %v2841_v62, %v607_v21  ;;  %vm623_vm7 = vcmp.eq.f32.partialorder %v2843_v4, %v607_v21 }
  0x45   :  { %1092 = vmatpush1.bf16.msra.mxu1 %v719_v37  ;;  %v647_v40 = vsel %vm615_vm6, %v340_v26, 0.0  ;;  %v43_v41 = vshra.s32 %v35_v3, 5  ;;  %v59_v47 = vand.u32 31, %v35_v3  ;;  %v655_v51 = vsel %vm623_vm7, %v340_v26, 0.0 }
  0x46   :  { %1093 = vmatprep.subr.bf16.mxu1 %v712_v31  ;;  %v709_v48 = vpack.c.bf16 %v685_v45, %v677_v44  ;;  %v679_v53 = vadd.f32 %v647_v40, %v575_v42  ;;  %v37_v54 = vadd.s32 896, %v2792_v2  ;;  %v687_v57 = vadd.f32 %v655_v51, %v583_v46 }
  0x47   :  { %v51_v58 = vcvt.s32.f32 %v43_v41  ;;  %v67_v60 = vcvt.s32.f32 %v59_v47  ;;  %v34_v63 = vadd.s32 512, %v2792_v2  ;;  %vm837_vm8 = vcmask 261120  }
  0x48   :  { %901 = vmatpush1.bf16.msra.mxu0 %v709_v48  ;;  %v45_v0 = vshra.s32 %v37_v54, 5  ;;  %v61_v5 = vand.u32 31, %v37_v54  ;;  %v36_v6 = vadd.s32 768, %v2792_v2  ;;  %v711_v8 = vpack.c.bf16 %v687_v57, %v679_v53 }
  0x49   :  { %v2646_v9 = vadd.f32 -15.5, %v67_v60  ;;  %v2654_v61 = vadd.f32 -15.5, %v51_v58  ;;  %v42_v11 = vshra.s32 %v34_v63, 5  ;;  %v58_v10 = vand.u32 31, %v34_v63 }
  0x4a   :  { %v53_v7 = vcvt.s32.f32 %v45_v0  ;;  %v69_v3 = vcvt.s32.f32 %v61_v5  ;;  %1094 = vmatpush1.bf16.msra.mxu1 %v711_v8  ;;  %v44_v25 = vshra.s32 %v36_v6, 5  ;;  %v60_v35 = vand.u32 31, %v36_v6  ;;  %v3028_v5 = vld [vmem:[%s4486_s1 + $0x10] sm:$0xff]  }
  0x4b   :  { %2673 = vmatmul.mubr.msk.bf16.vlgmr.msra.gmra.mxu0 %vm837_vm8, %v2968_v43  ;;  %v84_v12 = vmul.f32 %v2646_v9, %v2802_v15  ;;  %v101_v13 = vmul.f32 %v2654_v61, %v2804_v17  ;;  %v127_v14 = vmul.f32 %v2646_v9, %v2808_v23  ;;  %v50_v16 = vcvt.s32.f32 %v42_v11 }
  0x4c   :  { %v135_v2 = vmul.f32 %v2654_v61, %v2802_v15  ;;  %v2648_v18 = vadd.f32 -15.5, %v69_v3  ;;  %v2656_v19 = vadd.f32 -15.5, %v53_v7  ;;  %v66_v20 = vcvt.s32.f32 %v58_v10  ;;  %928 = vmatprep.mubr.bf16.mxu0 %v4488_v1 }
  0x4d   :  { %v109_v21 = vadd.f32 %v101_v13, %v84_v12  ;;  %v2653_v24 = vadd.f32 -15.5, %v50_v16  ;;  %2689 = vmatmul.mubr.msk.bf16.vlgmr.msra.gmra.mxu1 %vm837_vm8, %v2968_v43  ;;  %v52_v44 = vcvt.s32.f32 %v44_v25  ;;  %v68_v51 = vcvt.s32.f32 %v60_v35 }
  0x4e   :  { %v2981_v26 = vadd.f32 %v135_v2, %v127_v14  ;;  %v86_v27 = vmul.f32 %v2648_v18, %v2802_v15  ;;  %v103_v22 = vmul.f32 %v2656_v19, %v2804_v17  ;;  %v129_v28 = vmul.f32 %v2648_v18, %v2808_v23  ;;  %1121 = vmatprep.mubr.bf16.mxu1 %v4488_v1 }
  0x4f   :  { %v117_v29 = vadd.f32 15.5, %v109_v21  ;;  %v137_v30 = vmul.f32 %v2656_v19, %v2802_v15  ;;  %v2645_v31 = vadd.f32 -15.5, %v66_v20  ;;  %v100_v42 = vmul.f32 %v2653_v24, %v2804_v17 }
  0x50   :  { %v111_v34 = vadd.f32 %v103_v22, %v86_v27  ;;  %v134_v48 = vmul.f32 %v2653_v24, %v2802_v15  ;;  %v2647_v11 = vadd.f32 -15.5, %v68_v51  ;;  %v2655_v2 = vadd.f32 -15.5, %v52_v44 }
  0x51   :  { %v167_v36 = vfloor.f32 %v117_v29  ;;  %v2993_v37 = vadd.f32 %v137_v30, %v129_v28  ;;  %v83_v32 = vmul.f32 %v2645_v31, %v2802_v15  ;;  %v126_v54 = vmul.f32 %v2645_v31, %v2808_v23 }
  0x52   :  { %v119_v39 = vadd.f32 15.5, %v111_v34  ;;  %v85_v21 = vmul.f32 %v2647_v11, %v2802_v15  ;;  %v102_v28 = vmul.f32 %v2655_v2, %v2804_v17 }
  0x53   :  { %v183_v45 = vsub.f32 %v117_v29, %v167_v36  ;;  %vm271_vm9 = vcmp.ge.f32.partialorder %v167_v36, 0.0  ;;  %vm279_vm10 = vcmp.le.f32.partialorder %v167_v36, 31.0  ;;  %v311_v46 = vadd.f32 1.0, %v167_v36  ;;  %2674 = vmatmul.mubr.msk.bf16.gmra.mxu0 %vm837_vm8, %v2991_v33  ;;  %v3071_v29 = vld [vmem:[%s4486_s1 + $0x18] sm:$0xff]  }
  0x54   :  { %vm2999_vm11 = vmand %vm271_vm9, %vm279_vm10  ;;  %v3004_v41 = vadd.f32 %v2831_v52, %v167_v36  ;;  %v169_v47 = vfloor.f32 %v119_v39  ;;  %938 = vmatprep.mubr.bf16.mxu0 %v4488_v1  ;;  %v108_v58 = vadd.f32 %v100_v42, %v83_v32  ;;  %v3041_v16 = vadd.f32 %v134_v48, %v126_v54 }
  0x55   :  { %v295_v53 = vsub.f32 1.0, %v183_v45  ;;  %vm319_vm12 = vcmp.ge.f32.partialorder %v311_v46, 0.0  ;;  %vm327_vm13 = vcmp.le.f32.partialorder %v311_v46, 31.0  ;;  %2690 = vmatmul.mubr.msk.bf16.gmra.mxu1 %vm837_vm8, %v2991_v33  ;;  %v110_v42 = vadd.f32 %v102_v28, %v85_v21 }
  0x56   :  { %vm335_vm14 = vmand %vm319_vm12, %vm327_vm13  ;;  %vm562_vm15 = vcmp.eq.f32.partialorder %v2833_v55, %v3004_v41  ;;  %vm570_vm0 = vcmp.eq.f32.partialorder %v2835_v56, %v3004_v41  ;;  %v3014_v57 = vadd.f32 1.0, %v3004_v41  ;;  %v185_v0 = vsub.f32 %v119_v39, %v169_v47  ;;  %1131 = vmatprep.mubr.bf16.mxu1 %v4488_v1 }
  0x57   :  { %v3020_v60 = vsel %vm2999_vm11, %v295_v53, 0.0  ;;  %v3022_v63 = vsel %vm335_vm14, %v183_v45, 0.0  ;;  %vm273_vm1 = vcmp.ge.f32.partialorder %v169_v47, 0.0  ;;  %vm281_vm4 = vcmp.le.f32.partialorder %v169_v47, 31.0 }
  0x58   :  { %v594_v6 = vsel %vm562_vm15, %v3020_v60, 0.0  ;;  %v602_v8 = vsel %vm570_vm0, %v3020_v60, 0.0  ;;  %vm634_vm2 = vcmp.eq.f32.partialorder %v2833_v55, %v3014_v57  ;;  %vm642_vm3 = vcmp.eq.f32.partialorder %v2835_v56, %v3014_v57  ;;  %vm289_vm5 = vmand %vm273_vm1, %vm281_vm4 }
  0x59   :  { %v666_v9 = vsel %vm634_vm2, %v3022_v63, 0.0  ;;  %v674_v61 = vsel %vm642_vm3, %v3022_v63, 0.0  ;;  %v297_v10 = vsub.f32 1.0, %v185_v0  ;;  %v313_v12 = vadd.f32 1.0, %v169_v47 }
  0x5a   :  { %v698_v7 = vadd.f32 %v666_v9, %v594_v6  ;;  %v706_v3 = vadd.f32 %v674_v61, %v602_v8  ;;  %v3039_v13 = vadd.f32 %v2831_v52, %v169_v47  ;;  %v116_v14 = vadd.f32 15.5, %v108_v58  ;;  %v3108_v58 = vld [vmem:[%s4486_s1 + $0x20] sm:$0xff]  }
  0x5b   :  { %2675 = vmatmul.mubr.msk.bf16.gmra.mxu0 %vm837_vm8, %v3028_v5  ;;  %v3045_v19 = vsel %vm289_vm5, %v297_v10, 0.0  ;;  %vm321_vm6 = vcmp.ge.f32.partialorder %v313_v12, 0.0  ;;  %vm329_vm7 = vcmp.le.f32.partialorder %v313_v12, 31.0  ;;  %v128_v45 = vmul.f32 %v2647_v11, %v2808_v23 }
  0x5c   :  { %v722_v18 = vpack.c.bf16 %v706_v3, %v698_v7  ;;  %948 = vmatprep.mubr.bf16.mxu0 %v4488_v1  ;;  %vm337_vm9 = vmand %vm321_vm6, %vm329_vm7  ;;  %vm564_vm10 = vcmp.eq.f32.partialorder %v2833_v55, %v3039_v13  ;;  %vm572_vm11 = vcmp.eq.f32.partialorder %v2835_v56, %v3039_v13  ;;  %v3053_v20 = vadd.f32 1.0, %v3039_v13 }
  0x5d   :  { %v3056_v24 = vsel %vm337_vm9, %v185_v0, 0.0  ;;  %v596_v25 = vsel %vm564_vm10, %v3045_v19, 0.0  ;;  %v604_v27 = vsel %vm572_vm11, %v3045_v19, 0.0  ;;  %v166_v22 = vfloor.f32 %v116_v14  ;;  %2691 = vmatmul.mubr.msk.bf16.gmra.mxu1 %vm837_vm8, %v3028_v5 }
  0x5e   :  { %1284 = vmatprep.subr.bf16.mxu0 %v722_v18  ;;  %vm636_vm12 = vcmp.eq.f32.partialorder %v2833_v55, %v3053_v20  ;;  %vm644_vm13 = vcmp.eq.f32.partialorder %v2835_v56, %v3053_v20  ;;  %1141 = vmatprep.mubr.bf16.mxu1 %v4488_v1  ;;  %v136_v46 = vmul.f32 %v2655_v2, %v2802_v15  ;;  %v118_v15 = vadd.f32 15.5, %v110_v42 }
  0x5f   :  { %v668_v30 = vsel %vm636_vm12, %v3056_v24, 0.0  ;;  %v676_v31 = vsel %vm644_vm13, %v3056_v24, 0.0  ;;  %v182_v34 = vsub.f32 %v116_v14, %v166_v22  ;;  %vm270_vm14 = vcmp.ge.f32.partialorder %v166_v22, 0.0 }
  0x60   :  { %v700_v35 = vadd.f32 %v668_v30, %v596_v25  ;;  %v708_v36 = vadd.f32 %v676_v31, %v604_v27  ;;  %vm278_vm15 = vcmp.le.f32.partialorder %v166_v22, 31.0  ;;  %v310_v32 = vadd.f32 1.0, %v166_v22 }
  0x61   :  { %vm286_vm0 = vmand %vm270_vm14, %vm278_vm15  ;;  %v294_v39 = vsub.f32 1.0, %v182_v34  ;;  %v3076_v17 = vadd.f32 %v2831_v52, %v166_v22  ;;  %v3096_v53 = vadd.f32 %v136_v46, %v128_v45  ;;  %v168_v54 = vfloor.f32 %v118_v15 }
  0x62   :  { %v724_v44 = vpack.c.bf16 %v708_v36, %v700_v35  ;;  %vm318_vm1 = vcmp.ge.f32.partialorder %v310_v32, 0.0  ;;  %vm326_vm2 = vcmp.le.f32.partialorder %v310_v32, 31.0  ;;  %vm546_vm9 = vcmp.eq.f32.partialorder %v2841_v62, %v3004_v41 }
  0x63   :  { %2676 = vmatmul.mubr.msk.bf16.gmra.mxu0 %vm837_vm8, %v3071_v29  ;;  %v3082_v40 = vsel %vm286_vm0, %v294_v39, 0.0  ;;  %vm561_vm3 = vcmp.eq.f32.partialorder %v2833_v55, %v3076_v17  ;;  %vm334_vm4 = vmand %vm318_vm1, %vm326_vm2  ;;  %vm569_vm5 = vcmp.eq.f32.partialorder %v2835_v56, %v3076_v17  ;;  %v3090_v23 = vadd.f32 1.0, %v3076_v17 }
  0x64   :  { %958 = vmatprep.mubr.bf16.mxu0 %v4488_v1  ;;  %1477 = vmatprep.subr.bf16.mxu1 %v724_v44  ;;  %v3092_v47 = vsel %vm334_vm4, %v182_v34, 0.0  ;;  %v593_v48 = vsel %vm561_vm3, %v3082_v40, 0.0  ;;  %v601_v51 = vsel %vm569_vm5, %v3082_v40, 0.0  ;;  %vm554_vm10 = vcmp.eq.f32.partialorder %v2843_v4, %v3004_v41 }
  0x65   :  { %2692 = vmatmul.mubr.msk.bf16.gmra.mxu1 %vm837_vm8, %v3071_v29  ;;  %vm633_vm6 = vcmp.eq.f32.partialorder %v2833_v55, %v3090_v23  ;;  %vm641_vm7 = vcmp.eq.f32.partialorder %v2835_v56, %v3090_v23  ;;  %v184_v61 = vsub.f32 %v118_v15, %v168_v54  ;;  %vm272_vm11 = vcmp.ge.f32.partialorder %v168_v54, 0.0 }
  0x66   :  { %1151 = vmatprep.mubr.bf16.mxu1 %v4488_v1  ;;  %v665_v0 = vsel %vm633_vm6, %v3092_v47, 0.0  ;;  %v673_v6 = vsel %vm641_vm7, %v3092_v47, 0.0  ;;  %vm280_vm12 = vcmp.le.f32.partialorder %v168_v54, 31.0  ;;  %v312_v11 = vadd.f32 1.0, %v168_v54 }
  0x67   :  { %v697_v8 = vadd.f32 %v665_v0, %v593_v48  ;;  %v705_v9 = vadd.f32 %v673_v6, %v601_v51  ;;  %v3117_v7 = vadd.f32 %v2831_v52, %v168_v54  ;;  %v578_v3 = vsel %vm546_vm9, %v3020_v60, 0.0  ;;  %vm288_vm13 = vmand %vm272_vm11, %vm280_vm12 }
  0x68   :  { %v296_v12 = vsub.f32 1.0, %v184_v61  ;;  %vm618_vm14 = vcmp.eq.f32.partialorder %v2841_v62, %v3014_v57  ;;  %vm626_vm15 = vcmp.eq.f32.partialorder %v2843_v4, %v3014_v57  ;;  %vm320_vm0 = vcmp.ge.f32.partialorder %v312_v11, 0.0 }
  0x69   :  { %v721_v10 = vpack.c.bf16 %v705_v9, %v697_v8  ;;  %vm328_vm1 = vcmp.le.f32.partialorder %v312_v11, 31.0  ;;  %vm563_vm2 = vcmp.eq.f32.partialorder %v2833_v55, %v3117_v7  ;;  %v586_v52 = vsel %vm554_vm10, %v3020_v60, 0.0  ;;  %v3149_v60 = vld [vmem:[%s4486_s1 + $0x28] sm:$0xff]   ;;  %v3201_v9 = vld [vmem:[%s4486_s1 + $0x38] sm:$0xff]  }
  0x6a   :  { %v304_v14 = vsel %vm288_vm13, %v296_v12, 0.0  ;;  %vm336_vm3 = vmand %vm320_vm0, %vm328_vm1  ;;  %vm571_vm4 = vcmp.eq.f32.partialorder %v2835_v56, %v3117_v7  ;;  %v611_v2 = vadd.f32 1.0, %v3117_v7  ;;  %v650_v18 = vsel %vm618_vm14, %v3022_v63, 0.0  ;;  %v3223_v11 = vld [vmem:[%s4486_s1 + $0x48] sm:$0xff]  }
  0x6b   :  { %2677 = vmatmul.mubr.msk.bf16.gmra.mxu0 %vm837_vm8, %v3108_v58  ;;  %v344_v21 = vsel %vm336_vm3, %v184_v61, 0.0  ;;  %v595_v25 = vsel %vm563_vm2, %v304_v14, 0.0  ;;  %v603_v27 = vsel %vm571_vm4, %v304_v14, 0.0  ;;  %v658_v41 = vsel %vm626_vm15, %v3022_v63, 0.0  ;;  %v3212_v61 = vld [vmem:[%s4486_s1 + $0x40] sm:$0xff]   ;;  %v3267_v12 = vld [vmem:[%s4486_s1 + $0x68] sm:$0xff]  }
  0x6c   :  { %968 = vmatprep.mubr.bf16.mxu0 %v4488_v1  ;;  %1285 = vmatpush1.bf16.msra.mxu0 %v721_v10  ;;  %vm635_vm5 = vcmp.eq.f32.partialorder %v2833_v55, %v611_v2  ;;  %vm643_vm6 = vcmp.eq.f32.partialorder %v2835_v56, %v611_v2  ;;  %v682_v22 = vadd.f32 %v650_v18, %v578_v3  ;;  %v3245_v3 = vld [vmem:[%s4486_s1 + $0x58] sm:$0xff]   ;;  %v3256_v10 = vld [vmem:[%s4486_s1 + $0x60] sm:$0xff]   ;;  %v149_v18 = vadd.f32 15.5, %v2826_v49 }
  0x6d   :  { %2693 = vmatmul.mubr.msk.bf16.gmra.mxu1 %vm837_vm8, %v3108_v58  ;;  %v690_v28 = vadd.f32 %v658_v41, %v586_v52  ;;  %v667_v30 = vsel %vm635_vm5, %v344_v21, 0.0  ;;  %v675_v31 = vsel %vm643_vm6, %v344_v21, 0.0  ;;  %vm548_vm7 = vcmp.eq.f32.partialorder %v2841_v62, %v3039_v13  ;;  %v3278_v52 = vld [vmem:[%s4486_s1 + $0x70] sm:$0xff]  }
  0x6e   :  { %1161 = vmatprep.mubr.bf16.mxu1 %v4488_v1  ;;  %vm556_vm9 = vcmp.eq.f32.partialorder %v2843_v4, %v3039_v13  ;;  %v699_v57 = vadd.f32 %v667_v30, %v595_v25  ;;  %v707_v63 = vadd.f32 %v675_v31, %v603_v27  ;;  %v580_v35 = vsel %vm548_vm7, %v3045_v19, 0.0 }
  0x6f   :  { %v714_v34 = vpack.c.bf16 %v690_v28, %v682_v22  ;;  %v588_v36 = vsel %vm556_vm9, %v3045_v19, 0.0  ;;  %vm620_vm10 = vcmp.eq.f32.partialorder %v2841_v62, %v3053_v20  ;;  %vm628_vm11 = vcmp.eq.f32.partialorder %v2843_v4, %v3053_v20 }
  0x70   :  { %vm545_vm12 = vcmp.eq.f32.partialorder %v2841_v62, %v3076_v17  ;;  %v723_v39 = vpack.c.bf16 %v707_v63, %v699_v57  ;;  %v652_v13 = vsel %vm620_vm10, %v3056_v24, 0.0  ;;  %v660_v32 = vsel %vm628_vm11, %v3056_v24, 0.0 }
  0x71   :  { %1286 = vmatprep.subr.bf16.mxu0 %v714_v34  ;;  %vm553_vm13 = vcmp.eq.f32.partialorder %v2843_v4, %v3076_v17  ;;  %v684_v19 = vadd.f32 %v652_v13, %v580_v35  ;;  %v692_v42 = vadd.f32 %v660_v32, %v588_v36  ;;  %v577_v20 = vsel %vm545_vm12, %v3082_v40, 0.0 }
  0x72   :  { %v585_v44 = vsel %vm553_vm13, %v3082_v40, 0.0  ;;  %1478 = vmatpush1.bf16.msra.mxu1 %v723_v39  ;;  %vm617_vm14 = vcmp.eq.f32.partialorder %v2841_v62, %v3090_v23  ;;  %vm625_vm15 = vcmp.eq.f32.partialorder %v2843_v4, %v3090_v23  ;;  %vm547_vm0 = vcmp.eq.f32.partialorder %v2841_v62, %v3117_v7  ;;  %v3188_v40 = vld [vmem:[%s4486_s1 + $0x30] sm:$0xff]  }
  0x73   :  { %2678 = vmatmul.mubr.msk.bf16.gmra.mxu0 %vm837_vm8, %v3149_v60  ;;  %vm555_vm1 = vcmp.eq.f32.partialorder %v2843_v4, %v3117_v7  ;;  %v716_v24 = vpack.c.bf16 %v692_v42, %v684_v19  ;;  %v649_v17 = vsel %vm617_vm14, %v3092_v47, 0.0  ;;  %v657_v45 = vsel %vm625_vm15, %v3092_v47, 0.0  ;;  %v3234_v7 = vld [vmem:[%s4486_s1 + $0x50] sm:$0xff]  }
  0x74   :  { %978 = vmatprep.mubr.bf16.mxu0 %v4488_v1  ;;  %v579_v46 = vsel %vm547_vm0, %v304_v14, 0.0  ;;  %v681_v23 = vadd.f32 %v649_v17, %v577_v20  ;;  %v689_v15 = vadd.f32 %v657_v45, %v585_v44  ;;  %v587_v48 = vsel %vm555_vm1, %v304_v14, 0.0  ;;  %v2754_v14 = vld [vmem:[%s4486_s1 + $0x78] sm:$0xff]  }
  0x75   :  { %2694 = vmatmul.mubr.msk.bf16.gmra.mxu1 %vm837_vm8, %v3149_v60  ;;  %vm619_vm2 = vcmp.eq.f32.partialorder %v2841_v62, %v611_v2  ;;  %1479 = vmatprep.subr.bf16.mxu1 %v716_v24  ;;  %vm627_vm3 = vcmp.eq.f32.partialorder %v2843_v4, %v611_v2  ;;  %v146_v2 = vadd.f32 15.5, %v2828_v50  ;;  %v151_v25 = vadd.f32 15.5, %v2981_v26 }
  0x76   :  { %1171 = vmatprep.mubr.bf16.mxu1 %v4488_v1  ;;  %v651_v51 = vsel %vm619_vm2, %v344_v21, 0.0  ;;  %v713_v54 = vpack.c.bf16 %v689_v15, %v681_v23  ;;  %v659_v0 = vsel %vm627_vm3, %v344_v21, 0.0  ;;  %v148_v21 = vadd.f32 15.5, %v2920_v59 }
  0x77   :  { %v683_v47 = vadd.f32 %v651_v51, %v579_v46  ;;  %v691_v6 = vadd.f32 %v659_v0, %v587_v48  ;;  %v3319_v27 = vfloor.f32 %v149_v18  ;;  %v3321_v22 = vfloor.f32 %v151_v25 }
  0x78   :  { %1287 = vmatpush1.bf16.msra.mxu0 %v713_v54  ;;  %v156_v41 = vfloor.f32 %v148_v21  ;;  %v3329_v59 = vstv %s2639_s20  ;;  %v3349_v36 = vadd.f32 15.5, %v3096_v53 }
  0x79   :  { %v715_v8 = vpack.c.bf16 %v691_v6, %v683_v47  ;;  %v3332_v28 = vsub.f32 %v149_v18, %v3319_v27  ;;  %v229_v32 = vadd.f32 1.0, %v3319_v27  ;;  %v3404_v15 = vadd.f32 %v3329_v59, %v3319_v27 }
  0x7a   :  { %v228_v31 = vadd.f32 1.0, %v156_v41  ;;  %v172_v57 = vsub.f32 %v148_v21, %v156_v41  ;;  %vm188_vm10 = vcmp.ge.f32.partialorder %v156_v41, 0.0  ;;  %vm196_vm11 = vcmp.le.f32.partialorder %v156_v41, 31.0 }
  0x7b   :  { %2679 = vmatmul.mubr.msk.bf16.gmra.mxu0 %vm837_vm8, %v3188_v40  ;;  %1480 = vmatpush1.bf16.msra.mxu1 %v715_v8  ;;  %vm3374_vm2 = vmand %vm188_vm10, %vm196_vm11  ;;  %v3382_v44 = vfloor.f32 %v3349_v36  ;;  %vm237_vm11 = vcmp.ge.f32.partialorder %v229_v32, 0.0  ;;  %v213_v0 = vsub.f32 1.0, %v3332_v28 }
  0x7c   :  { %988 = vmatprep.mubr.bf16.mxu0 %v4488_v1  ;;  %vm236_vm12 = vcmp.ge.f32.partialorder %v228_v31, 0.0  ;;  %vm244_vm13 = vcmp.le.f32.partialorder %v228_v31, 31.0 }
  0x7d   :  { %2695 = vmatmul.mubr.msk.bf16.gmra.mxu1 %vm837_vm8, %v3188_v40 }
  0x7e   :  { %1181 = vmatprep.mubr.bf16.mxu1 %v4488_v1 }
  0x83   :  { %2680 = vmatmul.mubr.msk.bf16.gmra.mxu0 %vm837_vm8, %v3201_v9 }
  0x84   :  { %998 = vmatprep.mubr.bf16.mxu0 %v4488_v1 }
  0x85   :  { %2696 = vmatmul.mubr.msk.bf16.gmra.mxu1 %vm837_vm8, %v3201_v9 }
  0x86   :  { %1191 = vmatprep.mubr.bf16.mxu1 %v4488_v1 }
  0x8b   :  { %2681 = vmatmul.mubr.msk.bf16.gmra.mxu0 %vm837_vm8, %v3212_v61 }
  0x8c   :  { %1008 = vmatprep.mubr.bf16.mxu0 %v4488_v1 }
  0x8d   :  { %2697 = vmatmul.mubr.msk.bf16.gmra.mxu1 %vm837_vm8, %v3212_v61 }
  0x8e   :  { %1201 = vmatprep.mubr.bf16.mxu1 %v4488_v1 }
  0x93   :  { %2682 = vmatmul.mubr.msk.bf16.gmra.mxu0 %vm837_vm8, %v3223_v11 }
  0x94   :  { %1018 = vmatprep.mubr.bf16.mxu0 %v4488_v1 }
  0x95   :  { %2698 = vmatmul.mubr.msk.bf16.gmra.mxu1 %vm837_vm8, %v3223_v11 }
  0x96   :  { %1211 = vmatprep.mubr.bf16.mxu1 %v4488_v1 }
  0x9b   :  { %2683 = vmatmul.mubr.msk.bf16.gmra.mxu0 %vm837_vm8, %v3234_v7 }
  0x9c   :  { %1028 = vmatprep.mubr.bf16.mxu0 %v4488_v1 }
  0x9d   :  { %2699 = vmatmul.mubr.msk.bf16.gmra.mxu1 %vm837_vm8, %v3234_v7 }
  0x9e   :  { %1221 = vmatprep.mubr.bf16.mxu1 %v4488_v1 }
  0xa3   :  { %2684 = vmatmul.mubr.msk.bf16.gmra.mxu0 %vm837_vm8, %v3245_v3 }
  0xa4   :  { %1038 = vmatprep.mubr.bf16.mxu0 %v4488_v1 }
  0xa5   :  { %2700 = vmatmul.mubr.msk.bf16.gmra.mxu1 %vm837_vm8, %v3245_v3 }
  0xa6   :  { %1231 = vmatprep.mubr.bf16.mxu1 %v4488_v1 }
  0xab   :  { %2685 = vmatmul.mubr.msk.bf16.gmra.mxu0 %vm837_vm8, %v3256_v10 }
  0xac   :  { %1048 = vmatprep.mubr.bf16.mxu0 %v4488_v1 }
  0xad   :  { %2701 = vmatmul.mubr.msk.bf16.gmra.mxu1 %vm837_vm8, %v3256_v10 }
  0xae   :  { %1241 = vmatprep.mubr.bf16.mxu1 %v4488_v1 }
  0xb3   :  { %2686 = vmatmul.mubr.msk.bf16.gmra.mxu0 %vm837_vm8, %v3267_v12 }
  0xb4   :  { %1058 = vmatprep.mubr.bf16.mxu0 %v4488_v1 }
  0xb5   :  { %2702 = vmatmul.mubr.msk.bf16.gmra.mxu1 %vm837_vm8, %v3267_v12 }
  0xb6   :  { %1251 = vmatprep.mubr.bf16.mxu1 %v4488_v1 }
  0xbb   :  { %2687 = vmatmul.mubr.msk.bf16.gmra.mxu0 %vm837_vm8, %v3278_v52 }
  0xbc   :  { %1068 = vmatprep.mubr.bf16.mxu0 %v4488_v1 }
  0xbd   :  { %2703 = vmatmul.mubr.msk.bf16.gmra.mxu1 %vm837_vm8, %v3278_v52 }
  0xbe   :  { %1261 = vmatprep.mubr.bf16.mxu1 %v4488_v1 }
  0xc3   :  { %2688 = vmatmul.mubr.msk.bf16.gmra.mxu0 %vm837_vm8, %v2754_v14 }
  0xc4   :  { %1304 = vmatprep.mubr.bf16.mxu0 %v4488_v1 }
  0xc5   :  { %2704 = vmatmul.mubr.msk.bf16.gmra.mxu1 %vm837_vm8, %v2754_v14  ;;  %v3448_v14 = vadd.f32 1.0, %v3404_v15 }
  0xc6   :  { %1497 = vmatprep.mubr.bf16.mxu1 %v4488_v1 }
  0xcb   :  { %2705 = vmatmul.mubr.msk.bf16.vlgmr.msra.gmra.mxu0 %vm837_vm8, %v2968_v43 }
  0xcc   :  { %1314 = vmatprep.mubr.bf16.mxu0 %v4488_v1 }
  0xcd   :  { %2721 = vmatmul.mubr.msk.bf16.vlgmr.msra.gmra.mxu1 %vm837_vm8, %v2968_v43  ;;  %v147_v43 = vadd.f32 15.5, %v2818_v38  ;;  %v3324_v38 = vadd.f32 15.5, %v2993_v37  ;;  %v3335_v37 = vsub.f32 %v151_v25, %v3321_v22 }
  0xce   :  { %1507 = vmatprep.mubr.bf16.mxu1 %v4488_v1 }
  0xcf   :  { %v155_v50 = vfloor.f32 %v147_v43  ;;  %v3338_v63 = vfloor.f32 %v3324_v38 }
  0xd1   :  { %v171_v26 = vsub.f32 %v147_v43, %v155_v50  ;;  %v227_v35 = vadd.f32 1.0, %v155_v50  ;;  %v3358_v13 = vadd.f32 %v3329_v59, %v155_v50  ;;  %vm187_vm0 = vcmp.ge.f32.partialorder %v155_v50, 0.0 }
  0xd2   :  { %vm195_vm1 = vcmp.le.f32.partialorder %v155_v50, 31.0 }
  0xd3   :  { %2706 = vmatmul.mubr.msk.bf16.gmra.mxu0 %vm837_vm8, %v2991_v33  ;;  %vm235_vm3 = vcmp.ge.f32.partialorder %v227_v35, 0.0  ;;  %v211_v45 = vsub.f32 1.0, %v171_v26  ;;  %v3398_v23 = vadd.f32 1.0, %v3358_v13 }
  0xd4   :  { %1324 = vmatprep.mubr.bf16.mxu0 %v4488_v1 }
  0xd5   :  { %2722 = vmatmul.mubr.msk.bf16.gmra.mxu1 %vm837_vm8, %v2991_v33  ;;  %v154_v33 = vfloor.f32 %v146_v2 }
  0xd6   :  { %1517 = vmatprep.mubr.bf16.mxu1 %v4488_v1 }
  0xd7   :  { %vm186_vm4 = vcmp.ge.f32.partialorder %v154_v33, 0.0  ;;  %vm194_vm5 = vcmp.le.f32.partialorder %v154_v33, 31.0  ;;  %v226_v49 = vadd.f32 1.0, %v154_v33  ;;  %v3346_v34 = vadd.f32 %v3329_v59, %v154_v33 }
  0xd8   :  { %vm202_vm6 = vmand %vm186_vm4, %vm194_vm5  ;;  %vm243_vm4 = vcmp.le.f32.partialorder %v227_v35, 31.0 }
  0xd9   :  { %vm234_vm7 = vcmp.ge.f32.partialorder %v226_v49, 0.0  ;;  %vm242_vm9 = vcmp.le.f32.partialorder %v226_v49, 31.0  ;;  %vm373_vm15 = vcmp.eq.f32.partialorder %v2841_v62, %v3346_v34  ;;  %v3371_v19 = vadd.f32 1.0, %v3346_v34  ;;  %vm3386_vm5 = vmand %vm236_vm12, %vm244_vm13 }
  0xda   :  { %vm3362_vm14 = vmand %vm234_vm7, %vm242_vm9  ;;  %vm189_vm7 = vcmp.ge.f32.partialorder %v3319_v27, 0.0  ;;  %vm197_vm9 = vcmp.le.f32.partialorder %v3319_v27, 31.0  ;;  %vm245_vm12 = vcmp.le.f32.partialorder %v229_v32, 31.0  ;;  %v3428_v47 = vsel %vm3386_vm5, %v172_v57, 0.0 }
  0xdb   :  { %2707 = vmatmul.mubr.msk.bf16.gmra.mxu0 %vm837_vm8, %v3028_v5  ;;  %vm251_vm10 = vmand %vm235_vm3, %vm243_vm4  ;;  %vm445_vm13 = vcmp.eq.f32.partialorder %v2841_v62, %v3371_v19  ;;  %vm381_vm4 = vcmp.eq.f32.partialorder %v2843_v4, %v3346_v34  ;;  %vm453_vm5 = vcmp.eq.f32.partialorder %v2843_v4, %v3371_v19  ;;  %v3490_v49 = vsub.f32 %v3324_v38, %v3338_v63 }
  0xdc   :  { %1334 = vmatprep.mubr.bf16.mxu0 %v4488_v1  ;;  %v3442_v8 = vsel %vm251_vm10, %v171_v26, 0.0  ;;  %vm253_vm3 = vmand %vm237_vm11, %vm245_vm12  ;;  %vm448_vm10 = vcmp.eq.f32.partialorder %v2841_v62, %v3448_v14  ;;  %vm382_vm11 = vcmp.eq.f32.partialorder %v2843_v4, %v3358_v13  ;;  %vm454_vm12 = vcmp.eq.f32.partialorder %v2843_v4, %v3398_v23 }
  0xdd   :  { %2723 = vmatmul.mubr.msk.bf16.gmra.mxu1 %vm837_vm8, %v3028_v5  ;;  %v170_v5 = vsub.f32 %v146_v2, %v154_v33  ;;  %v3478_v25 = vsel %vm253_vm3, %v3332_v28, 0.0  ;;  %v3502_v28 = vsub.f32 %v3349_v36, %v3382_v44  ;;  %v486_v32 = vsel %vm454_vm12, %v3442_v8, 0.0 }
  0xde   :  { %1527 = vmatprep.mubr.bf16.mxu1 %v4488_v1  ;;  %vm390_vm3 = vcmp.eq.f32.partialorder %v2833_v55, %v3358_v13  ;;  %vm398_vm12 = vcmp.eq.f32.partialorder %v2835_v56, %v3358_v13 }
  0xdf   :  { %v210_v30 = vsub.f32 1.0, %v170_v5  ;;  %v3408_v48 = vsel %vm3362_vm14, %v170_v5, 0.0 }
  0xe0   :  { %v477_v2 = vsel %vm445_vm13, %v3408_v48, 0.0  ;;  %v485_v27 = vsel %vm453_vm5, %v3408_v48, 0.0  ;;  %vm384_vm13 = vcmp.eq.f32.partialorder %v2843_v4, %v3404_v15  ;;  %vm392_vm5 = vcmp.eq.f32.partialorder %v2833_v55, %v3404_v15 }
  0xe1   :  { %v3355_v39 = vsel %vm202_vm6, %v210_v30, 0.0  ;;  %vm3393_vm6 = vmand %vm187_vm0, %vm195_vm1  ;;  %vm374_vm0 = vcmp.eq.f32.partialorder %v2841_v62, %v3358_v13 }
  0xe2   :  { %v405_v51 = vsel %vm373_vm15, %v3355_v39, 0.0  ;;  %v3434_v6 = vsel %vm3393_vm6, %v211_v45, 0.0  ;;  %vm205_vm1 = vmand %vm189_vm7, %vm197_vm9  ;;  %vm376_vm9 = vcmp.eq.f32.partialorder %v2841_v62, %v3404_v15  ;;  %v413_v50 = vsel %vm381_vm4, %v3355_v39, 0.0 }
  0xe3   :  { %2708 = vmatmul.mubr.msk.bf16.gmra.mxu0 %vm837_vm8, %v3071_v29  ;;  %v406_v18 = vsel %vm374_vm0, %v3434_v6, 0.0  ;;  %v3474_v33 = vsel %vm205_vm1, %v213_v0, 0.0  ;;  %v3506_v30 = vadd.f32 %v477_v2, %v405_v51  ;;  %v3518_v35 = vadd.f32 %v485_v27, %v413_v50 }
  0xe4   :  { %1344 = vmatprep.mubr.bf16.mxu0 %v4488_v1  ;;  %v414_v53 = vsel %vm382_vm11, %v3434_v6, 0.0  ;;  %vm461_vm0 = vcmp.eq.f32.partialorder %v2833_v55, %v3371_v19  ;;  %vm462_vm4 = vcmp.eq.f32.partialorder %v2833_v55, %v3398_v23  ;;  %v422_v51 = vsel %vm390_vm3, %v3434_v6, 0.0 }
  0xe5   :  { %2724 = vmatmul.mubr.msk.bf16.gmra.mxu1 %vm837_vm8, %v3071_v29  ;;  %v3341_v29 = vadd.f32 15.5, %v3041_v16  ;;  %v3353_v16 = vadd.f32 %v3329_v59, %v156_v41  ;;  %v493_v24 = vsel %vm461_vm0, %v3408_v48, 0.0  ;;  %v494_v0 = vsel %vm462_vm4, %v3442_v8, 0.0 }
  0xe6   :  { %1537 = vmatprep.mubr.bf16.mxu1 %v4488_v1  ;;  %v424_v2 = vsel %vm392_vm5, %v3474_v33, 0.0  ;;  %v3582_v50 = vadd.f32 %v494_v0, %v422_v51  ;;  %vm192_vm5 = vcmp.ge.f32.partialorder %v3382_v44, 0.0 }
  0xe7   :  { %v3379_v20 = vfloor.f32 %v3341_v29  ;;  %v3391_v17 = vadd.f32 1.0, %v3353_v16  ;;  %vm375_vm14 = vcmp.eq.f32.partialorder %v2841_v62, %v3353_v16  ;;  %vm383_vm6 = vcmp.eq.f32.partialorder %v2843_v4, %v3353_v16 }
  0xe8   :  { %vm391_vm1 = vcmp.eq.f32.partialorder %v2833_v55, %v3353_v16 }
  0xe9   :  { %vm447_vm15 = vcmp.eq.f32.partialorder %v2841_v62, %v3391_v17  ;;  %vm455_vm7 = vcmp.eq.f32.partialorder %v2843_v4, %v3391_v17  ;;  %v3494_v26 = vsub.f32 %v3341_v29, %v3379_v20  ;;  %v480_v29 = vsel %vm448_vm10, %v3478_v25, 0.0 }
  0xea   :  { %v479_v43 = vsel %vm447_vm15, %v3428_v47, 0.0  ;;  %v487_v41 = vsel %vm455_vm7, %v3428_v47, 0.0  ;;  %vm389_vm15 = vcmp.eq.f32.partialorder %v2833_v55, %v3346_v34  ;;  %vm397_vm7 = vcmp.eq.f32.partialorder %v2835_v56, %v3346_v34 }
  0xeb   :  { %2709 = vmatmul.mubr.msk.bf16.gmra.mxu0 %vm837_vm8, %v3108_v58  ;;  %v429_v34 = vsel %vm397_vm7, %v3355_v39, 0.0  ;;  %vm399_vm10 = vcmp.eq.f32.partialorder %v2835_v56, %v3353_v16  ;;  %vm471_vm11 = vcmp.eq.f32.partialorder %v2835_v56, %v3391_v17  ;;  %vm190_vm0 = vcmp.ge.f32.partialorder %v3379_v20, 0.0 }
  0xec   :  { %1354 = vmatprep.mubr.bf16.mxu0 %v4488_v1  ;;  %v503_v13 = vsel %vm471_vm11, %v3428_v47, 0.0 }
  0xed   :  { %2725 = vmatmul.mubr.msk.bf16.gmra.mxu1 %vm837_vm8, %v3108_v58  ;;  %v212_v58 = vsub.f32 1.0, %v172_v57  ;;  %v408_v57 = vsel %vm376_vm9, %v3474_v33, 0.0  ;;  %vm469_vm9 = vcmp.eq.f32.partialorder %v2835_v56, %v3371_v19 }
  0xee   :  { %1547 = vmatprep.mubr.bf16.mxu1 %v4488_v1  ;;  %v501_v19 = vsel %vm469_vm9, %v3408_v48, 0.0 }
  0xef   :  { %v3420_v54 = vsel %vm3374_vm2, %v212_v58, 0.0  ;;  %vm446_vm2 = vcmp.eq.f32.partialorder %v2841_v62, %v3398_v23  ;;  %v421_v58 = vsel %vm389_vm15, %v3355_v39, 0.0  ;;  %vm472_vm15 = vcmp.eq.f32.partialorder %v2835_v56, %v3448_v14 }
  0xf0   :  { %v478_v21 = vsel %vm446_vm2, %v3442_v8, 0.0  ;;  %v415_v5 = vsel %vm383_vm6, %v3420_v54, 0.0  ;;  %vm463_vm2 = vcmp.eq.f32.partialorder %v2833_v55, %v3391_v17  ;;  %vm464_vm6 = vcmp.eq.f32.partialorder %v2833_v55, %v3448_v14 }
  0xf1   :  { %v3510_v31 = vadd.f32 %v478_v21, %v406_v18  ;;  %v3520_v36 = vadd.f32 %v487_v41, %v415_v5  ;;  %v423_v45 = vsel %vm391_vm1, %v3420_v54, 0.0  ;;  %v495_v46 = vsel %vm463_vm2, %v3428_v47, 0.0 }
  0xf2   :  { %v3572_v18 = vadd.f32 %v486_v32, %v414_v53  ;;  %v3578_v39 = vadd.f32 %v493_v24, %v421_v58  ;;  %v3580_v48 = vadd.f32 %v495_v46, %v423_v45  ;;  %v3590_v17 = vadd.f32 %v501_v19, %v429_v34 }
  0xf3   :  { %2710 = vmatmul.mubr.msk.bf16.gmra.mxu0 %vm837_vm8, %v3149_v60  ;;  %v431_v27 = vsel %vm399_vm10, %v3420_v54, 0.0  ;;  %v430_v5 = vsel %vm398_vm12, %v3434_v6, 0.0  ;;  %v230_v41 = vadd.f32 1.0, %v3379_v20  ;;  %vm198_vm1 = vcmp.le.f32.partialorder %v3379_v20, 31.0 }
  0xf4   :  { %1364 = vmatprep.mubr.bf16.mxu0 %v4488_v1  ;;  %v214_v47 = vsub.f32 1.0, %v3494_v26  ;;  %vm3614_vm3 = vmand %vm190_vm0, %vm198_vm1  ;;  %v216_v32 = vsub.f32 1.0, %v3502_v28  ;;  %vm191_vm0 = vcmp.ge.f32.partialorder %v3321_v22, 0.0  ;;  %vm199_vm1 = vcmp.le.f32.partialorder %v3321_v22, 31.0 }
  0xf5   :  { %2726 = vmatmul.mubr.msk.bf16.gmra.mxu1 %vm837_vm8, %v3149_v60  ;;  %v407_v60 = vsel %vm375_vm14, %v3420_v54, 0.0  ;;  %vm456_vm14 = vcmp.eq.f32.partialorder %v2843_v4, %v3448_v14  ;;  %v3609_v54 = vadd.f32 %v3329_v59, %v3382_v44  ;;  %vm238_vm2 = vcmp.ge.f32.partialorder %v230_v41, 0.0 }
  0xf6   :  { %1557 = vmatprep.mubr.bf16.mxu1 %v4488_v1  ;;  %v3508_v38 = vadd.f32 %v479_v43, %v407_v60  ;;  %v488_v42 = vsel %vm456_vm14, %v3478_v25, 0.0  ;;  %v496_v60 = vsel %vm464_vm6, %v3478_v25, 0.0  ;;  %v3570_v43 = vadd.f32 %v480_v29, %v408_v57 }
  0xf7   :  { %v3588_v16 = vadd.f32 %v496_v60, %v424_v2  ;;  %vm400_vm14 = vcmp.eq.f32.partialorder %v2835_v56, %v3404_v15  ;;  %4535 = vst [vmem:[#allocation7_spill] sm:$0xff] %v3609_v54  ;;  %vm246_vm4 = vcmp.le.f32.partialorder %v230_v41, 31.0  ;;  %vm200_vm6 = vcmp.le.f32.partialorder %v3382_v44, 31.0 }
  0xf8   :  { %vm254_vm7 = vmand %vm238_vm2, %vm246_vm4  ;;  %v3642_v58 = vsel %vm3614_vm3, %v214_v47, 0.0  ;;  %v215_v2 = vsub.f32 1.0, %v3335_v37  ;;  %v231_v60 = vadd.f32 1.0, %v3321_v22  ;;  %v3696_v6 = vadd.f32 %v3329_v59, %v3321_v22 }
  0xf9   :  { %vm208_vm10 = vmand %vm192_vm5, %vm200_vm6  ;;  %v3645_v45 = vsel %vm254_vm7, %v3494_v26, 0.0  ;;  %vm193_vm7 = vcmp.ge.f32.partialorder %v3338_v63, 0.0 }
  0xfa   :  { %4538 = vst [vmem:[#allocation8_spill] sm:$0xff] %v3645_v45  ;;  %vm3685_vm3 = vmand %vm191_vm0, %vm199_vm1  ;;  %vm239_vm4 = vcmp.ge.f32.partialorder %v231_v60, 0.0  ;;  %vm247_vm5 = vcmp.le.f32.partialorder %v231_v60, 31.0  ;;  %vm378_vm6 = vcmp.eq.f32.partialorder %v2841_v62, %v3696_v6  ;;  %v3738_v60 = vadd.f32 1.0, %v3696_v6 }
  0xfb   :  { %2711 = vmatmul.mubr.msk.bf16.gmra.mxu0 %vm837_vm8, %v3188_v40  ;;  %v3709_v22 = vsel %vm3685_vm3, %v215_v2, 0.0 }
  0xfc   :  { %1374 = vmatprep.mubr.bf16.mxu0 %v4488_v1 }
  0xfd   :  { %2727 = vmatmul.mubr.msk.bf16.gmra.mxu1 %vm837_vm8, %v3188_v40  ;;  %v416_v40 = vsel %vm384_vm13, %v3474_v33, 0.0  ;;  %vm470_vm13 = vcmp.eq.f32.partialorder %v2835_v56, %v3398_v23  ;;  %v3599_v23 = vadd.f32 %v3329_v59, %v3379_v20  ;;  %v3625_v20 = vadd.f32 %v503_v13, %v431_v27 }
  0xfe   :  { %1567 = vmatprep.mubr.bf16.mxu1 %v4488_v1  ;;  %v3574_v21 = vadd.f32 %v488_v42, %v416_v40  ;;  %v502_v57 = vsel %vm470_vm13, %v3442_v8, 0.0  ;;  %v504_v42 = vsel %vm472_vm15, %v3478_v25, 0.0  ;;  %vm379_vm15 = vcmp.eq.f32.partialorder %v2841_v62, %v3609_v54 }
  0xff   :  { %v3619_v8 = vadd.f32 1.0, %v3599_v23  ;;  %v3627_v53 = vadd.f32 %v502_v57, %v430_v5  ;;  %vm377_vm11 = vcmp.eq.f32.partialorder %v2841_v62, %v3599_v23  ;;  %v3660_v25 = vadd.f32 1.0, %v3609_v54 }
 0x101   :  { %vm449_vm12 = vcmp.eq.f32.partialorder %v2841_v62, %v3619_v8  ;;  %4540 = vst [vmem:[#allocation10_spill] sm:$0xff] %v3660_v25  ;;  %vm451_vm2 = vcmp.eq.f32.partialorder %v2841_v62, %v3660_v25  ;;  %vm457_vm3 = vcmp.eq.f32.partialorder %v2843_v4, %v3619_v8 }
 0x102   :  { %v481_v13 = vsel %vm449_vm12, %v3645_v45, 0.0 }
 0x103   :  { %2712 = vmatmul.mubr.msk.bf16.gmra.mxu0 %vm837_vm8, %v3201_v9 }
 0x104   :  { %1384 = vmatprep.mubr.bf16.mxu0 %v4488_v1 }
 0x105   :  { %2728 = vmatmul.mubr.msk.bf16.gmra.mxu1 %vm837_vm8, %v3201_v9  ;;  %v232_v9 = vadd.f32 1.0, %v3382_v44  ;;  %v432_v44 = vsel %vm400_vm14, %v3474_v33, 0.0  ;;  %v3654_v33 = vsel %vm208_vm10, %v216_v32, 0.0  ;;  %vm201_vm10 = vcmp.le.f32.partialorder %v3338_v63, 31.0 }
 0x106   :  { %1577 = vmatprep.mubr.bf16.mxu1 %v4488_v1  ;;  %4539 = vst [vmem:[#allocation9_spill] sm:$0xff] %v3654_v33  ;;  %v3675_v27 = vadd.f32 %v504_v42, %v432_v44  ;;  %v411_v47 = vsel %vm379_vm15, %v3654_v33, 0.0 }
 0x107   :  { %vm240_vm9 = vcmp.ge.f32.partialorder %v232_v9, 0.0  ;;  %vm248_vm13 = vcmp.le.f32.partialorder %v232_v9, 31.0 }
 0x108   :  { %vm256_vm14 = vmand %vm240_vm9, %vm248_vm13 }
 0x109   :  { %v3665_v51 = vsel %vm256_vm14, %v3502_v28, 0.0  ;;  %v409_v28 = vsel %vm377_vm11, %v3642_v58, 0.0  ;;  %vm3724_vm9 = vmand %vm239_vm4, %vm247_vm5  ;;  %vm450_vm14 = vcmp.eq.f32.partialorder %v2841_v62, %v3738_v60  ;;  %vm387_vm4 = vcmp.eq.f32.partialorder %v2843_v4, %v3609_v54 }
 0x10a   :  { %4541 = vst [vmem:[#allocation11_spill] sm:$0xff] %v3665_v51  ;;  %vm3753_vm11 = vmand %vm193_vm7, %vm201_vm10  ;;  %vm2554_vm5 = vcmask 1041409   ;;  %vm386_vm7 = vcmp.eq.f32.partialorder %v2843_v4, %v3696_v6  ;;  %vm2556_vm10 = vcmask 1042434  }
 0x10b   :  { %v920_v29 = vpop.f32.mrf.mxu0  ;;  %2713 = vmatmul.mubr.msk.bf16.gmra.mxu0 %vm837_vm8, %v3212_v61 }
 0x10c   :  { %v1658_v40 = vmul.f32 %v920_v29, %v3506_v30  ;;  %1394 = vmatprep.mubr.bf16.mxu0 %v4488_v1 }
 0x10d   :  { %v922_v24 = vpop.f32.mrf.mxu0  ;;  %v1113_v15 = vpop.f32.mrf.mxu1  ;;  %2729 = vmatmul.mubr.msk.bf16.gmra.mxu1 %vm837_vm8, %v3212_v61 }
 0x10e   :  { %v1659_v14 = vmul.f32 %v922_v24, %v3510_v31  ;;  %v1660_v26 = vmul.f32 %v1113_v15, %v3508_v38  ;;  %1587 = vmatprep.mubr.bf16.mxu1 %v4488_v1 }
 0x10f   :  { %v924_v46 = vpop.f32.mrf.mxu0  ;;  %v1115_v61 = vpop.f32.mrf.mxu1 }
 0x110   :  { %v1666_v0 = vmul.f32 %v924_v46, %v3518_v35  ;;  %v1661_v34 = vmul.f32 %v1115_v61, %v3570_v43 }
 0x111   :  { %v926_v19 = vpop.f32.mrf.mxu0  ;;  %v1117_v9 = vpop.f32.mrf.mxu1 }
 0x112   :  { %v1914_v41 = vadd.f32 %v1666_v0, %v1658_v40  ;;  %v1667_v57 = vmul.f32 %v926_v19, %v3572_v18  ;;  %v1668_v29 = vmul.f32 %v1117_v9, %v3520_v36  ;;  %v483_v40 = vsel %vm451_vm2, %v3665_v51, 0.0 }
 0x113   :  { %v930_v32 = vpop.f32.mrf.mxu0  ;;  %2714 = vmatmul.mubr.msk.bf16.gmra.mxu0 %vm837_vm8, %v3223_v11  ;;  %v1119_v42 = vpop.f32.mrf.mxu1  ;;  %v3714_v0 = vadd.f32 %v481_v13, %v409_v28  ;;  %v3720_v2 = vadd.f32 %v483_v40, %v411_v47  ;;  %vm385_vm2 = vcmp.eq.f32.partialorder %v2843_v4, %v3599_v23 }
 0x114   :  { %v1923_v44 = vadd.f32 %v1667_v57, %v1659_v14  ;;  %v1674_v24 = vmul.f32 %v930_v32, %v3578_v39  ;;  %1404 = vmatprep.mubr.bf16.mxu0 %v4488_v1  ;;  %v1932_v15 = vadd.f32 %v1668_v29, %v1660_v26  ;;  %v1669_v46 = vmul.f32 %v1119_v42, %v3574_v21 }
 0x115   :  { %v932_v61 = vpop.f32.mrf.mxu0  ;;  %4544 = vst [vmem:[#allocation12_spill] sm:$0xff] %v3714_v0  ;;  %v1123_v19 = vpop.f32.mrf.mxu1  ;;  %2730 = vmatmul.mubr.msk.bf16.gmra.mxu1 %vm837_vm8, %v3223_v11  ;;  %4545 = vst [vmem:[#allocation13_spill] sm:$0xff] %v3720_v2  ;;  %v3735_v11 = vsel %vm378_vm6, %v3709_v22, 0.0  ;;  %v233_v29 = vadd.f32 1.0, %v3338_v63  ;;  %vm459_vm6 = vcmp.eq.f32.partialorder %v2843_v4, %v3660_v25 }
 0x116   :  { %v1915_v14 = vadd.f32 %v1914_v41, %v1674_v24  ;;  %v1675_v5 = vmul.f32 %v932_v61, %v3582_v50  ;;  %v1941_v28 = vadd.f32 %v1669_v46, %v1661_v34  ;;  %v1676_v13 = vmul.f32 %v1123_v19, %v3580_v48  ;;  %1597 = vmatprep.mubr.bf16.mxu1 %v4488_v1 }
 0x117   :  { %v934_v41 = vpop.f32.mrf.mxu0  ;;  %v1125_v57 = vpop.f32.mrf.mxu1  ;;  %v217_v34 = vsub.f32 1.0, %v3490_v49  ;;  %v3747_v24 = vsel %vm3724_vm9, %v3335_v37, 0.0  ;;  %v3759_v46 = vadd.f32 %v3329_v59, %v3338_v63  ;;  %vm241_vm12 = vcmp.ge.f32.partialorder %v233_v29, 0.0 }
 0x118   :  { %v1924_v9 = vadd.f32 %v1923_v44, %v1675_v5  ;;  %v1682_v47 = vmul.f32 %v934_v41, %v3590_v17  ;;  %v1933_v32 = vadd.f32 %v1932_v15, %v1676_v13  ;;  %v1677_v40 = vmul.f32 %v1125_v57, %v3588_v16 }
 0x119   :  { %v936_v42 = vpop.f32.mrf.mxu0  ;;  %4550 = vst [vmem:[#allocation14_spill] sm:$0xff] %v3759_v46  ;;  %v1127_v61 = vpop.f32.mrf.mxu1  ;;  %vm249_vm13 = vcmp.le.f32.partialorder %v233_v29, 31.0  ;;  %v3768_v59 = vadd.f32 1.0, %v3759_v46  ;;  %vm380_vm0 = vcmp.eq.f32.partialorder %v2841_v62, %v3759_v46  ;;  %vm458_vm9 = vcmp.eq.f32.partialorder %v2843_v4, %v3738_v60 }
 0x11a   :  { %v1916_v15 = vadd.f32 %v1915_v14, %v1682_v47  ;;  %v1683_v19 = vmul.f32 %v936_v42, %v3627_v53  ;;  %v1942_v37 = vadd.f32 %v1941_v28, %v1677_v40  ;;  %v1684_v5 = vmul.f32 %v1127_v61, %v3625_v20  ;;  %vm257_vm15 = vmand %vm241_vm12, %vm249_vm13 }
 0x11b   :  { %v940_v26 = vpop.f32.mrf.mxu0  ;;  %2715 = vmatmul.mubr.msk.bf16.gmra.mxu0 %vm837_vm8, %v3234_v7  ;;  %4551 = vst [vmem:[#allocation15_spill] sm:$0xff] %v3768_v59  ;;  %v1129_v13 = vpop.f32.mrf.mxu1  ;;  %v3774_v28 = vsel %vm3753_vm11, %v217_v34, 0.0  ;;  %v3778_v40 = vsel %vm257_vm15, %v3490_v49, 0.0  ;;  %vm452_vm1 = vcmp.eq.f32.partialorder %v2841_v62, %v3768_v59 }
 0x11c   :  { %v1917_v63 = vrot.slane %v1916_v15, 4  ;;  %v1925_v14 = vadd.f32 %v1924_v9, %v1683_v19  ;;  %v1690_v41 = vmul.f32 %v940_v26, %v3506_v30  ;;  %1414 = vmatprep.mubr.bf16.mxu0 %v4488_v1  ;;  %4552 = vst [vmem:[#allocation16_spill] sm:$0xff] %v3774_v28  ;;  %v1934_v57 = vadd.f32 %v1933_v32, %v1684_v5 }
 0x11d   :  { %v1685_v47 = vmul.f32 %v1129_v13, %v3675_v27  ;;  %v942_v29 = vpop.f32.mrf.mxu0  ;;  %4553 = vst [vmem:[#allocation17_spill] sm:$0xff] %v3778_v40  ;;  %v1133_v61 = vpop.f32.mrf.mxu1  ;;  %2731 = vmatmul.mubr.msk.bf16.gmra.mxu1 %vm837_vm8, %v3234_v7 }
 0x11e   :  { %v1918_v9 = vadd.f32 %v1917_v63, %v1916_v15  ;;  %v1926_v42 = vrot.slane %v1925_v14, 4  ;;  %v1691_v44 = vmul.f32 %v942_v29, %v3510_v31  ;;  %v1935_v34 = vrot.slane %v1934_v57, 4  ;;  %1607 = vmatprep.mubr.bf16.mxu1 %v4488_v1 }
 0x11f   :  { %v1943_v32 = vadd.f32 %v1942_v37, %v1685_v47  ;;  %v1692_v19 = vmul.f32 %v1133_v61, %v3508_v38  ;;  %v944_v49 = vpop.f32.mrf.mxu0  ;;  %v482_v15 = vsel %vm450_vm14, %v3747_v24, 0.0  ;;  %v1135_v7 = vpop.f32.mrf.mxu1  ;;  %v412_v37 = vsel %vm380_vm0, %v3774_v28, 0.0 }
 0x120   :  { %v1919_v5 = vrot.slane %v1918_v9, 2  ;;  %v1927_v26 = vadd.f32 %v1926_v42, %v1925_v14  ;;  %v1698_v63 = vmul.f32 %v944_v49, %v3518_v35  ;;  %v1936_v13 = vadd.f32 %v1935_v34, %v1934_v57 }
 0x121   :  { %v1944_v47 = vrot.slane %v1943_v32, 4  ;;  %v1693_v29 = vmul.f32 %v1135_v7, %v3570_v43  ;;  %v946_v61 = vpop.f32.mrf.mxu0  ;;  %v484_v1 = vsel %vm452_vm1, %v3778_v40, 0.0  ;;  %v1137_v0 = vpop.f32.mrf.mxu1  ;;  %vm2558_vm14 = vcmask 1043459  }
 0x122   :  { %v1920_v2 = vadd.f32 %v1919_v5, %v1918_v9  ;;  %v1928_v14 = vrot.slane %v1927_v26, 2  ;;  %v1986_v42 = vadd.f32 %v1698_v63, %v1690_v41  ;;  %v1699_v49 = vmul.f32 %v946_v61, %v3572_v18 }
 0x123   :  { %v1937_v56 = vrot.slane %v1936_v13, 2  ;;  %v1945_v55 = vadd.f32 %v1944_v47, %v1943_v32  ;;  %v1700_v28 = vmul.f32 %v1137_v0, %v3520_v36  ;;  %v950_v57 = vpop.f32.mrf.mxu0  ;;  %2716 = vmatmul.mubr.msk.bf16.gmra.mxu0 %vm837_vm8, %v3245_v3  ;;  %v1139_v9 = vpop.f32.mrf.mxu1  ;;  %v4554_v5 = vmov 0  }
 0x124   :  { %v1921_v34 = vrot.slane %v1920_v2, 1  ;;  %v1929_v62 = vadd.f32 %v1928_v14, %v1927_v26  ;;  %v1995_v7 = vadd.f32 %v1699_v49, %v1691_v44  ;;  %v1706_v41 = vmul.f32 %v950_v57, %v3578_v39  ;;  %1424 = vmatprep.mubr.bf16.mxu0 %v4554_v5 }
 0x125   :  { %v1938_v63 = vadd.f32 %v1937_v56, %v1936_v13  ;;  %v1946_v61 = vrot.slane %v1945_v55, 2  ;;  %v2004_v32 = vadd.f32 %v1700_v28, %v1692_v19  ;;  %v1701_v0 = vmul.f32 %v1139_v9, %v3574_v21  ;;  %v952_v47 = vpop.f32.mrf.mxu0  ;;  %v1143_v46 = vpop.f32.mrf.mxu1  ;;  %2732 = vmatmul.mubr.msk.bf16.gmra.mxu1 %vm837_vm8, %v3245_v3 }
 0x126   :  { %v1930_v40 = vrot.slane %v1929_v62, 1  ;;  %v1987_v59 = vadd.f32 %v1986_v42, %v1706_v41  ;;  %v1707_v26 = vmul.f32 %v952_v47, %v3582_v50  ;;  %v1708_v56 = vmul.f32 %v1143_v46, %v3580_v48  ;;  %1617 = vmatprep.mubr.bf16.mxu1 %v4554_v5 }
 0x127   :  { %v1939_v44 = vrot.slane %v1938_v63, 1  ;;  %v1947_v14 = vadd.f32 %v1946_v61, %v1945_v55  ;;  %v2013_v49 = vadd.f32 %v1701_v0, %v1693_v29  ;;  %v954_v28 = vpop.f32.mrf.mxu0  ;;  %v1145_v13 = vpop.f32.mrf.mxu1  ;;  %v3821_v57 = vadd.f32 %v482_v15, %v3735_v11 }
 0x128   :  { %v1996_v19 = vadd.f32 %v1995_v7, %v1707_v26  ;;  %v1714_v42 = vmul.f32 %v954_v28, %v3590_v17  ;;  %v3823_v3 = vadd.f32 %v484_v1, %v412_v37  ;;  %v3825_v9 = vadd.f32 %v1921_v34, %v1920_v2 }
 0x129   :  { %4555 = vst [vmem:[#allocation18_spill] sm:$0xff] %v3821_v57  ;;  %v2005_v41 = vadd.f32 %v2004_v32, %v1708_v56  ;;  %v1709_v55 = vmul.f32 %v1145_v13, %v3588_v16  ;;  %v956_v29 = vpop.f32.mrf.mxu0  ;;  %v417_v46 = vsel %vm385_vm2, %v3642_v58, 0.0  ;;  %v1948_v7 = vrot.slane %v1947_v14, 1  ;;  %v1147_v0 = vpop.f32.mrf.mxu1 }
 0x12a   :  { %4556 = vst [vmem:[#allocation19_spill] sm:$0xff] %v3823_v3  ;;  %v1988_v61 = vadd.f32 %v1987_v59, %v1714_v42  ;;  %v1715_v47 = vmul.f32 %v956_v29, %v3627_v53  ;;  %v489_v1 = vsel %vm457_vm3, %v3645_v45, 0.0  ;;  %v3837_v2 = vadd.f32 %v1939_v44, %v1938_v63 }
 0x12b   :  { %v3839_v11 = vadd.f32 %v1930_v40, %v1929_v62  ;;  %v2014_v15 = vadd.f32 %v2013_v49, %v1709_v55  ;;  %v1716_v37 = vmul.f32 %v1147_v0, %v3625_v20  ;;  %v960_v34 = vpop.f32.mrf.mxu0  ;;  %2717 = vmatmul.mubr.msk.bf16.gmra.mxu0 %vm837_vm8, %v3256_v10  ;;  %v1149_v26 = vpop.f32.mrf.mxu1  ;;  %v3849_v44 = vadd.f32 %v489_v1, %v417_v46 }
 0x12c   :  { %v1989_v59 = vrot.slane %v1988_v61, 4  ;;  %v1997_v32 = vadd.f32 %v1996_v19, %v1715_v47  ;;  %v1722_v56 = vmul.f32 %v960_v34, %v3506_v30  ;;  %1434 = vmatprep.mubr.bf16.mxu0 %v4554_v5  ;;  %v1717_v62 = vmul.f32 %v1149_v26, %v3675_v27 }
 0x12d   :  { %v2006_v40 = vadd.f32 %v2005_v41, %v1716_v37  ;;  %v962_v63 = vpop.f32.mrf.mxu0  ;;  %4557 = vst [vmem:[#allocation20_spill] sm:$0xff] %v3849_v44  ;;  %v3853_v49 = vadd.f32 %v1948_v7, %v1947_v14  ;;  %v1153_v13 = vpop.f32.mrf.mxu1  ;;  %2733 = vmatmul.mubr.msk.bf16.gmra.mxu1 %vm837_vm8, %v3256_v10  ;;  %v3864_v14 = vsel %vm387_vm4, %v3654_v33, 0.0  ;;  %v3871_v47 = vsel %vm459_vm6, %v3665_v51, 0.0 }
 0x12e   :  { %v1990_v28 = vadd.f32 %v1989_v59, %v1988_v61  ;;  %v1998_v19 = vrot.slane %v1997_v32, 4  ;;  %v1723_v42 = vmul.f32 %v962_v63, %v3510_v31  ;;  %v2015_v41 = vadd.f32 %v2014_v15, %v1717_v62  ;;  %1627 = vmatprep.mubr.bf16.mxu1 %v4554_v5 }
 0x12f   :  { %v2007_v55 = vrot.slane %v2006_v40, 4  ;;  %v1724_v29 = vmul.f32 %v1153_v13, %v3508_v38  ;;  %v964_v0 = vpop.f32.mrf.mxu0  ;;  %v1155_v61 = vpop.f32.mrf.mxu1  ;;  %vm2560_vm3 = vcmask 1044484  }
 0x130   :  { %v1991_v46 = vrot.slane %v1990_v28, 2  ;;  %v1999_v7 = vadd.f32 %v1998_v19, %v1997_v32  ;;  %v1730_v10 = vmul.f32 %v964_v0, %v3518_v35  ;;  %v2016_v15 = vrot.slane %v2015_v41, 4 }
 0x131   :  { %v2008_v1 = vadd.f32 %v2007_v55, %v2006_v40  ;;  %v1725_v37 = vmul.f32 %v1155_v61, %v3570_v43  ;;  %v966_v34 = vpop.f32.mrf.mxu0  ;;  %v1157_v62 = vpop.f32.mrf.mxu1 }
 0x132   :  { %v1992_v59 = vadd.f32 %v1991_v46, %v1990_v28  ;;  %v2000_v26 = vrot.slane %v1999_v7, 2  ;;  %v2058_v32 = vadd.f32 %v1730_v10, %v1722_v56  ;;  %v1731_v63 = vmul.f32 %v966_v34, %v3572_v18 }
 0x133   :  { %v2009_v19 = vrot.slane %v2008_v1, 2  ;;  %v2017_v13 = vadd.f32 %v2016_v15, %v2015_v41  ;;  %v1732_v0 = vmul.f32 %v1157_v62, %v3520_v36  ;;  %v970_v3 = vpop.f32.mrf.mxu0  ;;  %2718 = vmatmul.mubr.msk.bf16.gmra.mxu0 %vm837_vm8, %v3267_v12  ;;  %v1159_v28 = vpop.f32.mrf.mxu1 }
 0x134   :  { %v1993_v40 = vrot.slane %v1992_v59, 1  ;;  %v2001_v55 = vadd.f32 %v2000_v26, %v1999_v7  ;;  %v2067_v61 = vadd.f32 %v1731_v63, %v1723_v42  ;;  %v1738_v56 = vmul.f32 %v970_v3, %v3578_v39  ;;  %1444 = vmatprep.mubr.bf16.mxu0 %v4554_v5 }
 0x135   :  { %v2010_v46 = vadd.f32 %v2009_v19, %v2008_v1  ;;  %v2018_v10 = vrot.slane %v2017_v13, 2  ;;  %v2076_v41 = vadd.f32 %v1732_v0, %v1724_v29  ;;  %v1733_v15 = vmul.f32 %v1159_v28, %v3574_v21  ;;  %v972_v34 = vpop.f32.mrf.mxu0  ;;  %v1163_v51 = vpop.f32.mrf.mxu1  ;;  %2734 = vmatmul.mubr.msk.bf16.gmra.mxu1 %vm837_vm8, %v3267_v12 }
 0x136   :  { %v1994_v62 = vadd.f32 %v1993_v40, %v1992_v59  ;;  %v2002_v44 = vrot.slane %v2001_v55, 1  ;;  %v2059_v57 = vadd.f32 %v2058_v32, %v1738_v56  ;;  %v1739_v42 = vmul.f32 %v972_v34, %v3582_v50  ;;  %1637 = vmatprep.mubr.bf16.mxu1 %v4554_v5 }
 0x137   :  { %v2011_v7 = vrot.slane %v2010_v46, 1  ;;  %v2019_v26 = vadd.f32 %v2018_v10, %v2017_v13  ;;  %v2085_v3 = vadd.f32 %v1733_v15, %v1725_v37  ;;  %v1740_v63 = vmul.f32 %v1163_v51, %v3580_v48  ;;  %v974_v1 = vpop.f32.mrf.mxu0  ;;  %v1165_v19 = vpop.f32.mrf.mxu1 }
 0x138   :  { %v3892_v29 = vsel %vm2554_vm5, %v1994_v62, %v3825_v9  ;;  %v2003_v59 = vadd.f32 %v2002_v44, %v2001_v55  ;;  %v2068_v32 = vadd.f32 %v2067_v61, %v1739_v42  ;;  %v1746_v0 = vmul.f32 %v974_v1, %v3590_v17 }
 0x139   :  { %v2012_v12 = vadd.f32 %v2011_v7, %v2010_v46  ;;  %v2020_v40 = vrot.slane %v2019_v26, 1  ;;  %v2077_v28 = vadd.f32 %v2076_v41, %v1740_v63  ;;  %v1741_v13 = vmul.f32 %v1165_v19, %v3588_v16  ;;  %v976_v37 = vpop.f32.mrf.mxu0  ;;  %v1167_v10 = vpop.f32.mrf.mxu1  ;;  %v4558_v63 = vld [vmem:[#allocation14_spill] sm:$0xff] }
 0x13a   :  { %v3898_v51 = vsel %vm2554_vm5, %v2003_v59, %v3839_v11  ;;  %v2060_v56 = vadd.f32 %v2059_v57, %v1746_v0  ;;  %v1747_v9 = vmul.f32 %v976_v37, %v3627_v53  ;;  %v418_v44 = vsel %vm386_vm7, %v3709_v22, 0.0 }
 0x13b   :  { %v3907_v55 = vsel %vm2554_vm5, %v2012_v12, %v3837_v2  ;;  %v2021_v61 = vadd.f32 %v2020_v40, %v2019_v26  ;;  %v2086_v46 = vadd.f32 %v2085_v3, %v1741_v13  ;;  %v1748_v41 = vmul.f32 %v1167_v10, %v3625_v20  ;;  %v980_v15 = vpop.f32.mrf.mxu0  ;;  %2719 = vmatmul.mubr.msk.bf16.gmra.mxu0 %vm837_vm8, %v3278_v52  ;;  %v1169_v34 = vpop.f32.mrf.mxu1 }
 0x13c   :  { %v2061_v57 = vrot.slane %v2060_v56, 4  ;;  %v2069_v11 = vadd.f32 %v2068_v32, %v1747_v9  ;;  %v1754_v62 = vmul.f32 %v980_v15, %v3506_v30  ;;  %1454 = vmatprep.mubr.bf16.mxu0 %v4554_v5  ;;  %v490_v2 = vsel %vm458_vm9, %v3747_v24, 0.0  ;;  %v4561_v9 = vld [vmem:[#allocation16_spill] sm:$0xff]  ;;  %v4563_v15 = vld [vmem:[#allocation15_spill] sm:$0xff] }
 0x13d   :  { %v3920_v42 = vsel %vm2554_vm5, %v2021_v61, %v3853_v49  ;;  %v2078_v7 = vadd.f32 %v2077_v28, %v1748_v41  ;;  %v1749_v26 = vmul.f32 %v1169_v34, %v3675_v27  ;;  %v982_v3 = vpop.f32.mrf.mxu0  ;;  %vm388_vm11 = vcmp.eq.f32.partialorder %v2843_v4, %v4558_v63  ;;  %v1173_v32 = vpop.f32.mrf.mxu1  ;;  %2735 = vmatmul.mubr.msk.bf16.gmra.mxu1 %vm837_vm8, %v3278_v52 }
 0x13e   :  { %v2062_v1 = vadd.f32 %v2061_v57, %v2060_v56  ;;  %v2070_v59 = vrot.slane %v2069_v11, 4  ;;  %v1755_v19 = vmul.f32 %v982_v3, %v3510_v31  ;;  %v3930_v49 = vadd.f32 %v3871_v47, %v3864_v14  ;;  %1647 = vmatprep.mubr.bf16.mxu1 %v4554_v5 }
 0x13f   :  { %v2079_v0 = vrot.slane %v2078_v7, 4  ;;  %v2087_v12 = vadd.f32 %v2086_v46, %v1749_v26  ;;  %v1756_v40 = vmul.f32 %v1173_v32, %v3508_v38  ;;  %v984_v28 = vpop.f32.mrf.mxu0  ;;  %v3934_v13 = vadd.f32 %v490_v2, %v418_v44  ;;  %v1175_v10 = vpop.f32.mrf.mxu1  ;;  %v4564_v32 = vld [vmem:[#allocation5_spill] sm:$0xff] }
 0x140   :  { %4559 = vst [vmem:[#allocation21_spill] sm:$0xff] %v3930_v49  ;;  %v2063_v37 = vrot.slane %v2062_v1, 2  ;;  %v2071_v56 = vadd.f32 %v2070_v59, %v2069_v11  ;;  %v1762_v52 = vmul.f32 %v984_v28, %v3518_v35  ;;  %v3941_v14 = vsel %vm388_vm11, %v4561_v9, 0.0 }
 0x141   :  { %4560 = vst [vmem:[#allocation22_spill] sm:$0xff] %v3934_v13  ;;  %4562 = vst [vmem:[#allocation23_spill] sm:$0xff] %v3941_v14  ;;  %v2080_v47 = vadd.f32 %v2079_v0, %v2078_v7  ;;  %v2088_v61 = vrot.slane %v2087_v12, 4  ;;  %v1757_v46 = vmul.f32 %v1175_v10, %v3570_v43  ;;  %v986_v41 = vpop.f32.mrf.mxu0  ;;  %vm460_vm12 = vcmp.eq.f32.partialorder %v2843_v4, %v4563_v15  ;;  %v1177_v11 = vpop.f32.mrf.mxu1  ;;  %v2755_v7 = vld [vmem:[%s4486_s1 + $0x78] sm:$0xff]  }
 0x142   :  { %v2064_v5 = vadd.f32 %v2063_v37, %v2062_v1  ;;  %v2072_v44 = vrot.slane %v2071_v56, 2  ;;  %v2130_v57 = vadd.f32 %v1762_v52, %v1754_v62  ;;  %v1763_v34 = vmul.f32 %v986_v41, %v3572_v18 }
 0x143   :  { %v2081_v2 = vrot.slane %v2080_v47, 2  ;;  %v2089_v26 = vadd.f32 %v2088_v61, %v2087_v12  ;;  %v1764_v3 = vmul.f32 %v1177_v11, %v3520_v36  ;;  %v990_v59 = vpop.f32.mrf.mxu0  ;;  %2720 = vmatmul.mubr.msk.bf16.gmra.mxu0 %vm837_vm8, %v2755_v7  ;;  %vm393_vm13 = vcmp.eq.f32.partialorder %v4564_v32, %v3599_v23  ;;  %v1179_v28 = vpop.f32.mrf.mxu1 }
 0x144   :  { %v2065_v1 = vrot.slane %v2064_v5, 1  ;;  %v2073_v0 = vadd.f32 %v2072_v44, %v2071_v56  ;;  %v2139_v62 = vadd.f32 %v1763_v34, %v1755_v19  ;;  %v1770_v37 = vmul.f32 %v990_v59, %v3578_v39 }
 0x145   :  { %v2082_v10 = vadd.f32 %v2081_v2, %v2080_v47  ;;  %v2090_v12 = vrot.slane %v2089_v26, 2  ;;  %v2148_v52 = vadd.f32 %v1764_v3, %v1756_v40  ;;  %v1765_v61 = vmul.f32 %v1179_v28, %v3574_v21  ;;  %v992_v41 = vpop.f32.mrf.mxu0  ;;  %v1183_v9 = vpop.f32.mrf.mxu1  ;;  %2736 = vmatmul.mubr.msk.bf16.gmra.mxu1 %vm837_vm8, %v2755_v7 }
 0x146   :  { %v2066_v11 = vadd.f32 %v2065_v1, %v2064_v5  ;;  %v2074_v49 = vrot.slane %v2073_v0, 1  ;;  %v2131_v13 = vadd.f32 %v2130_v57, %v1770_v37  ;;  %v1771_v63 = vmul.f32 %v992_v41, %v3582_v50 }
 0x147   :  { %v2083_v14 = vrot.slane %v2082_v10, 1  ;;  %v2091_v56 = vadd.f32 %v2090_v12, %v2089_v26  ;;  %v2157_v19 = vadd.f32 %v1765_v61, %v1757_v46  ;;  %v1772_v44 = vmul.f32 %v1183_v9, %v3580_v48  ;;  %v994_v34 = vpop.f32.mrf.mxu0  ;;  %v1185_v5 = vpop.f32.mrf.mxu1  ;;  %v4565_v12 = vld [vmem:[#allocation17_spill] sm:$0xff] }
 0x148   :  { %v3961_v40 = vsel %vm2556_vm10, %v2066_v11, %v3892_v29  ;;  %v2075_v47 = vadd.f32 %v2074_v49, %v2073_v0  ;;  %v2140_v2 = vadd.f32 %v2139_v62, %v1771_v63  ;;  %v1778_v57 = vmul.f32 %v994_v34, %v3590_v17 }
 0x149   :  { %v2084_v3 = vadd.f32 %v2083_v14, %v2082_v10  ;;  %v2092_v59 = vrot.slane %v2091_v56, 1  ;;  %v2149_v7 = vadd.f32 %v2148_v52, %v1772_v44  ;;  %v1773_v1 = vmul.f32 %v1185_v5, %v3588_v16  ;;  %v996_v28 = vpop.f32.mrf.mxu0  ;;  %v1187_v26 = vpop.f32.mrf.mxu1 }
 0x14a   :  { %v3967_v46 = vsel %vm2556_vm10, %v2075_v47, %v3898_v51  ;;  %v2132_v9 = vadd.f32 %v2131_v13, %v1778_v57  ;;  %v1779_v29 = vmul.f32 %v996_v28, %v3627_v53  ;;  %vm465_vm8 = vcmp.eq.f32.partialorder %v4564_v32, %v3619_v8 }
 0x14b   :  { %v3974_v63 = vsel %vm2556_vm10, %v2084_v3, %v3907_v55  ;;  %v2093_v49 = vadd.f32 %v2092_v59, %v2091_v56  ;;  %v2158_v14 = vadd.f32 %v2157_v19, %v1773_v1  ;;  %v1780_v0 = vmul.f32 %v1187_v26, %v3625_v20  ;;  %v1000_v62 = vpop.f32.mrf.mxu0  ;;  %v1189_v51 = vpop.f32.mrf.mxu1 }
 0x14c   :  { %v2133_v37 = vrot.slane %v2132_v9, 4  ;;  %v2141_v10 = vadd.f32 %v2140_v2, %v1779_v29  ;;  %v3981_v13 = vsel %vm460_vm12, %v4565_v12, 0.0  ;;  %v3987_v55 = vsel %vm393_vm13, %v3642_v58, 0.0 }
 0x14d   :  { %v3991_v52 = vsel %vm2556_vm10, %v2093_v49, %v3920_v42  ;;  %v2150_v61 = vadd.f32 %v2149_v7, %v1780_v0  ;;  %v1781_v41 = vmul.f32 %v1189_v51, %v3675_v27  ;;  %v1002_v11 = vpop.f32.mrf.mxu0  ;;  %vm395_vm15 = vcmp.eq.f32.partialorder %v4564_v32, %v3609_v54  ;;  %v1193_v44 = vpop.f32.mrf.mxu1  ;;  %v4566_v49 = vld [vmem:[#allocation11_spill] sm:$0xff] }
 0x14e   :  { %v2134_v4 = vadd.f32 %v2133_v37, %v2132_v9  ;;  %v2142_v56 = vrot.slane %v2141_v10, 4  ;;  %v1786_v19 = vmul.f32 %v1000_v62, %v3506_v30  ;;  %v4001_v34 = vsel %vm465_vm8, %v3645_v45, 0.0 }
 0x14f   :  { %v2151_v42 = vrot.slane %v2150_v61, 4  ;;  %v2159_v47 = vadd.f32 %v2158_v14, %v1781_v41  ;;  %v1787_v2 = vmul.f32 %v1002_v11, %v3510_v31  ;;  %v1004_v5 = vpop.f32.mrf.mxu0  ;;  %vm467_vm0 = vcmp.eq.f32.partialorder %v4564_v32, %v3660_v25  ;;  %v1195_v59 = vpop.f32.mrf.mxu1 }
 0x150   :  { %v2135_v57 = vrot.slane %v2134_v4, 2  ;;  %v2143_v3 = vadd.f32 %v2142_v56, %v2141_v10  ;;  %v1794_v7 = vmul.f32 %v1004_v5, %v3518_v35  ;;  %v4008_v1 = vsel %vm395_vm15, %v3654_v33, 0.0 }
 0x151   :  { %v2152_v28 = vadd.f32 %v2151_v42, %v2150_v61  ;;  %v2160_v9 = vrot.slane %v2159_v47, 4  ;;  %v1788_v26 = vmul.f32 %v1193_v44, %v3508_v38  ;;  %v1006_v29 = vpop.f32.mrf.mxu0  ;;  %v4012_v14 = vsel %vm467_vm0, %v4566_v49, 0.0  ;;  %v1197_v51 = vpop.f32.mrf.mxu1 }
 0x152   :  { %v2136_v0 = vadd.f32 %v2135_v57, %v2134_v4  ;;  %v2144_v62 = vrot.slane %v2143_v3, 2  ;;  %v1789_v37 = vmul.f32 %v1195_v59, %v3570_v43  ;;  %v1795_v10 = vmul.f32 %v1006_v29, %v3572_v18 }
 0x153   :  { %v2153_v41 = vrot.slane %v2152_v28, 2  ;;  %v2161_v11 = vadd.f32 %v2160_v9, %v2159_v47  ;;  %v2202_v56 = vadd.f32 %v1794_v7, %v1786_v19  ;;  %v1796_v5 = vmul.f32 %v1197_v51, %v3520_v36  ;;  %v1010_v61 = vpop.f32.mrf.mxu0  ;;  %v1199_v44 = vpop.f32.mrf.mxu1 }
 0x154   :  { %v2137_v42 = vrot.slane %v2136_v0, 1  ;;  %v2145_v33 = vadd.f32 %v2144_v62, %v2143_v3  ;;  %v1802_v25 = vmul.f32 %v1010_v61, %v3578_v39  ;;  %vm394_vm1 = vcmp.eq.f32.partialorder %v4564_v32, %v3696_v6 }
 0x155   :  { %v2154_v4 = vadd.f32 %v2153_v41, %v2152_v28  ;;  %v2162_v57 = vrot.slane %v2161_v11, 2  ;;  %v2211_v59 = vadd.f32 %v1795_v10, %v1787_v2  ;;  %v1797_v49 = vmul.f32 %v1199_v44, %v3574_v21  ;;  %v1012_v29 = vpop.f32.mrf.mxu0  ;;  %v1203_v7 = vpop.f32.mrf.mxu1 }
 0x156   :  { %v2138_v54 = vadd.f32 %v2137_v42, %v2136_v0  ;;  %v2146_v47 = vrot.slane %v2145_v33, 1  ;;  %v2220_v19 = vadd.f32 %v1796_v5, %v1788_v26  ;;  %v1803_v9 = vmul.f32 %v1012_v29, %v3582_v50 }
 0x157   :  { %v2155_v51 = vrot.slane %v2154_v4, 1  ;;  %v2163_v3 = vadd.f32 %v2162_v57, %v2161_v11  ;;  %v2203_v62 = vadd.f32 %v2202_v56, %v1802_v25  ;;  %v1804_v61 = vmul.f32 %v1203_v7, %v3580_v48  ;;  %v1014_v45 = vpop.f32.mrf.mxu0  ;;  %v1205_v41 = vpop.f32.mrf.mxu1 }
 0x158   :  { %v4025_v28 = vsel %vm2558_vm14, %v2138_v54, %v3961_v40  ;;  %v2147_v2 = vadd.f32 %v2146_v47, %v2145_v33  ;;  %v2229_v10 = vadd.f32 %v1797_v49, %v1789_v37  ;;  %v1810_v0 = vmul.f32 %v1014_v45, %v3590_v17 }
 0x159   :  { %v2156_v42 = vadd.f32 %v2155_v51, %v2154_v4  ;;  %v2164_v26 = vrot.slane %v2163_v3, 1  ;;  %v2212_v5 = vadd.f32 %v2211_v59, %v1803_v9  ;;  %v1805_v44 = vmul.f32 %v1205_v41, %v3588_v16  ;;  %v1016_v29 = vpop.f32.mrf.mxu0  ;;  %v1207_v57 = vpop.f32.mrf.mxu1 }
 0x15a   :  { %v4031_v25 = vsel %vm2558_vm14, %v2147_v2, %v3967_v46  ;;  %v2221_v11 = vadd.f32 %v2220_v19, %v1804_v61  ;;  %v2204_v56 = vadd.f32 %v2203_v62, %v1810_v0  ;;  %v1811_v54 = vmul.f32 %v1016_v29, %v3627_v53  ;;  %v4567_v2 = vld [vmem:[#allocation23_spill] sm:$0xff] }
 0x15b   :  { %v4036_v33 = vsel %vm2558_vm14, %v2156_v42, %v3974_v63  ;;  %v2165_v45 = vadd.f32 %v2164_v26, %v2163_v3  ;;  %v1812_v40 = vmul.f32 %v1207_v57, %v3625_v20  ;;  %v1020_v49 = vpop.f32.mrf.mxu0  ;;  %v426_v37 = vsel %vm394_vm1, %v3709_v22, 0.0  ;;  %v1209_v47 = vpop.f32.mrf.mxu1 }
 0x15c   :  { %v2230_v46 = vadd.f32 %v2229_v10, %v1805_v44  ;;  %v2205_v4 = vrot.slane %v2204_v56, 4  ;;  %v2213_v59 = vadd.f32 %v2212_v5, %v1811_v54  ;;  %vm466_vm2 = vcmp.eq.f32.partialorder %v4564_v32, %v3738_v60 }
 0x15d   :  { %v4047_v63 = vsel %vm2558_vm14, %v2165_v45, %v3991_v52  ;;  %v2222_v19 = vadd.f32 %v2221_v11, %v1812_v40  ;;  %v1813_v7 = vmul.f32 %v1209_v47, %v3675_v27  ;;  %v1022_v9 = vpop.f32.mrf.mxu0  ;;  %v498_v51 = vsel %vm466_vm2, %v3747_v24, 0.0  ;;  %v1213_v61 = vpop.f32.mrf.mxu1 }
 0x15e   :  { %v2206_v3 = vadd.f32 %v2205_v4, %v2204_v56  ;;  %v2214_v62 = vrot.slane %v2213_v59, 4  ;;  %v4053_v10 = vadd.f32 %v3981_v13, %v4567_v2  ;;  %v4057_v41 = vadd.f32 %v4001_v34, %v3987_v55 }
 0x15f   :  { %v2223_v52 = vrot.slane %v2222_v19, 4  ;;  %v2231_v0 = vadd.f32 %v2230_v46, %v1813_v7  ;;  %v1818_v42 = vmul.f32 %v1020_v49, %v3506_v30  ;;  %v1024_v26 = vpop.f32.mrf.mxu0  ;;  %v4062_v5 = vadd.f32 %v4012_v14, %v4008_v1  ;;  %v1215_v56 = vpop.f32.mrf.mxu1  ;;  %v4572_v14 = vld [vmem:[#allocation14_spill] sm:$0xff] }
 0x160   :  { %4568 = vst [vmem:[#allocation15_spill] sm:$0xff] %v4053_v10  ;;  %4569 = vst [vmem:[#allocation5_spill] sm:$0xff] %v4057_v41  ;;  %v2207_v44 = vrot.slane %v2206_v3, 2  ;;  %v2215_v29 = vadd.f32 %v2214_v62, %v2213_v59  ;;  %v1819_v11 = vmul.f32 %v1022_v9, %v3510_v31  ;;  %v4065_v13 = vadd.f32 %v498_v51, %v426_v37 }
 0x161   :  { %4570 = vst [vmem:[#allocation23_spill] sm:$0xff] %v4062_v5  ;;  %v2224_v57 = vadd.f32 %v2223_v52, %v2222_v19  ;;  %v2232_v54 = vrot.slane %v2231_v0, 4  ;;  %v1820_v55 = vmul.f32 %v1213_v61, %v3508_v38  ;;  %v1826_v34 = vmul.f32 %v1024_v26, %v3518_v35  ;;  %v1026_v45 = vpop.f32.mrf.mxu0  ;;  %v1217_v46 = vpop.f32.mrf.mxu1 }
 0x162   :  { %4571 = vst [vmem:[#allocation24_spill] sm:$0xff] %v4065_v13  ;;  %v2208_v40 = vadd.f32 %v2207_v44, %v2206_v3  ;;  %v2216_v49 = vrot.slane %v2215_v29, 2  ;;  %v1827_v1 = vmul.f32 %v1026_v45, %v3572_v18  ;;  %vm396_vm4 = vcmp.eq.f32.partialorder %v4564_v32, %v4572_v14 }
 0x163   :  { %v2225_v4 = vrot.slane %v2224_v57, 2  ;;  %v2233_v59 = vadd.f32 %v2232_v54, %v2231_v0  ;;  %v1821_v37 = vmul.f32 %v1215_v56, %v3570_v43  ;;  %v1828_v47 = vmul.f32 %v1217_v46, %v3520_v36  ;;  %v1030_v19 = vpop.f32.mrf.mxu0  ;;  %v1219_v51 = vpop.f32.mrf.mxu1 }
 0x164   :  { %v2209_v7 = vrot.slane %v2208_v40, 1  ;;  %v2217_v9 = vadd.f32 %v2216_v49, %v2215_v29  ;;  %v1834_v62 = vmul.f32 %v1030_v19, %v3578_v39  ;;  %vm468_vm6 = vcmp.eq.f32.partialorder %v4564_v32, %v4563_v15 }
 0x165   :  { %v2226_v3 = vadd.f32 %v2225_v4, %v2224_v57  ;;  %v2234_v61 = vrot.slane %v2233_v59, 2  ;;  %v2274_v2 = vadd.f32 %v1826_v34, %v1818_v42  ;;  %v1829_v52 = vmul.f32 %v1219_v51, %v3574_v21  ;;  %v1032_v26 = vpop.f32.mrf.mxu0  ;;  %v1223_v54 = vpop.f32.mrf.mxu1 }
 0x166   :  { %v2210_v0 = vadd.f32 %v2209_v7, %v2208_v40  ;;  %v2218_v44 = vrot.slane %v2217_v9, 1  ;;  %v2283_v56 = vadd.f32 %v1827_v1, %v1819_v11  ;;  %v1835_v45 = vmul.f32 %v1032_v26, %v3582_v50 }
 0x167   :  { %v2227_v46 = vrot.slane %v2226_v3, 1  ;;  %v2235_v29 = vadd.f32 %v2234_v61, %v2233_v59  ;;  %v2292_v49 = vadd.f32 %v1828_v47, %v1820_v55  ;;  %v1836_v19 = vmul.f32 %v1223_v54, %v3580_v48  ;;  %v1034_v5 = vpop.f32.mrf.mxu0  ;;  %v1225_v4 = vpop.f32.mrf.mxu1 }
 0x168   :  { %v4082_v57 = vsel %vm2560_vm3, %v2210_v0, %v4025_v28  ;;  %v2219_v42 = vadd.f32 %v2218_v44, %v2217_v9  ;;  %v2275_v34 = vadd.f32 %v2274_v2, %v1834_v62  ;;  %v1842_v40 = vmul.f32 %v1034_v5, %v3590_v17  ;;  %v4573_v44 = vld [vmem:[#allocation16_spill] sm:$0xff] }
 0x169   :  { %v2228_v7 = vadd.f32 %v2227_v46, %v2226_v3  ;;  %v2236_v11 = vrot.slane %v2235_v29, 1  ;;  %v2301_v1 = vadd.f32 %v1829_v52, %v1821_v37  ;;  %v1837_v51 = vmul.f32 %v1225_v4, %v3588_v16  ;;  %v1036_v26 = vpop.f32.mrf.mxu0  ;;  %v1227_v61 = vpop.f32.mrf.mxu1 }
 0x16a   :  { %v4088_v55 = vsel %vm2560_vm3, %v2219_v42, %v4031_v25  ;;  %v2284_v59 = vadd.f32 %v2283_v56, %v1835_v45  ;;  %v2276_v47 = vadd.f32 %v2275_v34, %v1842_v40  ;;  %v1843_v28 = vmul.f32 %v1036_v26, %v3627_v53  ;;  %v4574_v56 = vld [vmem:[#allocation6_spill] sm:$0xff] }
 0x16b   :  { %v4093_v9 = vsel %vm2560_vm3, %v2228_v7, %v4036_v33  ;;  %v2237_v5 = vadd.f32 %v2236_v11, %v2235_v29  ;;  %v2293_v62 = vadd.f32 %v2292_v49, %v1836_v19  ;;  %v1844_v37 = vmul.f32 %v1227_v61, %v3625_v20  ;;  %v1040_v3 = vpop.f32.mrf.mxu0  ;;  %v1229_v0 = vpop.f32.mrf.mxu1 }
 0x16c   :  { %v2277_v2 = vrot.slane %v2276_v47, 4  ;;  %v2285_v52 = vadd.f32 %v2284_v59, %v1843_v28  ;;  %v4100_v25 = vsel %vm396_vm4, %v4573_v44, 0.0  ;;  %vm401_vm7 = vcmp.eq.f32.partialorder %v4574_v56, %v3599_v23 }
 0x16d   :  { %v4106_v33 = vsel %vm2560_vm3, %v2237_v5, %v4047_v63  ;;  %v2302_v54 = vadd.f32 %v2301_v1, %v1837_v51  ;;  %vm2562_vm9 = vcmask 1045509   ;;  %v2294_v45 = vadd.f32 %v2293_v62, %v1844_v37  ;;  %v1042_v29 = vpop.f32.mrf.mxu0  ;;  %v1233_v42 = vpop.f32.mrf.mxu1  ;;  %v4575_v5 = vld [vmem:[#allocation8_spill] sm:$0xff] }
 0x16e   :  { %v1845_v46 = vmul.f32 %v1229_v0, %v3675_v27  ;;  %v2278_v49 = vadd.f32 %v2277_v2, %v2276_v47  ;;  %v2286_v19 = vrot.slane %v2285_v52, 4  ;;  %v4113_v34 = vsel %vm468_vm6, %v4565_v12, 0.0 }
 0x16f   :  { %vm473_vm11 = vcmp.eq.f32.partialorder %v4574_v56, %v3619_v8  ;;  %v2295_v63 = vrot.slane %v2294_v45, 4  ;;  %v1850_v40 = vmul.f32 %v1040_v3, %v3506_v30  ;;  %v1044_v7 = vpop.f32.mrf.mxu0  ;;  %v4122_v11 = vsel %vm401_vm7, %v3642_v58, 0.0  ;;  %v1235_v26 = vpop.f32.mrf.mxu1 }
 0x170   :  { %v2303_v4 = vadd.f32 %v2302_v54, %v1845_v46  ;;  %v2279_v1 = vrot.slane %v2278_v49, 2  ;;  %v2287_v51 = vadd.f32 %v2286_v19, %v2285_v52  ;;  %v1851_v32 = vmul.f32 %v1042_v29, %v3510_v31 }
 0x171   :  { %v1858_v59 = vmul.f32 %v1044_v7, %v3518_v35  ;;  %v2296_v47 = vadd.f32 %v2295_v63, %v2294_v45  ;;  %v1852_v61 = vmul.f32 %v1233_v42, %v3508_v38  ;;  %v1046_v28 = vpop.f32.mrf.mxu0  ;;  %v4128_v62 = vsel %vm473_vm11, %v4575_v5, 0.0  ;;  %v1237_v58 = vpop.f32.mrf.mxu1  ;;  %v4576_v45 = vld [vmem:[#allocation7_spill] sm:$0xff] }
 0x172   :  { %v2304_v8 = vrot.slane %v2303_v4, 4  ;;  %v2280_v37 = vadd.f32 %v2279_v1, %v2278_v49  ;;  %v2288_v3 = vrot.slane %v2287_v51, 2  ;;  %v1853_v23 = vmul.f32 %v1235_v26, %v3570_v43 }
 0x173   :  { %v1859_v2 = vmul.f32 %v1046_v28, %v3572_v18  ;;  %v2297_v52 = vrot.slane %v2296_v47, 2  ;;  %v1860_v54 = vmul.f32 %v1237_v58, %v3520_v36  ;;  %v1050_v46 = vpop.f32.mrf.mxu0  ;;  %vm403_vm12 = vcmp.eq.f32.partialorder %v4574_v56, %v4576_v45  ;;  %v1239_v63 = vpop.f32.mrf.mxu1 }
 0x174   :  { %v2305_v0 = vadd.f32 %v2304_v8, %v2303_v4  ;;  %v2281_v29 = vrot.slane %v2280_v37, 1  ;;  %v2289_v19 = vadd.f32 %v2288_v3, %v2287_v51  ;;  %v2346_v42 = vadd.f32 %v1858_v59, %v1850_v40 }
 0x175   :  { %v1866_v49 = vmul.f32 %v1050_v46, %v3578_v39  ;;  %v2298_v7 = vadd.f32 %v2297_v52, %v2296_v47  ;;  %v2355_v26 = vadd.f32 %v1859_v2, %v1851_v32  ;;  %v1861_v5 = vmul.f32 %v1239_v63, %v3574_v21  ;;  %v1052_v28 = vpop.f32.mrf.mxu0  ;;  %v1243_v58 = vpop.f32.mrf.mxu1 }
 0x176   :  { %v2306_v1 = vrot.slane %v2305_v0, 2  ;;  %v2282_v13 = vadd.f32 %v2281_v29, %v2280_v37  ;;  %v2290_v4 = vrot.slane %v2289_v19, 1  ;;  %v2364_v8 = vadd.f32 %v1860_v54, %v1852_v61 }
 0x177   :  { %v1867_v10 = vmul.f32 %v1052_v28, %v3582_v50  ;;  %v2299_v41 = vrot.slane %v2298_v7, 1  ;;  %v2347_v44 = vadd.f32 %v2346_v42, %v1866_v49  ;;  %v1868_v40 = vmul.f32 %v1243_v58, %v3580_v48  ;;  %v1054_v51 = vpop.f32.mrf.mxu0  ;;  %v1245_v3 = vpop.f32.mrf.mxu1 }
 0x178   :  { %v2307_v12 = vadd.f32 %v2306_v1, %v2305_v0  ;;  %v4141_v59 = vsel %vm2562_vm9, %v2282_v13, %v4082_v57  ;;  %v2291_v32 = vadd.f32 %v2290_v4, %v2289_v19  ;;  %v2373_v47 = vadd.f32 %v1861_v5, %v1853_v23  ;;  %v4577_v57 = vld [vmem:[#allocation10_spill] sm:$0xff]  ;;  %v4579_v4 = vld [vmem:[#allocation11_spill] sm:$0xff] }
 0x179   :  { %v1874_v37 = vmul.f32 %v1054_v51, %v3590_v17  ;;  %v2300_v2 = vadd.f32 %v2299_v41, %v2298_v7  ;;  %v2356_v52 = vadd.f32 %v2355_v26, %v1867_v10  ;;  %v1869_v54 = vmul.f32 %v1245_v3, %v3588_v16  ;;  %v1056_v46 = vpop.f32.mrf.mxu0  ;;  %v1247_v42 = vpop.f32.mrf.mxu1 }
 0x17a   :  { %v2308_v61 = vrot.slane %v2307_v12, 1  ;;  %v4147_v0 = vsel %vm2562_vm9, %v2291_v32, %v4088_v55  ;;  %v1875_v13 = vmul.f32 %v1056_v46, %v3627_v53  ;;  %vm475_vm13 = vcmp.eq.f32.partialorder %v4574_v56, %v4577_v57 }
 0x17b   :  { %v2348_v29 = vadd.f32 %v2347_v44, %v1874_v37  ;;  %v4154_v23 = vsel %vm2562_vm9, %v2300_v2, %v4093_v9  ;;  %v2365_v10 = vadd.f32 %v2364_v8, %v1868_v40  ;;  %v1876_v19 = vmul.f32 %v1247_v42, %v3625_v20  ;;  %v1060_v63 = vpop.f32.mrf.mxu0  ;;  %v1249_v1 = vpop.f32.mrf.mxu1  ;;  %v4578_v44 = vld [vmem:[#allocation9_spill] sm:$0xff] }
 0x17c   :  { %v2309_v41 = vadd.f32 %v2308_v61, %v2307_v12  ;;  %v2374_v49 = vadd.f32 %v2373_v47, %v1869_v54  ;;  %v2357_v55 = vadd.f32 %v2356_v52, %v1875_v13  ;;  %v435_v26 = vsel %vm403_vm12, %v4578_v44, 0.0 }
 0x17d   :  { %v2349_v7 = vrot.slane %v2348_v29, 4  ;;  %vm2564_vm8 = vcmask 1046534   ;;  %v2366_v9 = vadd.f32 %v2365_v10, %v1876_v19  ;;  %v1877_v12 = vmul.f32 %v1249_v1, %v3675_v27  ;;  %v1062_v28 = vpop.f32.mrf.mxu0  ;;  %v1253_v51 = vpop.f32.mrf.mxu1 }
 0x17e   :  { %v4163_v5 = vsel %vm2562_vm9, %v2309_v41, %v4106_v33  ;;  %v507_v8 = vsel %vm475_vm13, %v4579_v4, 0.0  ;;  %v2358_v40 = vrot.slane %v2357_v55, 4  ;;  %v4172_v45 = vadd.f32 %v4113_v34, %v4100_v25 }
 0x17f   :  { %v2350_v58 = vadd.f32 %v2349_v7, %v2348_v29  ;;  %v4176_v33 = vadd.f32 %v4128_v62, %v4122_v11  ;;  %v2367_v32 = vrot.slane %v2366_v9, 4  ;;  %v2375_v47 = vadd.f32 %v2374_v49, %v1877_v12  ;;  %v1064_v37 = vpop.f32.mrf.mxu0  ;;  %v1255_v52 = vpop.f32.mrf.mxu1 }
 0x180   :  { %v1882_v3 = vmul.f32 %v1060_v63, %v3506_v30  ;;  %vm402_vm15 = vcmp.eq.f32.partialorder %v4574_v56, %v3696_v6  ;;  %v2359_v61 = vadd.f32 %v2358_v40, %v2357_v55  ;;  %v1890_v54 = vmul.f32 %v1064_v37, %v3518_v35 }
 0x181   :  { %v2351_v2 = vrot.slane %v2350_v58, 2  ;;  %v4182_v46 = vadd.f32 %v507_v8, %v435_v26  ;;  %v2368_v25 = vadd.f32 %v2367_v32, %v2366_v9  ;;  %v2376_v34 = vrot.slane %v2375_v47, 4  ;;  %v1066_v29 = vpop.f32.mrf.mxu0  ;;  %v1257_v13 = vpop.f32.mrf.mxu1 }
 0x182   :  { %v1884_v11 = vmul.f32 %v1253_v51, %v3508_v38  ;;  %v1883_v62 = vmul.f32 %v1062_v28, %v3510_v31  ;;  %v2360_v30 = vrot.slane %v2359_v61, 2  ;;  %v1891_v57 = vmul.f32 %v1066_v29, %v3572_v18 }
 0x183   :  { %v2352_v42 = vadd.f32 %v2351_v2, %v2350_v58  ;;  %v4188_v6 = vsel %vm402_vm15, %v3709_v22, 0.0  ;;  %v2369_v41 = vrot.slane %v2368_v25, 2  ;;  %v2377_v10 = vadd.f32 %v2376_v34, %v2375_v47  ;;  %v1070_v63 = vpop.f32.mrf.mxu0  ;;  %v1259_v7 = vpop.f32.mrf.mxu1 }
 0x184   :  { %v1885_v35 = vmul.f32 %v1255_v52, %v3570_v43  ;;  %v1892_v19 = vmul.f32 %v1257_v13, %v3520_v36  ;;  %vm474_vm0 = vcmp.eq.f32.partialorder %v4574_v56, %v3738_v60  ;;  %v2361_v31 = vadd.f32 %v2360_v30, %v2359_v61  ;;  %v4580_v13 = vld [vmem:[#allocation12_spill] sm:$0xff] }
 0x185   :  { %v2353_v38 = vrot.slane %v2352_v42, 1  ;;  %v2418_v49 = vadd.f32 %v1890_v54, %v1882_v3  ;;  %v1898_v55 = vmul.f32 %v1070_v63, %v3578_v39  ;;  %v2370_v18 = vadd.f32 %v2369_v41, %v2368_v25  ;;  %v1072_v26 = vpop.f32.mrf.mxu0  ;;  %v1263_v36 = vpop.f32.mrf.mxu1  ;;  %v4581_v63 = vld [vmem:[#allocation18_spill] sm:$0xff] }
 0x186   :  { %v2378_v1 = vrot.slane %v2377_v10, 2  ;;  %v2427_v22 = vadd.f32 %v1891_v57, %v1883_v62  ;;  %v1893_v44 = vmul.f32 %v1259_v7, %v3574_v21  ;;  %v2362_v43 = vrot.slane %v2361_v31, 1  ;;  %v4582_v7 = vld [vmem:[#allocation13_spill] sm:$0xff] }
 0x187   :  { %v2354_v9 = vadd.f32 %v2353_v38, %v2352_v42  ;;  %v2436_v12 = vadd.f32 %v1892_v19, %v1884_v11  ;;  %v1899_v28 = vmul.f32 %v1072_v26, %v3582_v50  ;;  %v2371_v4 = vrot.slane %v2370_v18, 1  ;;  %v1074_v51 = vpop.f32.mrf.mxu0  ;;  %v1265_v21 = vpop.f32.mrf.mxu1  ;;  %v4584_v26 = vld [vmem:[#allocation20_spill] sm:$0xff] }
 0x188   :  { %v2379_v8 = vadd.f32 %v2378_v1, %v2377_v10  ;;  %v2419_v58 = vadd.f32 %v2418_v49, %v1898_v55  ;;  %v1900_v40 = vmul.f32 %v1263_v36, %v3580_v48  ;;  %v2363_v32 = vadd.f32 %v2362_v43, %v2361_v31  ;;  %v4585_v43 = vld [vmem:[#allocation17_spill] sm:$0xff] }
 0x189   :  { %v4200_v39 = vsel %vm2564_vm8, %v2354_v9, %v4141_v59  ;;  %v2445_v47 = vadd.f32 %v1893_v44, %v1885_v35  ;;  %v1906_v3 = vmul.f32 %v1074_v51, %v3590_v17  ;;  %v2372_v37 = vadd.f32 %v2371_v4, %v2370_v18  ;;  %v1076_v52 = vpop.f32.mrf.mxu0  ;;  %v1267_v34 = vpop.f32.mrf.mxu1 }
 0x18a   :  { %v2380_v2 = vrot.slane %v2379_v8, 1  ;;  %v2428_v61 = vadd.f32 %v2427_v22, %v1899_v28  ;;  %v1901_v50 = vmul.f32 %v1265_v21, %v3588_v16  ;;  %v4206_v54 = vsel %vm2564_vm8, %v2363_v32, %v4147_v0 }
 0x18b   :  { %v2437_v48 = vadd.f32 %v2436_v12, %v1900_v40  ;;  %v2420_v25 = vadd.f32 %v2419_v58, %v1906_v3  ;;  %v1907_v59 = vmul.f32 %v1076_v52, %v3627_v53  ;;  %v4211_v11 = vsel %vm2564_vm8, %v2372_v37, %v4154_v23  ;;  %v1306_v29 = vpop.f32.mrf.mxu0  ;;  %v1269_v30 = vpop.f32.mrf.mxu1  ;;  %v4588_v3 = vld [vmem:[#allocation21_spill] sm:$0xff] }
 0x18c   :  { %v2381_v17 = vadd.f32 %v2380_v2, %v2379_v8  ;;  %v1908_v62 = vmul.f32 %v1267_v34, %v3625_v20  ;;  %vm404_vm1 = vcmp.eq.f32.partialorder %v4574_v56, %v4572_v14  ;;  %v2446_v16 = vadd.f32 %v2445_v47, %v1901_v50  ;;  %v4589_v34 = vld [vmem:[#allocation5_spill] sm:$0xff] }
 0x18d   :  { %v2421_v42 = vrot.slane %v2420_v25, 4  ;;  %v2429_v0 = vadd.f32 %v2428_v61, %v1907_v59  ;;  %v1662_v57 = vmul.f32 %v1306_v29, %v4580_v13  ;;  %vm2566_vm2 = vcmask 1047559   ;;  %v1308_v10 = vpop.f32.mrf.mxu0  ;;  %v1499_v19 = vpop.f32.mrf.mxu1  ;;  %v4590_v29 = vld [vmem:[#allocation15_spill] sm:$0xff] }
 0x18e   :  { %v4219_v53 = vsel %vm2564_vm8, %v2381_v17, %v4163_v5  ;;  %v2438_v23 = vadd.f32 %v2437_v48, %v1908_v62  ;;  %v1909_v41 = vmul.f32 %v1269_v30, %v3675_v27  ;;  %vm476_vm4 = vcmp.eq.f32.partialorder %v4574_v56, %v4563_v15  ;;  %v4583_v27 = vld [vmem:[#allocation16_spill] sm:$0xff]  ;;  %v4587_v56 = vld [vmem:[#allocation22_spill] sm:$0xff] }
 0x18f   :  { %v2422_v20 = vadd.f32 %v2421_v42, %v2420_v25  ;;  %v2430_v35 = vrot.slane %v2429_v0, 4  ;;  %v1663_v38 = vmul.f32 %v1308_v10, %v4581_v63  ;;  %v506_v31 = vsel %vm474_vm0, %v3747_v24, 0.0  ;;  %v1310_v18 = vpop.f32.mrf.mxu0  ;;  %v1501_v44 = vpop.f32.mrf.mxu1  ;;  %v4586_v24 = vld [vmem:[#allocation19_spill] sm:$0xff] }
 0x190   :  { %v2439_v5 = vrot.slane %v2438_v23, 4  ;;  %v2447_v49 = vadd.f32 %v2446_v16, %v1909_v41  ;;  %v1664_v55 = vmul.f32 %v1499_v19, %v4582_v7  ;;  %v436_v15 = vsel %vm404_vm1, %v4583_v27, 0.0  ;;  %v4591_v41 = vld [vmem:[#allocation24_spill] sm:$0xff] }
 0x191   :  { %v2423_v1 = vrot.slane %v2422_v20, 2  ;;  %v2431_v22 = vadd.f32 %v2430_v35, %v2429_v0  ;;  %v1670_v9 = vmul.f32 %v1310_v18, %v4584_v26  ;;  %v508_v12 = vsel %vm476_vm4, %v4585_v43, 0.0  ;;  %v1312_v4 = vpop.f32.mrf.mxu0  ;;  %v1503_v14 = vpop.f32.mrf.mxu1 }
 0x192   :  { %v2440_v36 = vadd.f32 %v2439_v5, %v2438_v23  ;;  %v2448_v60 = vrot.slane %v2447_v49, 4  ;;  %v1665_v28 = vmul.f32 %v1501_v44, %v4586_v24  ;;  %v4238_v8 = vadd.f32 %v506_v31, %v4188_v6  ;;  %v4592_v31 = vld [vmem:[#allocation23_spill] sm:$0xff] }
 0x193   :  { %v2424_v58 = vadd.f32 %v2423_v1, %v2422_v20  ;;  %v2432_v40 = vrot.slane %v2431_v22, 2  ;;  %v1950_v51 = vadd.f32 %v1670_v9, %v1662_v57  ;;  %v1671_v32 = vmul.f32 %v1312_v4, %v4587_v56  ;;  %v1316_v2 = vpop.f32.mrf.mxu0  ;;  %v1505_v25 = vpop.f32.mrf.mxu1 }
 0x194   :  { %v2441_v47 = vrot.slane %v2440_v36, 2  ;;  %v2449_v21 = vadd.f32 %v2448_v60, %v2447_v49  ;;  %v1672_v37 = vmul.f32 %v1503_v14, %v4588_v3  ;;  %v4242_v61 = vadd.f32 %v508_v12, %v436_v15 }
 0x195   :  { %v2425_v50 = vrot.slane %v2424_v58, 1  ;;  %v2433_v52 = vadd.f32 %v2432_v40, %v2431_v22  ;;  %v1959_v48 = vadd.f32 %v1671_v32, %v1663_v38  ;;  %v1678_v6 = vmul.f32 %v1316_v2, %v4589_v34  ;;  %v1318_v42 = vpop.f32.mrf.mxu0  ;;  %v1509_v23 = vpop.f32.mrf.mxu1 }
 0x196   :  { %v2442_v59 = vadd.f32 %v2441_v47, %v2440_v36  ;;  %v2450_v17 = vrot.slane %v2449_v21, 2  ;;  %v1968_v62 = vadd.f32 %v1672_v37, %v1664_v55  ;;  %v1673_v16 = vmul.f32 %v1505_v25, %v4590_v29 }
 0x197   :  { %v2426_v0 = vadd.f32 %v2425_v50, %v2424_v58  ;;  %v2434_v30 = vrot.slane %v2433_v52, 1  ;;  %v1951_v57 = vadd.f32 %v1950_v51, %v1678_v6  ;;  %v1679_v10 = vmul.f32 %v1318_v42, %v4591_v41  ;;  %v1320_v5 = vpop.f32.mrf.mxu0  ;;  %v1511_v27 = vpop.f32.mrf.mxu1 }
 0x198   :  { %v2443_v20 = vrot.slane %v2442_v59, 1  ;;  %v2451_v35 = vadd.f32 %v2450_v17, %v2449_v21  ;;  %v1977_v19 = vadd.f32 %v1673_v16, %v1665_v28  ;;  %v1680_v38 = vmul.f32 %v1509_v23, %v4592_v31 }
 0x199   :  { %v2567_v49 = vsel %vm2566_vm2, %v2426_v0, %v4200_v39  ;;  %v2435_v18 = vadd.f32 %v2434_v30, %v2433_v52  ;;  %v1960_v55 = vadd.f32 %v1959_v48, %v1679_v10  ;;  %v1686_v15 = vmul.f32 %v1320_v5, %v4176_v33  ;;  %v1322_v43 = vpop.f32.mrf.mxu0  ;;  %v1513_v39 = vpop.f32.mrf.mxu1 }
 0x19a   :  { %2625 = vst [vmem:[%s4487_s2] sm:$0xff] %v2567_v49  ;;  %v2444_v1 = vadd.f32 %v2443_v20, %v2442_v59  ;;  %v2452_v22 = vrot.slane %v2451_v35, 1  ;;  %v1969_v44 = vadd.f32 %v1968_v62, %v1680_v38  ;;  %v1681_v9 = vmul.f32 %v1511_v27, %v4172_v45 }
 0x19b   :  { %v2574_v12 = vsel %vm2566_vm2, %v2435_v18, %v4206_v54  ;;  %v1952_v36 = vadd.f32 %v1951_v57, %v1686_v15  ;;  %v1687_v60 = vmul.f32 %v1322_v43, %v4238_v8  ;;  %v1688_v40 = vmul.f32 %v1513_v39, %v4182_v46  ;;  %v1326_v51 = vpop.f32.mrf.mxu0  ;;  %v1515_v32 = vpop.f32.mrf.mxu1 }
 0x19c   :  { %v2581_v28 = vsel %vm2566_vm2, %v2444_v1, %v4211_v11  ;;  %2626 = vst [vmem:[%s4487_s2 + $0x8] sm:$0xff] %v2574_v12  ;;  %v2453_v4 = vadd.f32 %v2452_v22, %v2451_v35  ;;  %v1978_v58 = vadd.f32 %v1977_v19, %v1681_v9  ;;  %v1694_v47 = vmul.f32 %v1326_v51, %v4580_v13 }
 0x19d   :  { %2627 = vst [vmem:[%s4487_s2 + $0x10] sm:$0xff] %v2581_v28  ;;  %v1953_v54 = vrot.slane %v1952_v36, 4  ;;  %v1961_v14 = vadd.f32 %v1960_v55, %v1687_v60  ;;  %v1970_v21 = vadd.f32 %v1969_v44, %v1688_v40  ;;  %v1689_v37 = vmul.f32 %v1515_v32, %v4242_v61  ;;  %v1328_v2 = vpop.f32.mrf.mxu0  ;;  %v1519_v48 = vpop.f32.mrf.mxu1 }
 0x19e   :  { %v2588_v11 = vsel %vm2566_vm2, %v2453_v4, %v4219_v53  ;;  %v1695_v25 = vmul.f32 %v1328_v2, %v4581_v63  ;;  %v1696_v17 = vmul.f32 %v1519_v48, %v4582_v7 }
 0x19f   :  { %2628 = vst [vmem:[%s4487_s2 + $0x18] sm:$0xff] %v2588_v11  ;;  %v1954_v50 = vadd.f32 %v1953_v54, %v1952_v36  ;;  %v1962_v52 = vrot.slane %v1961_v14, 4  ;;  %v1971_v6 = vrot.slane %v1970_v21, 4  ;;  %v1979_v59 = vadd.f32 %v1978_v58, %v1689_v37  ;;  %v1330_v62 = vpop.f32.mrf.mxu0  ;;  %v1521_v53 = vpop.f32.mrf.mxu1 }
 0x1a0   :  { %v1702_v42 = vmul.f32 %v1330_v62, %v4584_v26  ;;  %v1697_v30 = vmul.f32 %v1521_v53, %v4586_v24 }
 0x1a1   :  { %v1963_v16 = vadd.f32 %v1962_v52, %v1961_v14  ;;  %v1972_v0 = vadd.f32 %v1971_v6, %v1970_v21  ;;  %v1332_v57 = vpop.f32.mrf.mxu0  ;;  %v1955_v23 = vrot.slane %v1954_v50, 2  ;;  %v1523_v20 = vpop.f32.mrf.mxu1  ;;  %v1980_v19 = vrot.slane %v1979_v59, 4 }
 0x1a2   :  { %v2022_v10 = vadd.f32 %v1702_v42, %v1694_v47  ;;  %v1703_v35 = vmul.f32 %v1332_v57, %v4587_v56  ;;  %v1704_v38 = vmul.f32 %v1523_v20, %v4588_v3 }
 0x1a3   :  { %v1336_v5 = vpop.f32.mrf.mxu0  ;;  %v1964_v49 = vrot.slane %v1963_v16, 2  ;;  %v1525_v55 = vpop.f32.mrf.mxu1  ;;  %v1973_v15 = vrot.slane %v1972_v0, 2  ;;  %v1956_v9 = vadd.f32 %v1955_v23, %v1954_v50  ;;  %v1981_v39 = vadd.f32 %v1980_v19, %v1979_v59 }
 0x1a4   :  { %v2031_v18 = vadd.f32 %v1703_v35, %v1695_v25  ;;  %v1710_v27 = vmul.f32 %v1336_v5, %v4589_v34  ;;  %v2040_v1 = vadd.f32 %v1704_v38, %v1696_v17  ;;  %v1705_v22 = vmul.f32 %v1525_v55, %v4590_v29 }
 0x1a5   :  { %v1338_v44 = vpop.f32.mrf.mxu0  ;;  %v1529_v12 = vpop.f32.mrf.mxu1  ;;  %v1965_v58 = vadd.f32 %v1964_v49, %v1963_v16  ;;  %v1974_v14 = vadd.f32 %v1973_v15, %v1972_v0  ;;  %v1957_v21 = vrot.slane %v1956_v9, 1  ;;  %v1982_v52 = vrot.slane %v1981_v39, 2 }
 0x1a6   :  { %v2023_v43 = vadd.f32 %v2022_v10, %v1710_v27  ;;  %v1711_v36 = vmul.f32 %v1338_v44, %v4591_v41  ;;  %v2049_v60 = vadd.f32 %v1705_v22, %v1697_v30  ;;  %v1712_v28 = vmul.f32 %v1529_v12, %v4592_v31 }
 0x1a7   :  { %v1340_v4 = vpop.f32.mrf.mxu0  ;;  %v1531_v51 = vpop.f32.mrf.mxu1  ;;  %v1966_v59 = vrot.slane %v1965_v58, 1  ;;  %v1975_v42 = vrot.slane %v1974_v14, 1  ;;  %v1958_v23 = vadd.f32 %v1957_v21, %v1956_v9  ;;  %v1983_v38 = vadd.f32 %v1982_v52, %v1981_v39 }
 0x1a8   :  { %v2032_v40 = vadd.f32 %v2031_v18, %v1711_v36  ;;  %v1718_v54 = vmul.f32 %v1340_v4, %v4176_v33  ;;  %v2041_v32 = vadd.f32 %v2040_v1, %v1712_v28  ;;  %v1713_v47 = vmul.f32 %v1531_v51, %v4172_v45 }
 0x1a9   :  { %v1342_v11 = vpop.f32.mrf.mxu0  ;;  %v1533_v2 = vpop.f32.mrf.mxu1  ;;  %v1967_v27 = vadd.f32 %v1966_v59, %v1965_v58 }
 0x1aa   :  { %v2024_v37 = vadd.f32 %v2023_v43, %v1718_v54  ;;  %v1719_v50 = vmul.f32 %v1342_v11, %v4238_v8  ;;  %v2050_v48 = vadd.f32 %v2049_v60, %v1713_v47  ;;  %v1720_v25 = vmul.f32 %v1533_v2, %v4182_v46 }
 0x1ab   :  { %v1346_v6 = vpop.f32.mrf.mxu0  ;;  %v1535_v16 = vpop.f32.mrf.mxu1  ;;  %v1976_v43 = vadd.f32 %v1975_v42, %v1974_v14  ;;  %v1984_v54 = vrot.slane %v1983_v38, 1 }
 0x1ac   :  { %v2025_v17 = vrot.slane %v2024_v37, 4  ;;  %v2033_v62 = vadd.f32 %v2032_v40, %v1719_v50  ;;  %v1726_v53 = vmul.f32 %v1346_v6, %v4580_v13  ;;  %v2042_v0 = vadd.f32 %v2041_v32, %v1720_v25 }
 0x1ad   :  { %v1721_v30 = vmul.f32 %v1535_v16, %v4242_v61  ;;  %v1348_v57 = vpop.f32.mrf.mxu0  ;;  %v1539_v35 = vpop.f32.mrf.mxu1 }
 0x1ae   :  { %v2026_v10 = vadd.f32 %v2025_v17, %v2024_v37  ;;  %v2034_v20 = vrot.slane %v2033_v62, 4  ;;  %v1727_v19 = vmul.f32 %v1348_v57, %v4581_v63  ;;  %v2043_v5 = vrot.slane %v2042_v0, 4 }
 0x1af   :  { %v2051_v49 = vadd.f32 %v2050_v48, %v1721_v30  ;;  %v1728_v18 = vmul.f32 %v1539_v35, %v4582_v7  ;;  %v1350_v55 = vpop.f32.mrf.mxu0  ;;  %v1541_v22 = vpop.f32.mrf.mxu1 }
 0x1b0   :  { %v2027_v15 = vrot.slane %v2026_v10, 2  ;;  %v2035_v1 = vadd.f32 %v2034_v20, %v2033_v62  ;;  %v1734_v44 = vmul.f32 %v1350_v55, %v4584_v26  ;;  %v2044_v12 = vadd.f32 %v2043_v5, %v2042_v0 }
 0x1b1   :  { %v2052_v9 = vrot.slane %v2051_v49, 4  ;;  %v1729_v36 = vmul.f32 %v1541_v22, %v4586_v24  ;;  %v1352_v60 = vpop.f32.mrf.mxu0  ;;  %v1543_v40 = vpop.f32.mrf.mxu1 }
 0x1b2   :  { %v2028_v28 = vadd.f32 %v2027_v15, %v2026_v10  ;;  %v2036_v4 = vrot.slane %v2035_v1, 2  ;;  %v2094_v39 = vadd.f32 %v1734_v44, %v1726_v53  ;;  %v1735_v51 = vmul.f32 %v1352_v60, %v4587_v56 }
 0x1b3   :  { %v2045_v32 = vrot.slane %v2044_v12, 2  ;;  %v2053_v58 = vadd.f32 %v2052_v9, %v2051_v49  ;;  %v1736_v47 = vmul.f32 %v1543_v40, %v4588_v3  ;;  %v1356_v11 = vpop.f32.mrf.mxu0  ;;  %v1545_v2 = vpop.f32.mrf.mxu1 }
 0x1b4   :  { %v2029_v21 = vrot.slane %v2028_v28, 1  ;;  %v2037_v37 = vadd.f32 %v2036_v4, %v2035_v1  ;;  %v2103_v14 = vadd.f32 %v1735_v51, %v1727_v19  ;;  %v1742_v50 = vmul.f32 %v1356_v11, %v4589_v34 }
 0x1b5   :  { %v2046_v52 = vadd.f32 %v2045_v32, %v2044_v12  ;;  %v2054_v48 = vrot.slane %v2053_v58, 2  ;;  %v2112_v25 = vadd.f32 %v1736_v47, %v1728_v18  ;;  %v1737_v6 = vmul.f32 %v1545_v2, %v4590_v29  ;;  %v1358_v59 = vpop.f32.mrf.mxu0  ;;  %v1549_v53 = vpop.f32.mrf.mxu1 }
 0x1b6   :  { %v2030_v17 = vadd.f32 %v2029_v21, %v2028_v28  ;;  %v2038_v62 = vrot.slane %v2037_v37, 1  ;;  %v2095_v16 = vadd.f32 %v2094_v39, %v1742_v50  ;;  %v1743_v42 = vmul.f32 %v1358_v59, %v4591_v41 }
 0x1b7   :  { %v2047_v0 = vrot.slane %v2046_v52, 1  ;;  %v2055_v30 = vadd.f32 %v2054_v48, %v2053_v58  ;;  %v2121_v57 = vadd.f32 %v1737_v6, %v1729_v36  ;;  %v1744_v10 = vmul.f32 %v1549_v53, %v4592_v31  ;;  %v1360_v20 = vpop.f32.mrf.mxu0  ;;  %v1551_v49 = vpop.f32.mrf.mxu1 }
 0x1b8   :  { %v4301_v35 = vsel %vm2554_vm5, %v2030_v17, %v1958_v23  ;;  %v2039_v19 = vadd.f32 %v2038_v62, %v2037_v37  ;;  %v2104_v5 = vadd.f32 %v2103_v14, %v1743_v42  ;;  %v1750_v18 = vmul.f32 %v1360_v20, %v4176_v33 }
 0x1b9   :  { %v2048_v55 = vadd.f32 %v2047_v0, %v2046_v52  ;;  %v2056_v15 = vrot.slane %v2055_v30, 1  ;;  %v2113_v1 = vadd.f32 %v2112_v25, %v1744_v10  ;;  %v1745_v22 = vmul.f32 %v1551_v49, %v4172_v45  ;;  %v1362_v44 = vpop.f32.mrf.mxu0  ;;  %v1553_v60 = vpop.f32.mrf.mxu1 }
 0x1ba   :  { %v1985_v12 = vadd.f32 %v1984_v54, %v1983_v38  ;;  %v4306_v9 = vsel %vm2554_vm5, %v2039_v19, %v1967_v27  ;;  %v2096_v36 = vadd.f32 %v2095_v16, %v1750_v18  ;;  %v1751_v23 = vmul.f32 %v1362_v44, %v4238_v8 }
 0x1bb   :  { %v4310_v28 = vsel %vm2554_vm5, %v2048_v55, %v1976_v43  ;;  %v2057_v4 = vadd.f32 %v2056_v15, %v2055_v30  ;;  %v2122_v39 = vadd.f32 %v2121_v57, %v1745_v22  ;;  %v1752_v40 = vmul.f32 %v1553_v60, %v4182_v46  ;;  %v1366_v51 = vpop.f32.mrf.mxu0  ;;  %v1555_v47 = vpop.f32.mrf.mxu1 }
 0x1bc   :  { %v2097_v32 = vrot.slane %v2096_v36, 4  ;;  %v2105_v58 = vadd.f32 %v2104_v5, %v1751_v23  ;;  %v1758_v38 = vmul.f32 %v1366_v51, %v4580_v13  ;;  %v1753_v11 = vmul.f32 %v1555_v47, %v4242_v61 }
 0x1bd   :  { %v4315_v27 = vsel %vm2554_vm5, %v2057_v4, %v1985_v12  ;;  %v2114_v54 = vadd.f32 %v2113_v1, %v1752_v40  ;;  %v1368_v21 = vpop.f32.mrf.mxu0  ;;  %v1559_v14 = vpop.f32.mrf.mxu1 }
 0x1be   :  { %v2098_v37 = vadd.f32 %v2097_v32, %v2096_v36  ;;  %v2106_v43 = vrot.slane %v2105_v58, 4  ;;  %v1759_v2 = vmul.f32 %v1368_v21, %v4581_v63  ;;  %v2123_v52 = vadd.f32 %v2122_v39, %v1753_v11 }
 0x1bf   :  { %v2115_v50 = vrot.slane %v2114_v54, 4  ;;  %v1760_v48 = vmul.f32 %v1559_v14, %v4582_v7  ;;  %v1370_v25 = vpop.f32.mrf.mxu0  ;;  %v1561_v17 = vpop.f32.mrf.mxu1 }
 0x1c0   :  { %v2099_v6 = vrot.slane %v2098_v37, 2  ;;  %v2107_v59 = vadd.f32 %v2106_v43, %v2105_v58  ;;  %v1766_v62 = vmul.f32 %v1370_v25, %v4584_v26  ;;  %v2124_v53 = vrot.slane %v2123_v52, 4 }
 0x1c1   :  { %v2116_v16 = vadd.f32 %v2115_v50, %v2114_v54  ;;  %v1761_v42 = vmul.f32 %v1561_v17, %v4586_v24  ;;  %v1372_v0 = vpop.f32.mrf.mxu0  ;;  %v1563_v20 = vpop.f32.mrf.mxu1 }
 0x1c2   :  { %v2100_v30 = vadd.f32 %v2099_v6, %v2098_v37  ;;  %v2108_v57 = vrot.slane %v2107_v59, 2  ;;  %v2166_v10 = vadd.f32 %v1766_v62, %v1758_v38  ;;  %v1767_v19 = vmul.f32 %v1372_v0, %v4587_v56 }
 0x1c3   :  { %v2117_v5 = vrot.slane %v2116_v16, 2  ;;  %v2125_v49 = vadd.f32 %v2124_v53, %v2123_v52  ;;  %v1768_v18 = vmul.f32 %v1563_v20, %v4588_v3  ;;  %v1376_v55 = vpop.f32.mrf.mxu0  ;;  %v1565_v44 = vpop.f32.mrf.mxu1 }
 0x1c4   :  { %v2101_v15 = vrot.slane %v2100_v30, 1  ;;  %v2109_v1 = vadd.f32 %v2108_v57, %v2107_v59  ;;  %v2175_v22 = vadd.f32 %v1767_v19, %v1759_v2  ;;  %v1774_v12 = vmul.f32 %v1376_v55, %v4589_v34 }
 0x1c5   :  { %v2118_v36 = vadd.f32 %v2117_v5, %v2116_v16  ;;  %v2126_v60 = vrot.slane %v2125_v49, 2  ;;  %v2184_v23 = vadd.f32 %v1768_v18, %v1760_v48  ;;  %v1769_v4 = vmul.f32 %v1565_v44, %v4590_v29  ;;  %v1378_v39 = vpop.f32.mrf.mxu0  ;;  %v1569_v58 = vpop.f32.mrf.mxu1 }
 0x1c6   :  { %v2102_v40 = vadd.f32 %v2101_v15, %v2100_v30  ;;  %v2110_v51 = vrot.slane %v2109_v1, 1  ;;  %v2167_v32 = vadd.f32 %v2166_v10, %v1774_v12  ;;  %v1775_v47 = vmul.f32 %v1378_v39, %v4591_v41 }
 0x1c7   :  { %v2119_v38 = vrot.slane %v2118_v36, 1  ;;  %v2127_v54 = vadd.f32 %v2126_v60, %v2125_v49  ;;  %v2193_v11 = vadd.f32 %v1769_v4, %v1761_v42  ;;  %v1776_v21 = vmul.f32 %v1569_v58, %v4592_v31  ;;  %v1380_v37 = vpop.f32.mrf.mxu0  ;;  %v1571_v50 = vpop.f32.mrf.mxu1 }
 0x1c8   :  { %v4330_v43 = vsel %vm2556_vm10, %v2102_v40, %v4301_v35  ;;  %v2111_v14 = vadd.f32 %v2110_v51, %v2109_v1  ;;  %v2176_v2 = vadd.f32 %v2175_v22, %v1775_v47  ;;  %v1782_v52 = vmul.f32 %v1380_v37, %v4176_v33 }
 0x1c9   :  { %v2120_v48 = vadd.f32 %v2119_v38, %v2118_v36  ;;  %v2128_v25 = vrot.slane %v2127_v54, 1  ;;  %v2185_v6 = vadd.f32 %v2184_v23, %v1776_v21  ;;  %v1777_v59 = vmul.f32 %v1571_v50, %v4172_v45  ;;  %v1382_v17 = vpop.f32.mrf.mxu0  ;;  %v1573_v53 = vpop.f32.mrf.mxu1 }
 0x1ca   :  { %v4336_v62 = vsel %vm2556_vm10, %v2111_v14, %v4306_v9  ;;  %v2168_v16 = vadd.f32 %v2167_v32, %v1782_v52  ;;  %v1783_v35 = vmul.f32 %v1382_v17, %v4238_v8  ;;  %v1784_v57 = vmul.f32 %v1573_v53, %v4182_v46 }
 0x1cb   :  { %v4341_v42 = vsel %vm2556_vm10, %v2120_v48, %v4310_v28  ;;  %v2129_v0 = vadd.f32 %v2128_v25, %v2127_v54  ;;  %v2194_v30 = vadd.f32 %v2193_v11, %v1777_v59  ;;  %v1386_v10 = vpop.f32.mrf.mxu0  ;;  %v1575_v5 = vpop.f32.mrf.mxu1 }
 0x1cc   :  { %v2169_v20 = vrot.slane %v2168_v16, 4  ;;  %v2177_v19 = vadd.f32 %v2176_v2, %v1783_v35  ;;  %v2186_v49 = vadd.f32 %v2185_v6, %v1784_v57  ;;  %v1785_v18 = vmul.f32 %v1575_v5, %v4242_v61 }
 0x1cd   :  { %v4346_v9 = vsel %vm2556_vm10, %v2129_v0, %v4315_v27  ;;  %v1388_v55 = vpop.f32.mrf.mxu0  ;;  %v1579_v28 = vpop.f32.mrf.mxu1  ;;  %v1790_v40 = vmul.f32 %v1386_v10, %v4580_v13 }
 0x1ce   :  { %v2170_v15 = vadd.f32 %v2169_v20, %v2168_v16  ;;  %v2178_v1 = vrot.slane %v2177_v19, 4  ;;  %v2187_v22 = vrot.slane %v2186_v49, 4  ;;  %v2195_v44 = vadd.f32 %v2194_v30, %v1785_v18 }
 0x1cf   :  { %v1390_v12 = vpop.f32.mrf.mxu0  ;;  %v1581_v23 = vpop.f32.mrf.mxu1  ;;  %v1791_v47 = vmul.f32 %v1388_v55, %v4581_v63  ;;  %v1792_v37 = vmul.f32 %v1579_v28, %v4582_v7 }
 0x1d0   :  { %v2171_v36 = vrot.slane %v2170_v15, 2  ;;  %v2179_v60 = vadd.f32 %v2178_v1, %v2177_v19  ;;  %v2188_v4 = vadd.f32 %v2187_v22, %v2186_v49  ;;  %v2196_v39 = vrot.slane %v2195_v44, 4 }
 0x1d1   :  { %v1798_v27 = vmul.f32 %v1390_v12, %v4584_v26  ;;  %v1392_v51 = vpop.f32.mrf.mxu0  ;;  %v1583_v38 = vpop.f32.mrf.mxu1  ;;  %v1793_v48 = vmul.f32 %v1581_v23, %v4586_v24 }
 0x1d2   :  { %v2172_v32 = vadd.f32 %v2171_v36, %v2170_v15  ;;  %v2180_v58 = vrot.slane %v2179_v60, 2  ;;  %v1799_v54 = vmul.f32 %v1392_v51, %v4587_v56  ;;  %v2189_v11 = vrot.slane %v2188_v4, 2 }
 0x1d3   :  { %v2197_v21 = vadd.f32 %v2196_v39, %v2195_v44  ;;  %v1800_v14 = vmul.f32 %v1583_v38, %v4588_v3  ;;  %v1396_v2 = vpop.f32.mrf.mxu0  ;;  %v1585_v25 = vpop.f32.mrf.mxu1  ;;  %v2238_v16 = vadd.f32 %v1798_v27, %v1790_v40 }
 0x1d4   :  { %v2173_v50 = vrot.slane %v2172_v32, 1  ;;  %v2181_v52 = vadd.f32 %v2180_v58, %v2179_v60  ;;  %v1806_v6 = vmul.f32 %v1396_v2, %v4589_v34  ;;  %v2190_v59 = vadd.f32 %v2189_v11, %v2188_v4 }
 0x1d5   :  { %v2198_v17 = vrot.slane %v2197_v21, 2  ;;  %v1801_v53 = vmul.f32 %v1585_v25, %v4590_v29  ;;  %v1398_v35 = vpop.f32.mrf.mxu0  ;;  %v2247_v57 = vadd.f32 %v1799_v54, %v1791_v47  ;;  %v1589_v10 = vpop.f32.mrf.mxu1  ;;  %v2256_v49 = vadd.f32 %v1800_v14, %v1792_v37 }
 0x1d6   :  { %v2174_v0 = vadd.f32 %v2173_v50, %v2172_v32  ;;  %v2182_v30 = vrot.slane %v2181_v52, 1  ;;  %v1807_v20 = vmul.f32 %v1398_v35, %v4591_v41  ;;  %v2191_v19 = vrot.slane %v2190_v59, 1 }
 0x1d7   :  { %v2199_v5 = vadd.f32 %v2198_v17, %v2197_v21  ;;  %v1808_v18 = vmul.f32 %v1589_v10, %v4592_v31  ;;  %v1400_v55 = vpop.f32.mrf.mxu0  ;;  %v2239_v28 = vadd.f32 %v2238_v16, %v1806_v6  ;;  %v1591_v22 = vpop.f32.mrf.mxu1  ;;  %v2265_v60 = vadd.f32 %v1801_v53, %v1793_v48 }
 0x1d8   :  { %v4362_v15 = vsel %vm2558_vm14, %v2174_v0, %v4330_v43  ;;  %v2183_v1 = vadd.f32 %v2182_v30, %v2181_v52  ;;  %v1814_v44 = vmul.f32 %v1400_v55, %v4176_v33  ;;  %v2192_v12 = vadd.f32 %v2191_v19, %v2190_v59 }
 0x1d9   :  { %v2200_v36 = vrot.slane %v2199_v5, 1  ;;  %v1809_v23 = vmul.f32 %v1591_v22, %v4172_v45  ;;  %v1402_v4 = vpop.f32.mrf.mxu0  ;;  %v2248_v40 = vadd.f32 %v2247_v57, %v1807_v20  ;;  %v1593_v51 = vpop.f32.mrf.mxu1  ;;  %v2257_v47 = vadd.f32 %v2256_v49, %v1808_v18 }
 0x1da   :  { %v4368_v39 = vsel %vm2558_vm14, %v2183_v1, %v4336_v62  ;;  %v2240_v27 = vadd.f32 %v2239_v28, %v1814_v44  ;;  %v1815_v43 = vmul.f32 %v1402_v4, %v4238_v8  ;;  %v4373_v32 = vsel %vm2558_vm14, %v2192_v12, %v4341_v42 }
 0x1db   :  { %v2201_v58 = vadd.f32 %v2200_v36, %v2199_v5  ;;  %v1816_v38 = vmul.f32 %v1593_v51, %v4182_v46  ;;  %v1406_v54 = vpop.f32.mrf.mxu0  ;;  %v1595_v37 = vpop.f32.mrf.mxu1  ;;  %v2266_v14 = vadd.f32 %v2265_v60, %v1809_v23 }
 0x1dc   :  { %v2241_v11 = vrot.slane %v2240_v27, 4  ;;  %v2249_v21 = vadd.f32 %v2248_v40, %v1815_v43  ;;  %v1817_v50 = vmul.f32 %v1595_v37, %v4242_v61  ;;  %v1822_v57 = vmul.f32 %v1406_v54, %v4580_v13 }
 0x1dd   :  { %v4378_v62 = vsel %vm2558_vm14, %v2201_v58, %v4346_v9  ;;  %v2258_v2 = vadd.f32 %v2257_v47, %v1816_v38  ;;  %v1408_v52 = vpop.f32.mrf.mxu0  ;;  %v1599_v25 = vpop.f32.mrf.mxu1 }
 0x1de   :  { %v2242_v48 = vadd.f32 %v2241_v11, %v2240_v27  ;;  %v2250_v42 = vrot.slane %v2249_v21, 4  ;;  %v2267_v59 = vadd.f32 %v2266_v14, %v1817_v50  ;;  %v1823_v5 = vmul.f32 %v1408_v52, %v4581_v63 }
 0x1df   :  { %v2259_v6 = vrot.slane %v2258_v2, 4  ;;  %v1410_v17 = vpop.f32.mrf.mxu0  ;;  %v1601_v35 = vpop.f32.mrf.mxu1  ;;  %v1824_v28 = vmul.f32 %v1599_v25, %v4582_v7 }
 0x1e0   :  { %v2243_v16 = vrot.slane %v2242_v48, 2  ;;  %v2251_v53 = vadd.f32 %v2250_v42, %v2249_v21  ;;  %v2268_v30 = vrot.slane %v2267_v59, 4  ;;  %v1830_v9 = vmul.f32 %v1410_v17, %v4584_v26 }
 0x1e1   :  { %v2260_v0 = vadd.f32 %v2259_v6, %v2258_v2  ;;  %v1412_v10 = vpop.f32.mrf.mxu0  ;;  %v1603_v49 = vpop.f32.mrf.mxu1  ;;  %v1825_v60 = vmul.f32 %v1601_v35, %v4586_v24 }
 0x1e2   :  { %v2244_v20 = vadd.f32 %v2243_v16, %v2242_v48  ;;  %v2252_v19 = vrot.slane %v2251_v53, 2  ;;  %v1831_v18 = vmul.f32 %v1412_v10, %v4587_v56  ;;  %v2269_v1 = vadd.f32 %v2268_v30, %v2267_v59 }
 0x1e3   :  { %v2261_v55 = vrot.slane %v2260_v0, 2  ;;  %v1832_v22 = vmul.f32 %v1603_v49, %v4588_v3  ;;  %v1416_v44 = vpop.f32.mrf.mxu0  ;;  %v1605_v23 = vpop.f32.mrf.mxu1  ;;  %v2310_v51 = vadd.f32 %v1830_v9, %v1822_v57 }
 0x1e4   :  { %v2245_v12 = vrot.slane %v2244_v20, 1  ;;  %v2253_v36 = vadd.f32 %v2252_v19, %v2251_v53  ;;  %v1838_v4 = vmul.f32 %v1416_v44, %v4589_v34  ;;  %v2270_v27 = vrot.slane %v2269_v1, 2 }
 0x1e5   :  { %v2262_v40 = vadd.f32 %v2261_v55, %v2260_v0  ;;  %v1833_v43 = vmul.f32 %v1605_v23, %v4590_v29  ;;  %v1418_v58 = vpop.f32.mrf.mxu0  ;;  %v2319_v54 = vadd.f32 %v1831_v18, %v1823_v5  ;;  %v1609_v11 = vpop.f32.mrf.mxu1  ;;  %v2328_v2 = vadd.f32 %v1832_v22, %v1824_v28 }
 0x1e6   :  { %v2246_v47 = vadd.f32 %v2245_v12, %v2244_v20  ;;  %v2254_v38 = vrot.slane %v2253_v36, 1  ;;  %v1839_v21 = vmul.f32 %v1418_v58, %v4591_v41  ;;  %v2271_v14 = vadd.f32 %v2270_v27, %v2269_v1 }
 0x1e7   :  { %v2263_v37 = vrot.slane %v2262_v40, 1  ;;  %v1840_v50 = vmul.f32 %v1609_v11, %v4592_v31  ;;  %v1420_v52 = vpop.f32.mrf.mxu0  ;;  %v2311_v25 = vadd.f32 %v2310_v51, %v1838_v4  ;;  %v1611_v6 = vpop.f32.mrf.mxu1  ;;  %v2337_v53 = vadd.f32 %v1833_v43, %v1825_v60 }
 0x1e8   :  { %v4394_v48 = vsel %vm2560_vm3, %v2246_v47, %v4362_v15  ;;  %v2255_v42 = vadd.f32 %v2254_v38, %v2253_v36  ;;  %v1846_v59 = vmul.f32 %v1420_v52, %v4176_v33  ;;  %v2272_v16 = vrot.slane %v2271_v14, 1 }
 0x1e9   :  { %v2264_v17 = vadd.f32 %v2263_v37, %v2262_v40  ;;  %v1841_v35 = vmul.f32 %v1611_v6, %v4172_v45  ;;  %v1422_v0 = vpop.f32.mrf.mxu0  ;;  %v2320_v57 = vadd.f32 %v2319_v54, %v1839_v21  ;;  %v1613_v10 = vpop.f32.mrf.mxu1  ;;  %v2329_v5 = vadd.f32 %v2328_v2, %v1840_v50 }
 0x1ea   :  { %v4400_v30 = vsel %vm2560_vm3, %v2255_v42, %v4368_v39  ;;  %v2312_v9 = vadd.f32 %v2311_v25, %v1846_v59  ;;  %v1847_v15 = vmul.f32 %v1422_v0, %v4238_v8  ;;  %v2273_v19 = vadd.f32 %v2272_v16, %v2271_v14 }
 0x1eb   :  { %v4405_v20 = vsel %vm2560_vm3, %v2264_v17, %v4373_v32  ;;  %v1848_v49 = vmul.f32 %v1613_v10, %v4182_v46  ;;  %v1426_v18 = vpop.f32.mrf.mxu0  ;;  %v1615_v28 = vpop.f32.mrf.mxu1  ;;  %v2338_v22 = vadd.f32 %v2337_v53, %v1841_v35 }
 0x1ec   :  { %v2313_v55 = vrot.slane %v2312_v9, 4  ;;  %v2321_v1 = vadd.f32 %v2320_v57, %v1847_v15  ;;  %v4410_v39 = vsel %vm2560_vm3, %v2273_v19, %v4378_v62  ;;  %v1849_v12 = vmul.f32 %v1615_v28, %v4242_v61 }
 0x1ed   :  { %v2330_v44 = vadd.f32 %v2329_v5, %v1848_v49  ;;  %v1428_v36 = vpop.f32.mrf.mxu0  ;;  %v1619_v23 = vpop.f32.mrf.mxu1  ;;  %v1854_v54 = vmul.f32 %v1426_v18, %v4580_v13 }
 0x1ee   :  { %v2314_v60 = vadd.f32 %v2313_v55, %v2312_v9  ;;  %v2322_v32 = vrot.slane %v2321_v1, 4  ;;  %v2339_v40 = vadd.f32 %v2338_v22, %v1849_v12  ;;  %v1855_v14 = vmul.f32 %v1428_v36, %v4581_v63 }
 0x1ef   :  { %v2331_v4 = vrot.slane %v2330_v44, 4  ;;  %v1430_v27 = vpop.f32.mrf.mxu0  ;;  %v1621_v58 = vpop.f32.mrf.mxu1  ;;  %v1856_v25 = vmul.f32 %v1619_v23, %v4582_v7 }
 0x1f0   :  { %v2315_v51 = vrot.slane %v2314_v60, 2  ;;  %v2323_v43 = vadd.f32 %v2322_v32, %v2321_v1  ;;  %v2340_v38 = vrot.slane %v2339_v40, 4  ;;  %v1862_v62 = vmul.f32 %v1430_v27, %v4584_v26 }
 0x1f1   :  { %v2332_v47 = vadd.f32 %v2331_v4, %v2330_v44  ;;  %v1432_v11 = vpop.f32.mrf.mxu0  ;;  %v1623_v2 = vpop.f32.mrf.mxu1  ;;  %v1857_v53 = vmul.f32 %v1621_v58, %v4586_v24 }
 0x1f2   :  { %v2316_v21 = vadd.f32 %v2315_v51, %v2314_v60  ;;  %v2324_v37 = vrot.slane %v2323_v43, 2  ;;  %v1863_v50 = vmul.f32 %v1432_v11, %v4587_v56  ;;  %v2341_v42 = vadd.f32 %v2340_v38, %v2339_v40 }
 0x1f3   :  { %v2333_v52 = vrot.slane %v2332_v47, 2  ;;  %v1864_v6 = vmul.f32 %v1623_v2, %v4588_v3  ;;  %v1436_v59 = vpop.f32.mrf.mxu0  ;;  %v1625_v35 = vpop.f32.mrf.mxu1  ;;  %v2382_v10 = vadd.f32 %v1862_v62, %v1854_v54 }
 0x1f4   :  { %v2317_v17 = vrot.slane %v2316_v21, 1  ;;  %v2325_v16 = vadd.f32 %v2324_v37, %v2323_v43  ;;  %v1870_v0 = vmul.f32 %v1436_v59, %v4589_v34  ;;  %v2342_v9 = vrot.slane %v2341_v42, 2 }
 0x1f5   :  { %v2334_v57 = vadd.f32 %v2333_v52, %v2332_v47  ;;  %v1865_v15 = vmul.f32 %v1625_v35, %v4590_v29  ;;  %v1438_v19 = vpop.f32.mrf.mxu0  ;;  %v2391_v18 = vadd.f32 %v1863_v50, %v1855_v14  ;;  %v1629_v55 = vpop.f32.mrf.mxu1  ;;  %v2400_v44 = vadd.f32 %v1864_v6, %v1856_v25 }
 0x1f6   :  { %v2318_v5 = vadd.f32 %v2317_v17, %v2316_v21  ;;  %v2326_v49 = vrot.slane %v2325_v16, 1  ;;  %v1871_v1 = vmul.f32 %v1438_v19, %v4591_v41  ;;  %v2343_v22 = vadd.f32 %v2342_v9, %v2341_v42 }
 0x1f7   :  { %v2335_v28 = vrot.slane %v2334_v57, 1  ;;  %v1872_v12 = vmul.f32 %v1629_v55, %v4592_v31  ;;  %v1440_v36 = vpop.f32.mrf.mxu0  ;;  %v2383_v23 = vadd.f32 %v2382_v10, %v1870_v0  ;;  %v1631_v4 = vpop.f32.mrf.mxu1  ;;  %v2409_v43 = vadd.f32 %v1865_v15, %v1857_v53 }
 0x1f8   :  { %v4426_v60 = vsel %vm2562_vm9, %v2318_v5, %v4394_v48  ;;  %v2327_v32 = vadd.f32 %v2326_v49, %v2325_v16  ;;  %v1878_v40 = vmul.f32 %v1440_v36, %v4176_v33  ;;  %v2344_v51 = vrot.slane %v2343_v22, 1 }
 0x1f9   :  { %v2336_v27 = vadd.f32 %v2335_v28, %v2334_v57  ;;  %v1873_v58 = vmul.f32 %v1631_v4, %v4172_v45  ;;  %v1442_v47 = vpop.f32.mrf.mxu0  ;;  %v2392_v54 = vadd.f32 %v2391_v18, %v1871_v1  ;;  %v1633_v11 = vpop.f32.mrf.mxu1  ;;  %v2401_v14 = vadd.f32 %v2400_v44, %v1872_v12 }
 0x1fa   :  { %v4432_v38 = vsel %vm2562_vm9, %v2327_v32, %v4400_v30  ;;  %v2384_v62 = vadd.f32 %v2383_v23, %v1878_v40  ;;  %v1879_v48 = vmul.f32 %v1442_v47, %v4238_v8  ;;  %v2345_v37 = vadd.f32 %v2344_v51, %v2343_v22 }
 0x1fb   :  { %v4437_v21 = vsel %vm2562_vm9, %v2336_v27, %v4405_v20  ;;  %v1880_v2 = vmul.f32 %v1633_v11, %v4182_v46  ;;  %v1446_v50 = vpop.f32.mrf.mxu0  ;;  %v1635_v25 = vpop.f32.mrf.mxu1  ;;  %v2410_v6 = vadd.f32 %v2409_v43, %v1873_v58 }
 0x1fc   :  { %v2385_v52 = vrot.slane %v2384_v62, 4  ;;  %v2393_v42 = vadd.f32 %v2392_v54, %v1879_v48  ;;  %v4442_v30 = vsel %vm2562_vm9, %v2345_v37, %v4410_v39  ;;  %v1881_v17 = vmul.f32 %v1635_v25, %v4242_v61 }
 0x1fd   :  { %v2402_v59 = vadd.f32 %v2401_v14, %v1880_v2  ;;  %v1448_v16 = vpop.f32.mrf.mxu0  ;;  %v1639_v35 = vpop.f32.mrf.mxu1  ;;  %v1886_v18 = vmul.f32 %v1446_v50, %v4580_v13 }
 0x1fe   :  { %v2386_v53 = vadd.f32 %v2385_v52, %v2384_v62  ;;  %v2394_v20 = vrot.slane %v2393_v42, 4  ;;  %v2411_v57 = vadd.f32 %v2410_v6, %v1881_v17  ;;  %v1887_v22 = vmul.f32 %v1448_v16, %v4581_v63 }
 0x1ff   :  { %v2403_v0 = vrot.slane %v2402_v59, 4  ;;  %v1450_v9 = vpop.f32.mrf.mxu0  ;;  %v1641_v19 = vpop.f32.mrf.mxu1  ;;  %v1888_v23 = vmul.f32 %v1639_v35, %v4582_v7 }
 0x200   :  { %v2387_v10 = vrot.slane %v2386_v53, 2  ;;  %v2395_v15 = vadd.f32 %v2394_v20, %v2393_v42  ;;  %v2412_v49 = vrot.slane %v2411_v57, 4  ;;  %v1894_v39 = vmul.f32 %v1450_v9, %v4584_v26 }
 0x201   :  { %v2404_v5 = vadd.f32 %v2403_v0, %v2402_v59  ;;  %v1452_v55 = vpop.f32.mrf.mxu0  ;;  %v1643_v44 = vpop.f32.mrf.mxu1  ;;  %v1889_v13 = vmul.f32 %v1641_v19, %v4586_v24 }
 0x202   :  { %v2388_v1 = vadd.f32 %v2387_v10, %v2386_v53  ;;  %v2396_v28 = vrot.slane %v2395_v15, 2  ;;  %v1895_v12 = vmul.f32 %v1452_v55, %v4587_v56  ;;  %v2413_v32 = vadd.f32 %v2412_v49, %v2411_v57 }
 0x203   :  { %v2405_v36 = vrot.slane %v2404_v5, 2  ;;  %v1896_v4 = vmul.f32 %v1643_v44, %v4588_v3  ;;  %v1456_v40 = vpop.f32.mrf.mxu0  ;;  %v1645_v26 = vpop.f32.mrf.mxu1  ;;  %v2454_v63 = vadd.f32 %v1894_v39, %v1886_v18 }
 0x204   :  { %v2389_v27 = vrot.slane %v2388_v1, 1  ;;  %v2397_v51 = vadd.f32 %v2396_v28, %v2395_v15  ;;  %v1902_v43 = vmul.f32 %v1456_v40, %v4589_v34  ;;  %v2414_v47 = vrot.slane %v2413_v32, 2 }
 0x205   :  { %v2406_v58 = vadd.f32 %v2405_v36, %v2404_v5  ;;  %v1897_v54 = vmul.f32 %v1645_v26, %v4590_v29  ;;  %v1458_v56 = vpop.f32.mrf.mxu0  ;;  %v2463_v48 = vadd.f32 %v1895_v12, %v1887_v22  ;;  %v1649_v7 = vpop.f32.mrf.mxu1  ;;  %v2472_v2 = vadd.f32 %v1896_v4, %v1888_v23 }
 0x206   :  { %v2390_v62 = vadd.f32 %v2389_v27, %v2388_v1  ;;  %v2398_v11 = vrot.slane %v2397_v51, 1  ;;  %v1903_v3 = vmul.f32 %v1458_v56, %v4591_v41  ;;  %v2415_v14 = vadd.f32 %v2414_v47, %v2413_v32 }
 0x207   :  { %v2407_v37 = vrot.slane %v2406_v58, 1  ;;  %v1904_v24 = vmul.f32 %v1649_v7, %v4592_v31  ;;  %v1460_v50 = vpop.f32.mrf.mxu0  ;;  %v2455_v42 = vadd.f32 %v2454_v63, %v1902_v43  ;;  %v1651_v25 = vpop.f32.mrf.mxu1  ;;  %v2481_v17 = vadd.f32 %v1897_v54, %v1889_v13 }
 0x208   :  { %v2594_v34 = vsel %vm2564_vm8, %v2390_v62, %v4426_v60  ;;  %v2399_v52 = vadd.f32 %v2398_v11, %v2397_v51  ;;  %v1910_v29 = vmul.f32 %v1460_v50, %v4176_v33  ;;  %v2416_v59 = vrot.slane %v2415_v14, 1 }
 0x209   :  { %v2408_v6 = vadd.f32 %v2407_v37, %v2406_v58  ;;  %v1905_v16 = vmul.f32 %v1651_v25, %v4172_v45  ;;  %v1462_v41 = vpop.f32.mrf.mxu0  ;;  %v2464_v20 = vadd.f32 %v2463_v48, %v1903_v3  ;;  %v1653_v35 = vpop.f32.mrf.mxu1  ;;  %v2473_v9 = vadd.f32 %v2472_v2, %v1904_v24 }
 0x20a   :  { %v2601_v53 = vsel %vm2564_vm8, %v2399_v52, %v4432_v38  ;;  %v2456_v31 = vadd.f32 %v2455_v42, %v1910_v29  ;;  %v1911_v0 = vmul.f32 %v1462_v41, %v4238_v8  ;;  %v2417_v57 = vadd.f32 %v2416_v59, %v2415_v14 }
 0x20b   :  { %v2608_v60 = vsel %vm2564_vm8, %v2408_v6, %v4437_v21  ;;  %v1912_v33 = vmul.f32 %v1653_v35, %v4182_v46  ;;  %v1655_v19 = vpop.f32.mrf.mxu1  ;;  %v2482_v5 = vadd.f32 %v2481_v17, %v1905_v16 }
 0x20c   :  { %v2457_v10 = vrot.slane %v2456_v31, 4  ;;  %v2465_v15 = vadd.f32 %v2464_v20, %v1911_v0  ;;  %v2615_v45 = vsel %vm2564_vm8, %v2417_v57, %v4442_v30  ;;  %v1913_v49 = vmul.f32 %v1655_v19, %v4242_v61 }
 0x20d   :  { %v2474_v38 = vadd.f32 %v2473_v9, %v1912_v33 }
 0x20e   :  { %v2458_v18 = vadd.f32 %v2457_v10, %v2456_v31  ;;  %v2466_v39 = vrot.slane %v2465_v15, 4  ;;  %v2483_v55 = vadd.f32 %v2482_v5, %v1913_v49 }
 0x20f   :  { %v2475_v8 = vrot.slane %v2474_v38, 4 }
 0x210   :  { %v2459_v1 = vrot.slane %v2458_v18, 2  ;;  %v2467_v21 = vadd.f32 %v2466_v39, %v2465_v15  ;;  %v2484_v22 = vrot.slane %v2483_v55, 4 }
 0x211   :  { %v2476_v28 = vadd.f32 %v2475_v8, %v2474_v38 }
 0x212   :  { %v2460_v44 = vadd.f32 %v2459_v1, %v2458_v18  ;;  %v2468_v46 = vrot.slane %v2467_v21, 2  ;;  %v2485_v36 = vadd.f32 %v2484_v22, %v2483_v55 }
 0x213   :  { %v2477_v12 = vrot.slane %v2476_v28, 2 }
 0x214   :  { %v2461_v32 = vrot.slane %v2460_v44, 1  ;;  %v2469_v23 = vadd.f32 %v2468_v46, %v2467_v21  ;;  %v2486_v30 = vrot.slane %v2485_v36, 2 }
 0x215   :  { %v2478_v4 = vadd.f32 %v2477_v12, %v2476_v28 }
 0x216   :  { %v2462_v40 = vadd.f32 %v2461_v32, %v2460_v44  ;;  %v2470_v27 = vrot.slane %v2469_v23, 1  ;;  %v2487_v61 = vadd.f32 %v2486_v30, %v2485_v36 }
 0x217   :  { %v2479_v51 = vrot.slane %v2478_v4, 1 }
 0x218   :  { %v2595_v13 = vsel %vm2566_vm2, %v2462_v40, %v2594_v34  ;;  %v2471_v26 = vadd.f32 %v2470_v27, %v2469_v23  ;;  %v2488_v58 = vrot.slane %v2487_v61, 1 }
 0x219   :  { %2629 = vst [vmem:[%s4487_s2 + $0x20] sm:$0xff] %v2595_v13  ;;  %v2480_v43 = vadd.f32 %v2479_v51, %v2478_v4 }
 0x21a   :  { %v2602_v47 = vsel %vm2566_vm2, %v2471_v26, %v2601_v53  ;;  %v2489_v54 = vadd.f32 %v2488_v58, %v2487_v61 }
 0x21b   :  { %v2609_v63 = vsel %vm2566_vm2, %v2480_v43, %v2608_v60  ;;  %2630 = vst [vmem:[%s4487_s2 + $0x28] sm:$0xff] %v2602_v47 }
 0x21c   :  { %2631 = vst [vmem:[%s4487_s2 + $0x30] sm:$0xff] %v2609_v63  ;;  %v2616_v56 = vsel %vm2566_vm2, %v2489_v54, %v2615_v45 }
 0x21d   :  { %2632 = vst [vmem:[%s4487_s2 + $0x38] sm:$0xff] %v2616_v56 }
 0x21e   :  { %2637 = vsyncpa [#allocation3], 1 }

</bundles_post_ra>
